<compile_context>
chip_gen: v7x
topology: tpu7x:2x2x1
jax: 0.10.0
libtpu: 0.0.40
codegen_flags: <defaults>
</compile_context>

<pallas_src>
import functools

import jax
import jax.numpy as jnp
from jax.experimental import pallas as pl
from jax.experimental.pallas import tpu as pltpu

K = 4  # conv kernel size used throughout the module
_PARITIES = ((0, 0), (0, 1), (1, 0), (1, 1))   # (ry, rx): output pixel (2m+ry, 2q+rx)
_TAPS = ((0, 0), (0, 1), (1, 0), (1, 1))       # (dy, dx): 2x2 window taps of h


def _round_up(v, m):
    return (v + m - 1) // m * m


def _shift_users():
    """Map shift index s=(sy+1)*3+(sx+1) -> list of (parity_idx, tap_idx) using it.

    For parity (ry,rx) and tap (dy,dx), the contributing h pixel is shifted by
    (sy, sx) = (ry+dy-1, rx+dx-1) with zero fill at image borders.
    """
    users = {s: [] for s in range(9)}
    for p_idx, (ry, rx) in enumerate(_PARITIES):
        for t_idx, (dy, dx) in enumerate(_TAPS):
            users[(ry + dy) * 3 + (rx + dx)].append((p_idx, t_idx))
    return users


# ---------------------------------------------------------------------------
# Kernel 1: fused down-conv + ReLU + sub-pixel ConvTranspose + BN partial sums.
#   grid = (N,): one image per step.  The grid axis is "arbitrary" because the
#   BN sum / sumsq output blocks (constant index_map) are carried across it.
# ---------------------------------------------------------------------------
def _make_fused_kernel(hw, outer_p):
    users = _shift_users()

    def kernel(pat_ref, wd_ref, s_ref, wu_ref, ypre_ref, ssum_ref, ssq_ref):
        n = pl.program_id(0)

        # Two-pass BatchNorm, pass 1: init the per-channel accumulators once.
        @pl.when(n == 0)
        def _():
            ssum_ref[...] = jnp.zeros_like(ssum_ref)
            ssq_ref[...] = jnp.zeros_like(ssq_ref)

        mxu = wd_ref.dtype

        # ---- down path: stride-2 Conv2d as one im2col matmul on the MXU.
        # (LeakyReLU was already applied to the *unexpanded* x before im2col.)
        h = jnp.dot(pat_ref[0].astype(mxu), wd_ref[...],
                    preferred_element_type=jnp.float32)        # (hw, inner_p)
        h = jnp.maximum(h, 0.0).astype(mxu)                     # ReLU on unexpanded h

        # ---- up path: ConvTranspose2d(k4,s2,p1) as 4 parity planes, each the
        # sum of 4 tap matmuls.  The zero-padded spatial shifts of h come from
        # precomputed 0/1 shift matrices (exact selection; matmul-only lowering).
        g = [jnp.zeros((hw, outer_p), jnp.float32) for _ in range(4)]
        for s_idx in range(9):
            pairs = users[s_idx]
            if not pairs:
                continue
            hs = jnp.dot(s_ref[s_idx], h,
                         preferred_element_type=jnp.float32).astype(mxu)
            for p_idx, t_idx in pairs:
                g[p_idx] = g[p_idx] + jnp.dot(
                    hs, wu_ref[p_idx, t_idx], preferred_element_type=jnp.float32)

        # ---- write parity planes + accumulate BN sum / sum-of-squares.
        psum = jnp.zeros((1, outer_p), jnp.float32)
        psq = jnp.zeros((1, outer_p), jnp.float32)
        for p_idx in range(4):
            gp = g[p_idx]
            ypre_ref[0, p_idx] = gp
            psum = psum + jnp.sum(gp, axis=0, keepdims=True)
            psq = psq + jnp.sum(gp * gp, axis=0, keepdims=True)
        ssum_ref[...] += psum
        ssq_ref[...] += psq

    return kernel


# ---------------------------------------------------------------------------
# Kernel 2: BatchNorm pass 2 -- apply the folded per-channel affine.
# ---------------------------------------------------------------------------
def _bn_apply_kernel(g_ref, scale_ref, shift_ref, y_ref):
    y_ref[...] = g_ref[...] * scale_ref[...] + shift_ref[...]


# ---------------------------------------------------------------------------
# Plain-JAX glue (layout only): boundary transposes, pad, im2col, weight prep.
# ---------------------------------------------------------------------------
def _im2col_nhwc(xp, k, stride, ho, wo):
    """xp: (N, Hp, Wp, C) -> (N, ho*wo, k*k*C), feature order (kh, kw, c)."""
    cols = [xp[:, kh:kh + stride * (ho - 1) + 1:stride,
               kw:kw + stride * (wo - 1) + 1:stride, :]
            for kh in range(k) for kw in range(k)]
    p = jnp.concatenate(cols, axis=-1)               # (N, ho, wo, k*k*C)
    return p.reshape(p.shape[0], ho * wo, k * k * xp.shape[-1])


def _shift_matrices(ho, wo):
    """(9, ho*wo, ho*wo) 0/1 matrices S_s with (S_s @ h_flat)[(m,q)] = h[m+sy, q+sx]
    (zero when out of bounds), s = (sy+1)*3 + (sx+1)."""
    mi = jnp.arange(ho)
    qi = jnp.arange(wo)
    mats = []
    for sy in (-1, 0, 1):
        rowm = (mi[:, None] + sy == mi[None, :]).astype(jnp.float32)   # (ho, ho)
        for sx in (-1, 0, 1):
            colq = (qi[:, None] + sx == qi[None, :]).astype(jnp.float32)  # (wo, wo)
            s = (rowm[:, None, :, None] * colq[None, :, None, :]).reshape(
                ho * wo, ho * wo)
            mats.append(s)
    return jnp.stack(mats, axis=0)


def unet_innermost_block(x, w_down, w_up, gamma, beta, *, mxu_dtype=jnp.bfloat16):
    """x: (N, input_nc, H, W) NCHW; returns cat([x, model(x)], dim=1) in NCHW."""
    N, cin, H, W = x.shape
    inner_nc = w_down.shape[0]
    outer_nc = w_up.shape[1]
    ho, wo = H // 2, W // 2
    hw = ho * wo
    inner_p = _round_up(inner_nc, 128)   # lane-dense h / matmul widths
    outer_p = _round_up(outer_nc, 128)   # lane-dense output stores (no vst.msk)
    cpat = K * K * cin
    cpat_p = _round_up(cpat, 128)        # lane-dense patch loads

    x = x.astype(jnp.float32)
    x_nhwc = jnp.transpose(x, (0, 2, 3, 1))          # one transpose at the boundary

    # Down-path LHS: LeakyReLU on the *unexpanded* input (lrelu(0)=0 commutes with
    # zero padding), then pad + stride-2 im2col (4x expansion of x, done once).
    xa = jnp.where(x_nhwc >= 0, x_nhwc, 0.2 * x_nhwc)
    xp = jnp.pad(xa, ((0, 0), (1, 1), (1, 1), (0, 0)))
    patches = _im2col_nhwc(xp, K, 2, ho, wo)                    # (N, hw, cpat) f32
    patches = jnp.pad(patches, ((0, 0), (0, 0), (0, cpat_p - cpat)))

    # Down-conv weight in matmul layout (rows ordered (kh, kw, cin)).
    wd_mat = jnp.transpose(w_down, (2, 3, 1, 0)).reshape(cpat, inner_nc)
    wd_mat = jnp.pad(wd_mat, ((0, cpat_p - cpat),
                              (0, inner_p - inner_nc))).astype(mxu_dtype)

    # Sub-pixel ConvTranspose weights: output pixel (2m+ry, 2q+rx) reads the 2x2
    # window h[m-1+ry+dy, q-1+rx+dx] with kernel tap (3-ry-2*dy, 3-rx-2*dx).
    wu_pt = jnp.zeros((4, 4, inner_p, outer_p), jnp.float32)
    for p_idx, (ry, rx) in enumerate(_PARITIES):
        for t_idx, (dy, dx) in enumerate(_TAPS):
            wu_pt = wu_pt.at[p_idx, t_idx, :inner_nc, :outer_nc].set(
                w_up[:, :, 3 - ry - 2 * dy, 3 - rx - 2 * dx])
    wu_pt = wu_pt.astype(mxu_dtype)

    # Zero-padded spatial shift operators for the 2x2 windows of h.
    s_all = _shift_matrices(ho, wo).astype(mxu_dtype)           # (9, hw, hw)

    # ---- kernel 1: fused down + ReLU + up + BN partial sums ------------------
    ypre, ssum, ssq = pl.pallas_call(
        _make_fused_kernel(hw, outer_p),
        out_shape=(
            jax.ShapeDtypeStruct((N, 4, hw, outer_p), jnp.float32),
            jax.ShapeDtypeStruct((1, outer_p), jnp.float32),
            jax.ShapeDtypeStruct((1, outer_p), jnp.float32),
        ),
        grid_spec=pltpu.PrefetchScalarGridSpec(
            num_scalar_prefetch=0,
            grid=(N,),
            in_specs=[
                pl.BlockSpec((1, hw, cpat_p), lambda n: (n, 0, 0)),
                pl.BlockSpec((cpat_p, inner_p), lambda n: (0, 0)),          # resident
                pl.BlockSpec((9, hw, hw), lambda n: (0, 0, 0)),             # resident
                pl.BlockSpec((4, 4, inner_p, outer_p), lambda n: (0, 0, 0, 0)),
            ],
            out_specs=(
                pl.BlockSpec((1, 4, hw, outer_p), lambda n: (n, 0, 0, 0)),
                pl.BlockSpec((1, outer_p), lambda n: (0, 0)),   # BN sum accumulator
                pl.BlockSpec((1, outer_p), lambda n: (0, 0)),   # BN sumsq accumulator
            ),
        ),
        compiler_params=pltpu.CompilerParams(
            # The batch axis carries the BN accumulators => must stay sequential.
            # TODO(synk): on v7x, keep per-core partial stats to re-enable megacore.
            dimension_semantics=("arbitrary",)),
    )(patches, wd_mat, s_all, wu_pt)

    # ---- BatchNorm2d (training semantics, biased stats) folded to scale/shift.
    count = jnp.float32(N * H * W)
    mean = ssum / count
    var = jnp.maximum(ssq / count - mean * mean, 0.0)
    gamma_p = jnp.pad(gamma.astype(jnp.float32),
                      (0, outer_p - outer_nc)).reshape(1, outer_p)
    beta_p = jnp.pad(beta.astype(jnp.float32),
                     (0, outer_p - outer_nc)).reshape(1, outer_p)
    scale = gamma_p * jax.lax.rsqrt(var + 1e-5)
    shift = beta_p - mean * scale

    # ---- kernel 2: apply the folded affine (BN pass 2), tiled + parallel. ----
    y_norm = pl.pallas_call(
        _bn_apply_kernel,
        out_shape=jax.ShapeDtypeStruct((N, 4, hw, outer_p), jnp.float32),
        grid_spec=pltpu.PrefetchScalarGridSpec(
            num_scalar_prefetch=0,
            grid=(N,),
            in_specs=[
                pl.BlockSpec((1, 4, hw, outer_p), lambda n: (n, 0, 0, 0)),
                pl.BlockSpec((1, outer_p), lambda n: (0, 0)),   # resident
                pl.BlockSpec((1, outer_p), lambda n: (0, 0)),   # resident
            ],
            out_specs=pl.BlockSpec((1, 4, hw, outer_p), lambda n: (n, 0, 0, 0)),
        ),
        compiler_params=pltpu.CompilerParams(
            dimension_semantics=("parallel",)),
    )(ypre, scale, shift)

    # ---- pixel-shuffle parity planes back to NHWC, skip-concat on channels. ----
    y = y_norm.reshape(N, 2, 2, ho, wo, outer_p)
    y = jnp.transpose(y, (0, 3, 1, 4, 2, 5)).reshape(N, H, W, outer_p)[..., :outer_nc]
    out_nhwc = jnp.concatenate([x_nhwc, y], axis=-1)
    return jnp.transpose(out_nhwc, (0, 3, 1, 2))     # back to NCHW at the boundary


# ---------------------------------------------------------------------------
# Pure-JAX reference (same math, XLA convs at HIGHEST precision).
# ---------------------------------------------------------------------------
def _reference(x, w_down, w_up, gamma, beta):
    dn = ("NCHW", "OIHW", "NCHW")
    xr = jnp.where(x >= 0, x, 0.2 * x)
    h = jax.lax.conv_general_dilated(
        xr, w_down, (2, 2), ((1, 1), (1, 1)), dimension_numbers=dn,
        precision=jax.lax.Precision.HIGHEST)
    hr = jnp.maximum(h, 0.0)
    wc = jnp.transpose(w_up, (1, 0, 2, 3))[:, :, ::-1, ::-1]
    g = jax.lax.conv_general_dilated(
        hr, wc, (1, 1), ((2, 2), (2, 2)), lhs_dilation=(2, 2),
        dimension_numbers=dn, precision=jax.lax.Precision.HIGHEST)
    mean = g.mean(axis=(0, 2, 3), keepdims=True)
    var = ((g - mean) ** 2).mean(axis=(0, 2, 3), keepdims=True)
    gn = (gamma.reshape(1, -1, 1, 1) * (g - mean) * jax.lax.rsqrt(var + 1e-5)
          + beta.reshape(1, -1, 1, 1))
    return jnp.concatenate([x, gn], axis=1)


if __name__ == "__main__":
    key = jax.random.PRNGKey(0)
    N, input_nc, H, W = 2, 4, 16, 16
    outer_nc = input_nc      # module default: input_nc = outer_nc
    inner_nc = 8

    k1, k2, k3, k4, k5 = jax.random.split(key, 5)
    x = jax.random.normal(k1, (N, input_nc, H, W), jnp.float32)
    w_down = 0.1 * jax.random.normal(k2, (inner_nc, input_nc, K, K), jnp.float32)
    w_up = 0.1 * jax.random.normal(k3, (inner_nc, outer_nc, K, K), jnp.float32)
    gamma = 1.0 + 0.1 * jax.random.normal(k4, (outer_nc,), jnp.float32)
    beta = 0.1 * jax.random.normal(k5, (outer_nc,), jnp.float32)

    ref = _reference(x, w_down, w_up, gamma, beta)

    # Strict correctness gate with f32 MXU operands: shift matmuls are exact
    # 0/1 selections, so any layout / parity / BN bug shows up as O(0.1+) error.
    fwd_f32 = jax.jit(functools.partial(unet_innermost_block, mxu_dtype=jnp.float32))
    out_f32 = jax.block_until_ready(fwd_f32(x, w_down, w_up, gamma, beta))
    assert out_f32.shape == (N, input_nc + outer_nc, H, W), out_f32.shape
    if not bool(jnp.allclose(out_f32, ref, atol=1e-3, rtol=1e-3)):
        raise SystemExit("f32 kernel/reference mismatch: max abs diff = %e"
                         % float(jnp.max(jnp.abs(out_f32 - ref))))

    # Default fast path: bf16 MXU operands, f32 accumulate.  Looser bound covers
    # bf16 operand rounding of the two real contractions after BN normalization.
    fwd = jax.jit(unet_innermost_block)
    out = jax.block_until_ready(fwd(x, w_down, w_up, gamma, beta))
    assert out.shape == (N, input_nc + outer_nc, H, W), out.shape
    if not bool(jnp.allclose(out, ref, atol=5e-2, rtol=5e-2)):
        raise SystemExit("bf16 kernel/reference mismatch: max abs diff = %e"
                         % float(jnp.max(jnp.abs(out - ref))))

    # The skip connection must pass through bit-exactly.
    if not bool(jnp.array_equal(out[:, :input_nc], x)):
        raise SystemExit("skip-connection channels are not bit-exact")

    print("KERNEL_OK")
</pallas_src>

<mosaic_0001>
module attributes {stable_mosaic.version = 11 : i64} {
  func.func @kernel(%arg0: i32, %arg1: memref<1x64x128xf32, #tpu.memory_space<vmem>>, %arg2: memref<128x128xf32, #tpu.memory_space<vmem>>, %arg3: memref<9x64x64xf32, #tpu.memory_space<vmem>>, %arg4: memref<4x4x128x128xf32, #tpu.memory_space<vmem>>, %arg5: memref<1x4x64x128xf32, #tpu.memory_space<vmem>>, %arg6: memref<1x128xf32, #tpu.memory_space<vmem>>, %arg7: memref<1x128xf32, #tpu.memory_space<vmem>>) attributes {dimension_semantics = [#tpu.dimension_semantics<arbitrary>], iteration_bounds = array<i64: 2>, scalar_prefetch = 0 : i64, scratch_operands = 0 : i64, tpu.core_type = #tpu.core_type<tc>, window_params = [{transform_indices = @transform_0, window_bounds = array<i64: 1, 64, 128>}, {pipeline_mode = #tpu.pipeline_mode<synchronous>, transform_indices = @transform_1, window_bounds = array<i64: 128, 128>}, {pipeline_mode = #tpu.pipeline_mode<synchronous>, transform_indices = @transform_2, window_bounds = array<i64: 9, 64, 64>}, {pipeline_mode = #tpu.pipeline_mode<synchronous>, transform_indices = @transform_3, window_bounds = array<i64: 4, 4, 128, 128>}, {transform_indices = @transform_4, window_bounds = array<i64: 1, 4, 64, 128>}, {pipeline_mode = #tpu.pipeline_mode<synchronous>, transform_indices = @transform_5, window_bounds = array<i64: 1, 128>}, {pipeline_mode = #tpu.pipeline_mode<synchronous>, transform_indices = @transform_6, window_bounds = array<i64: 1, 128>}]} {
    %c0_i32 = arith.constant 0 : i32
    %0 = arith.cmpi eq, %arg0, %c0_i32 : i32
    %1 = arith.extui %0 : i1 to i32
    %c0_i32_0 = arith.constant 0 : i32
    %2 = arith.cmpi ne, %1, %c0_i32_0 : i32
    scf.if %2 {
      %cst_152 = arith.constant 0.000000e+00 : f32
      %152 = vector.broadcast %cst_152 : f32 to vector<1x128xf32>
      %c0_153 = arith.constant 0 : index
      %c0_154 = arith.constant 0 : index
      %153 = vector.load %arg6[%c0_153, %c0_154] : memref<1x128xf32, #tpu.memory_space<vmem>>, vector<1x128xf32>
      tpu.vector_store %arg6[%c0_153, %c0_154], %152 {strides = array<i32>} : memref<1x128xf32, #tpu.memory_space<vmem>>, vector<1x128xf32>,
      %cst_155 = arith.constant 0.000000e+00 : f32
      %154 = vector.broadcast %cst_155 : f32 to vector<1x128xf32>
      %c0_156 = arith.constant 0 : index
      %c0_157 = arith.constant 0 : index
      %155 = vector.load %arg7[%c0_156, %c0_157] : memref<1x128xf32, #tpu.memory_space<vmem>>, vector<1x128xf32>
      tpu.vector_store %arg7[%c0_156, %c0_157], %154 {strides = array<i32>} : memref<1x128xf32, #tpu.memory_space<vmem>>, vector<1x128xf32>,
    } else {
    }
    %c0 = arith.constant 0 : index
    %c0_1 = arith.constant 0 : index
    %c0_2 = arith.constant 0 : index
    %3 = vector.load %arg1[%c0, %c0_1, %c0_2] : memref<1x64x128xf32, #tpu.memory_space<vmem>>, vector<1x64x128xf32>
    %4 = vector.shape_cast %3 : vector<1x64x128xf32> to vector<64x128xf32>
    %c0_3 = arith.constant 0 : index
    %c0_4 = arith.constant 0 : index
    %5 = vector.load %arg2[%c0_3, %c0_4] : memref<128x128xf32, #tpu.memory_space<vmem>>, vector<128x128xf32>
    %cst = arith.constant dense<0.000000e+00> : vector<64x128xf32>
    %6 = tpu.matmul %4, %5, %cst {dimension_numbers = #tpu.dot_dimension_numbers<[1], [0], [0], [1], [0, 0, 1, 1], [], []>} : vector<64x128xf32>, vector<128x128xf32>, vector<64x128xf32> -> vector<64x128xf32>
    %cst_5 = arith.constant 0.000000e+00 : f32
    %7 = vector.broadcast %cst_5 : f32 to vector<64x128xf32>
    %8 = arith.maximumf %6, %7 : vector<64x128xf32>
    %cst_6 = arith.constant 0.000000e+00 : f32
    %9 = vector.broadcast %cst_6 : f32 to vector<64x128xf32>
    %cst_7 = arith.constant 0.000000e+00 : f32
    %10 = vector.broadcast %cst_7 : f32 to vector<64x128xf32>
    %cst_8 = arith.constant 0.000000e+00 : f32
    %11 = vector.broadcast %cst_8 : f32 to vector<64x128xf32>
    %cst_9 = arith.constant 0.000000e+00 : f32
    %12 = vector.broadcast %cst_9 : f32 to vector<64x128xf32>
    %c0_10 = arith.constant 0 : index
    %c0_11 = arith.constant 0 : index
    %c0_12 = arith.constant 0 : index
    %13 = vector.load %arg3[%c0_10, %c0_11, %c0_12] : memref<9x64x64xf32, #tpu.memory_space<vmem>>, vector<1x64x64xf32>
    %14 = vector.shape_cast %13 : vector<1x64x64xf32> to vector<64x64xf32>
    %cst_13 = arith.constant dense<0.000000e+00> : vector<64x128xf32>
    %15 = tpu.matmul %14, %8, %cst_13 {dimension_numbers = #tpu.dot_dimension_numbers<[1], [0], [0], [1], [0, 0, 1, 1], [], []>} : vector<64x64xf32>, vector<64x128xf32>, vector<64x128xf32> -> vector<64x128xf32>
    %c0_14 = arith.constant 0 : index
    %c0_15 = arith.constant 0 : index
    %c0_16 = arith.constant 0 : index
    %c0_17 = arith.constant 0 : index
    %16 = vector.load %arg4[%c0_14, %c0_15, %c0_16, %c0_17] : memref<4x4x128x128xf32, #tpu.memory_space<vmem>>, vector<1x1x128x128xf32>
    %17 = vector.shape_cast %16 : vector<1x1x128x128xf32> to vector<128x128xf32>
    %cst_18 = arith.constant dense<0.000000e+00> : vector<64x128xf32>
    %18 = tpu.matmul %15, %17, %cst_18 {dimension_numbers = #tpu.dot_dimension_numbers<[1], [0], [0], [1], [0, 0, 1, 1], [], []>} : vector<64x128xf32>, vector<128x128xf32>, vector<64x128xf32> -> vector<64x128xf32>
    %19 = arith.addf %9, %18 : vector<64x128xf32>
    %c1 = arith.constant 1 : index
    %c0_19 = arith.constant 0 : index
    %c0_20 = arith.constant 0 : index
    %20 = vector.load %arg3[%c1, %c0_19, %c0_20] : memref<9x64x64xf32, #tpu.memory_space<vmem>>, vector<1x64x64xf32>
    %21 = vector.shape_cast %20 : vector<1x64x64xf32> to vector<64x64xf32>
    %cst_21 = arith.constant dense<0.000000e+00> : vector<64x128xf32>
    %22 = tpu.matmul %21, %8, %cst_21 {dimension_numbers = #tpu.dot_dimension_numbers<[1], [0], [0], [1], [0, 0, 1, 1], [], []>} : vector<64x64xf32>, vector<64x128xf32>, vector<64x128xf32> -> vector<64x128xf32>
    %c0_22 = arith.constant 0 : index
    %c1_23 = arith.constant 1 : index
    %c0_24 = arith.constant 0 : index
    %c0_25 = arith.constant 0 : index
    %23 = vector.load %arg4[%c0_22, %c1_23, %c0_24, %c0_25] : memref<4x4x128x128xf32, #tpu.memory_space<vmem>>, vector<1x1x128x128xf32>
    %24 = vector.shape_cast %23 : vector<1x1x128x128xf32> to vector<128x128xf32>
    %cst_26 = arith.constant dense<0.000000e+00> : vector<64x128xf32>
    %25 = tpu.matmul %22, %24, %cst_26 {dimension_numbers = #tpu.dot_dimension_numbers<[1], [0], [0], [1], [0, 0, 1, 1], [], []>} : vector<64x128xf32>, vector<128x128xf32>, vector<64x128xf32> -> vector<64x128xf32>
    %26 = arith.addf %19, %25 : vector<64x128xf32>
    %c1_27 = arith.constant 1 : index
    %c0_28 = arith.constant 0 : index
    %c0_29 = arith.constant 0 : index
    %c0_30 = arith.constant 0 : index
    %27 = vector.load %arg4[%c1_27, %c0_28, %c0_29, %c0_30] : memref<4x4x128x128xf32, #tpu.memory_space<vmem>>, vector<1x1x128x128xf32>
    %28 = vector.shape_cast %27 : vector<1x1x128x128xf32> to vector<128x128xf32>
    %cst_31 = arith.constant dense<0.000000e+00> : vector<64x128xf32>
    %29 = tpu.matmul %22, %28, %cst_31 {dimension_numbers = #tpu.dot_dimension_numbers<[1], [0], [0], [1], [0, 0, 1, 1], [], []>} : vector<64x128xf32>, vector<128x128xf32>, vector<64x128xf32> -> vector<64x128xf32>
    %30 = arith.addf %10, %29 : vector<64x128xf32>
    %c2 = arith.constant 2 : index
    %c0_32 = arith.constant 0 : index
    %c0_33 = arith.constant 0 : index
    %31 = vector.load %arg3[%c2, %c0_32, %c0_33] : memref<9x64x64xf32, #tpu.memory_space<vmem>>, vector<1x64x64xf32>
    %32 = vector.shape_cast %31 : vector<1x64x64xf32> to vector<64x64xf32>
    %cst_34 = arith.constant dense<0.000000e+00> : vector<64x128xf32>
    %33 = tpu.matmul %32, %8, %cst_34 {dimension_numbers = #tpu.dot_dimension_numbers<[1], [0], [0], [1], [0, 0, 1, 1], [], []>} : vector<64x64xf32>, vector<64x128xf32>, vector<64x128xf32> -> vector<64x128xf32>
    %c1_35 = arith.constant 1 : index
    %c1_36 = arith.constant 1 : index
    %c0_37 = arith.constant 0 : index
    %c0_38 = arith.constant 0 : index
    %34 = vector.load %arg4[%c1_35, %c1_36, %c0_37, %c0_38] : memref<4x4x128x128xf32, #tpu.memory_space<vmem>>, vector<1x1x128x128xf32>
    %35 = vector.shape_cast %34 : vector<1x1x128x128xf32> to vector<128x128xf32>
    %cst_39 = arith.constant dense<0.000000e+00> : vector<64x128xf32>
    %36 = tpu.matmul %33, %35, %cst_39 {dimension_numbers = #tpu.dot_dimension_numbers<[1], [0], [0], [1], [0, 0, 1, 1], [], []>} : vector<64x128xf32>, vector<128x128xf32>, vector<64x128xf32> -> vector<64x128xf32>
    %37 = arith.addf %30, %36 : vector<64x128xf32>
    %c3 = arith.constant 3 : index
    %c0_40 = arith.constant 0 : index
    %c0_41 = arith.constant 0 : index
    %38 = vector.load %arg3[%c3, %c0_40, %c0_41] : memref<9x64x64xf32, #tpu.memory_space<vmem>>, vector<1x64x64xf32>
    %39 = vector.shape_cast %38 : vector<1x64x64xf32> to vector<64x64xf32>
    %cst_42 = arith.constant dense<0.000000e+00> : vector<64x128xf32>
    %40 = tpu.matmul %39, %8, %cst_42 {dimension_numbers = #tpu.dot_dimension_numbers<[1], [0], [0], [1], [0, 0, 1, 1], [], []>} : vector<64x64xf32>, vector<64x128xf32>, vector<64x128xf32> -> vector<64x128xf32>
    %c0_43 = arith.constant 0 : index
    %c2_44 = arith.constant 2 : index
    %c0_45 = arith.constant 0 : index
    %c0_46 = arith.constant 0 : index
    %41 = vector.load %arg4[%c0_43, %c2_44, %c0_45, %c0_46] : memref<4x4x128x128xf32, #tpu.memory_space<vmem>>, vector<1x1x128x128xf32>
    %42 = vector.shape_cast %41 : vector<1x1x128x128xf32> to vector<128x128xf32>
    %cst_47 = arith.constant dense<0.000000e+00> : vector<64x128xf32>
    %43 = tpu.matmul %40, %42, %cst_47 {dimension_numbers = #tpu.dot_dimension_numbers<[1], [0], [0], [1], [0, 0, 1, 1], [], []>} : vector<64x128xf32>, vector<128x128xf32>, vector<64x128xf32> -> vector<64x128xf32>
    %44 = arith.addf %26, %43 : vector<64x128xf32>
    %c2_48 = arith.constant 2 : index
    %c0_49 = arith.constant 0 : index
    %c0_50 = arith.constant 0 : index
    %c0_51 = arith.constant 0 : index
    %45 = vector.load %arg4[%c2_48, %c0_49, %c0_50, %c0_51] : memref<4x4x128x128xf32, #tpu.memory_space<vmem>>, vector<1x1x128x128xf32>
    %46 = vector.shape_cast %45 : vector<1x1x128x128xf32> to vector<128x128xf32>
    %cst_52 = arith.constant dense<0.000000e+00> : vector<64x128xf32>
    %47 = tpu.matmul %40, %46, %cst_52 {dimension_numbers = #tpu.dot_dimension_numbers<[1], [0], [0], [1], [0, 0, 1, 1], [], []>} : vector<64x128xf32>, vector<128x128xf32>, vector<64x128xf32> -> vector<64x128xf32>
    %48 = arith.addf %11, %47 : vector<64x128xf32>
    %c4 = arith.constant 4 : index
    %c0_53 = arith.constant 0 : index
    %c0_54 = arith.constant 0 : index
    %49 = vector.load %arg3[%c4, %c0_53, %c0_54] : memref<9x64x64xf32, #tpu.memory_space<vmem>>, vector<1x64x64xf32>
    %50 = vector.shape_cast %49 : vector<1x64x64xf32> to vector<64x64xf32>
    %cst_55 = arith.constant dense<0.000000e+00> : vector<64x128xf32>
    %51 = tpu.matmul %50, %8, %cst_55 {dimension_numbers = #tpu.dot_dimension_numbers<[1], [0], [0], [1], [0, 0, 1, 1], [], []>} : vector<64x64xf32>, vector<64x128xf32>, vector<64x128xf32> -> vector<64x128xf32>
    %c0_56 = arith.constant 0 : index
    %c3_57 = arith.constant 3 : index
    %c0_58 = arith.constant 0 : index
    %c0_59 = arith.constant 0 : index
    %52 = vector.load %arg4[%c0_56, %c3_57, %c0_58, %c0_59] : memref<4x4x128x128xf32, #tpu.memory_space<vmem>>, vector<1x1x128x128xf32>
    %53 = vector.shape_cast %52 : vector<1x1x128x128xf32> to vector<128x128xf32>
    %cst_60 = arith.constant dense<0.000000e+00> : vector<64x128xf32>
    %54 = tpu.matmul %51, %53, %cst_60 {dimension_numbers = #tpu.dot_dimension_numbers<[1], [0], [0], [1], [0, 0, 1, 1], [], []>} : vector<64x128xf32>, vector<128x128xf32>, vector<64x128xf32> -> vector<64x128xf32>
    %55 = arith.addf %44, %54 : vector<64x128xf32>
    %c1_61 = arith.constant 1 : index
    %c2_62 = arith.constant 2 : index
    %c0_63 = arith.constant 0 : index
    %c0_64 = arith.constant 0 : index
    %56 = vector.load %arg4[%c1_61, %c2_62, %c0_63, %c0_64] : memref<4x4x128x128xf32, #tpu.memory_space<vmem>>, vector<1x1x128x128xf32>
    %57 = vector.shape_cast %56 : vector<1x1x128x128xf32> to vector<128x128xf32>
    %cst_65 = arith.constant dense<0.000000e+00> : vector<64x128xf32>
    %58 = tpu.matmul %51, %57, %cst_65 {dimension_numbers = #tpu.dot_dimension_numbers<[1], [0], [0], [1], [0, 0, 1, 1], [], []>} : vector<64x128xf32>, vector<128x128xf32>, vector<64x128xf32> -> vector<64x128xf32>
    %59 = arith.addf %37, %58 : vector<64x128xf32>
    %c2_66 = arith.constant 2 : index
    %c1_67 = arith.constant 1 : index
    %c0_68 = arith.constant 0 : index
    %c0_69 = arith.constant 0 : index
    %60 = vector.load %arg4[%c2_66, %c1_67, %c0_68, %c0_69] : memref<4x4x128x128xf32, #tpu.memory_space<vmem>>, vector<1x1x128x128xf32>
    %61 = vector.shape_cast %60 : vector<1x1x128x128xf32> to vector<128x128xf32>
    %cst_70 = arith.constant dense<0.000000e+00> : vector<64x128xf32>
    %62 = tpu.matmul %51, %61, %cst_70 {dimension_numbers = #tpu.dot_dimension_numbers<[1], [0], [0], [1], [0, 0, 1, 1], [], []>} : vector<64x128xf32>, vector<128x128xf32>, vector<64x128xf32> -> vector<64x128xf32>
    %63 = arith.addf %48, %62 : vector<64x128xf32>
    %c3_71 = arith.constant 3 : index
    %c0_72 = arith.constant 0 : index
    %c0_73 = arith.constant 0 : index
    %c0_74 = arith.constant 0 : index
    %64 = vector.load %arg4[%c3_71, %c0_72, %c0_73, %c0_74] : memref<4x4x128x128xf32, #tpu.memory_space<vmem>>, vector<1x1x128x128xf32>
    %65 = vector.shape_cast %64 : vector<1x1x128x128xf32> to vector<128x128xf32>
    %cst_75 = arith.constant dense<0.000000e+00> : vector<64x128xf32>
    %66 = tpu.matmul %51, %65, %cst_75 {dimension_numbers = #tpu.dot_dimension_numbers<[1], [0], [0], [1], [0, 0, 1, 1], [], []>} : vector<64x128xf32>, vector<128x128xf32>, vector<64x128xf32> -> vector<64x128xf32>
    %67 = arith.addf %12, %66 : vector<64x128xf32>
    %c5 = arith.constant 5 : index
    %c0_76 = arith.constant 0 : index
    %c0_77 = arith.constant 0 : index
    %68 = vector.load %arg3[%c5, %c0_76, %c0_77] : memref<9x64x64xf32, #tpu.memory_space<vmem>>, vector<1x64x64xf32>
    %69 = vector.shape_cast %68 : vector<1x64x64xf32> to vector<64x64xf32>
    %cst_78 = arith.constant dense<0.000000e+00> : vector<64x128xf32>
    %70 = tpu.matmul %69, %8, %cst_78 {dimension_numbers = #tpu.dot_dimension_numbers<[1], [0], [0], [1], [0, 0, 1, 1], [], []>} : vector<64x64xf32>, vector<64x128xf32>, vector<64x128xf32> -> vector<64x128xf32>
    %c1_79 = arith.constant 1 : index
    %c3_80 = arith.constant 3 : index
    %c0_81 = arith.constant 0 : index
    %c0_82 = arith.constant 0 : index
    %71 = vector.load %arg4[%c1_79, %c3_80, %c0_81, %c0_82] : memref<4x4x128x128xf32, #tpu.memory_space<vmem>>, vector<1x1x128x128xf32>
    %72 = vector.shape_cast %71 : vector<1x1x128x128xf32> to vector<128x128xf32>
    %cst_83 = arith.constant dense<0.000000e+00> : vector<64x128xf32>
    %73 = tpu.matmul %70, %72, %cst_83 {dimension_numbers = #tpu.dot_dimension_numbers<[1], [0], [0], [1], [0, 0, 1, 1], [], []>} : vector<64x128xf32>, vector<128x128xf32>, vector<64x128xf32> -> vector<64x128xf32>
    %74 = arith.addf %59, %73 : vector<64x128xf32>
    %c3_84 = arith.constant 3 : index
    %c1_85 = arith.constant 1 : index
    %c0_86 = arith.constant 0 : index
    %c0_87 = arith.constant 0 : index
    %75 = vector.load %arg4[%c3_84, %c1_85, %c0_86, %c0_87] : memref<4x4x128x128xf32, #tpu.memory_space<vmem>>, vector<1x1x128x128xf32>
    %76 = vector.shape_cast %75 : vector<1x1x128x128xf32> to vector<128x128xf32>
    %cst_88 = arith.constant dense<0.000000e+00> : vector<64x128xf32>
    %77 = tpu.matmul %70, %76, %cst_88 {dimension_numbers = #tpu.dot_dimension_numbers<[1], [0], [0], [1], [0, 0, 1, 1], [], []>} : vector<64x128xf32>, vector<128x128xf32>, vector<64x128xf32> -> vector<64x128xf32>
    %78 = arith.addf %67, %77 : vector<64x128xf32>
    %c6 = arith.constant 6 : index
    %c0_89 = arith.constant 0 : index
    %c0_90 = arith.constant 0 : index
    %79 = vector.load %arg3[%c6, %c0_89, %c0_90] : memref<9x64x64xf32, #tpu.memory_space<vmem>>, vector<1x64x64xf32>
    %80 = vector.shape_cast %79 : vector<1x64x64xf32> to vector<64x64xf32>
    %cst_91 = arith.constant dense<0.000000e+00> : vector<64x128xf32>
    %81 = tpu.matmul %80, %8, %cst_91 {dimension_numbers = #tpu.dot_dimension_numbers<[1], [0], [0], [1], [0, 0, 1, 1], [], []>} : vector<64x64xf32>, vector<64x128xf32>, vector<64x128xf32> -> vector<64x128xf32>
    %c2_92 = arith.constant 2 : index
    %c2_93 = arith.constant 2 : index
    %c0_94 = arith.constant 0 : index
    %c0_95 = arith.constant 0 : index
    %82 = vector.load %arg4[%c2_92, %c2_93, %c0_94, %c0_95] : memref<4x4x128x128xf32, #tpu.memory_space<vmem>>, vector<1x1x128x128xf32>
    %83 = vector.shape_cast %82 : vector<1x1x128x128xf32> to vector<128x128xf32>
    %cst_96 = arith.constant dense<0.000000e+00> : vector<64x128xf32>
    %84 = tpu.matmul %81, %83, %cst_96 {dimension_numbers = #tpu.dot_dimension_numbers<[1], [0], [0], [1], [0, 0, 1, 1], [], []>} : vector<64x128xf32>, vector<128x128xf32>, vector<64x128xf32> -> vector<64x128xf32>
    %85 = arith.addf %63, %84 : vector<64x128xf32>
    %c7 = arith.constant 7 : index
    %c0_97 = arith.constant 0 : index
    %c0_98 = arith.constant 0 : index
    %86 = vector.load %arg3[%c7, %c0_97, %c0_98] : memref<9x64x64xf32, #tpu.memory_space<vmem>>, vector<1x64x64xf32>
    %87 = vector.shape_cast %86 : vector<1x64x64xf32> to vector<64x64xf32>
    %cst_99 = arith.constant dense<0.000000e+00> : vector<64x128xf32>
    %88 = tpu.matmul %87, %8, %cst_99 {dimension_numbers = #tpu.dot_dimension_numbers<[1], [0], [0], [1], [0, 0, 1, 1], [], []>} : vector<64x64xf32>, vector<64x128xf32>, vector<64x128xf32> -> vector<64x128xf32>
    %c2_100 = arith.constant 2 : index
    %c3_101 = arith.constant 3 : index
    %c0_102 = arith.constant 0 : index
    %c0_103 = arith.constant 0 : index
    %89 = vector.load %arg4[%c2_100, %c3_101, %c0_102, %c0_103] : memref<4x4x128x128xf32, #tpu.memory_space<vmem>>, vector<1x1x128x128xf32>
    %90 = vector.shape_cast %89 : vector<1x1x128x128xf32> to vector<128x128xf32>
    %cst_104 = arith.constant dense<0.000000e+00> : vector<64x128xf32>
    %91 = tpu.matmul %88, %90, %cst_104 {dimension_numbers = #tpu.dot_dimension_numbers<[1], [0], [0], [1], [0, 0, 1, 1], [], []>} : vector<64x128xf32>, vector<128x128xf32>, vector<64x128xf32> -> vector<64x128xf32>
    %92 = arith.addf %85, %91 : vector<64x128xf32>
    %c3_105 = arith.constant 3 : index
    %c2_106 = arith.constant 2 : index
    %c0_107 = arith.constant 0 : index
    %c0_108 = arith.constant 0 : index
    %93 = vector.load %arg4[%c3_105, %c2_106, %c0_107, %c0_108] : memref<4x4x128x128xf32, #tpu.memory_space<vmem>>, vector<1x1x128x128xf32>
    %94 = vector.shape_cast %93 : vector<1x1x128x128xf32> to vector<128x128xf32>
    %cst_109 = arith.constant dense<0.000000e+00> : vector<64x128xf32>
    %95 = tpu.matmul %88, %94, %cst_109 {dimension_numbers = #tpu.dot_dimension_numbers<[1], [0], [0], [1], [0, 0, 1, 1], [], []>} : vector<64x128xf32>, vector<128x128xf32>, vector<64x128xf32> -> vector<64x128xf32>
    %96 = arith.addf %78, %95 : vector<64x128xf32>
    %c8 = arith.constant 8 : index
    %c0_110 = arith.constant 0 : index
    %c0_111 = arith.constant 0 : index
    %97 = vector.load %arg3[%c8, %c0_110, %c0_111] : memref<9x64x64xf32, #tpu.memory_space<vmem>>, vector<1x64x64xf32>
    %98 = vector.shape_cast %97 : vector<1x64x64xf32> to vector<64x64xf32>
    %cst_112 = arith.constant dense<0.000000e+00> : vector<64x128xf32>
    %99 = tpu.matmul %98, %8, %cst_112 {dimension_numbers = #tpu.dot_dimension_numbers<[1], [0], [0], [1], [0, 0, 1, 1], [], []>} : vector<64x64xf32>, vector<64x128xf32>, vector<64x128xf32> -> vector<64x128xf32>
    %c3_113 = arith.constant 3 : index
    %c3_114 = arith.constant 3 : index
    %c0_115 = arith.constant 0 : index
    %c0_116 = arith.constant 0 : index
    %100 = vector.load %arg4[%c3_113, %c3_114, %c0_115, %c0_116] : memref<4x4x128x128xf32, #tpu.memory_space<vmem>>, vector<1x1x128x128xf32>
    %101 = vector.shape_cast %100 : vector<1x1x128x128xf32> to vector<128x128xf32>
    %cst_117 = arith.constant dense<0.000000e+00> : vector<64x128xf32>
    %102 = tpu.matmul %99, %101, %cst_117 {dimension_numbers = #tpu.dot_dimension_numbers<[1], [0], [0], [1], [0, 0, 1, 1], [], []>} : vector<64x128xf32>, vector<128x128xf32>, vector<64x128xf32> -> vector<64x128xf32>
    %103 = arith.addf %96, %102 : vector<64x128xf32>
    %cst_118 = arith.constant 0.000000e+00 : f32
    %104 = vector.broadcast %cst_118 : f32 to vector<1x128xf32>
    %cst_119 = arith.constant 0.000000e+00 : f32
    %105 = vector.broadcast %cst_119 : f32 to vector<1x128xf32>
    %c0_120 = arith.constant 0 : index
    %c0_121 = arith.constant 0 : index
    %c0_122 = arith.constant 0 : index
    %c0_123 = arith.constant 0 : index
    %106 = vector.load %arg5[%c0_120, %c0_121, %c0_122, %c0_123] : memref<1x4x64x128xf32, #tpu.memory_space<vmem>>, vector<1x1x64x128xf32>
    %107 = vector.shape_cast %106 : vector<1x1x64x128xf32> to vector<64x128xf32>
    %108 = vector.shape_cast %55 : vector<64x128xf32> to vector<1x1x64x128xf32>
    tpu.vector_store %arg5[%c0_120, %c0_121, %c0_122, %c0_123], %108 {strides = array<i32>} : memref<1x4x64x128xf32, #tpu.memory_space<vmem>>, vector<1x1x64x128xf32>,
    %cst_124 = arith.constant dense<0.000000e+00> : vector<128xf32>
    %109 = vector.multi_reduction <add>, %55, %cst_124 [0] : vector<64x128xf32> to vector<128xf32>
    %110 = vector.shape_cast %109 : vector<128xf32> to vector<1x128xf32>
    %111 = arith.addf %104, %110 : vector<1x128xf32>
    %112 = arith.mulf %55, %55 : vector<64x128xf32>
    %cst_125 = arith.constant dense<0.000000e+00> : vector<128xf32>
    %113 = vector.multi_reduction <add>, %112, %cst_125 [0] : vector<64x128xf32> to vector<128xf32>
    %114 = vector.shape_cast %113 : vector<128xf32> to vector<1x128xf32>
    %115 = arith.addf %105, %114 : vector<1x128xf32>
    %c0_126 = arith.constant 0 : index
    %c1_127 = arith.constant 1 : index
    %c0_128 = arith.constant 0 : index
    %c0_129 = arith.constant 0 : index
    %116 = vector.load %arg5[%c0_126, %c1_127, %c0_128, %c0_129] : memref<1x4x64x128xf32, #tpu.memory_space<vmem>>, vector<1x1x64x128xf32>
    %117 = vector.shape_cast %116 : vector<1x1x64x128xf32> to vector<64x128xf32>
    %118 = vector.shape_cast %74 : vector<64x128xf32> to vector<1x1x64x128xf32>
    tpu.vector_store %arg5[%c0_126, %c1_127, %c0_128, %c0_129], %118 {strides = array<i32>} : memref<1x4x64x128xf32, #tpu.memory_space<vmem>>, vector<1x1x64x128xf32>,
    %cst_130 = arith.constant dense<0.000000e+00> : vector<128xf32>
    %119 = vector.multi_reduction <add>, %74, %cst_130 [0] : vector<64x128xf32> to vector<128xf32>
    %120 = vector.shape_cast %119 : vector<128xf32> to vector<1x128xf32>
    %121 = arith.addf %111, %120 : vector<1x128xf32>
    %122 = arith.mulf %74, %74 : vector<64x128xf32>
    %cst_131 = arith.constant dense<0.000000e+00> : vector<128xf32>
    %123 = vector.multi_reduction <add>, %122, %cst_131 [0] : vector<64x128xf32> to vector<128xf32>
    %124 = vector.shape_cast %123 : vector<128xf32> to vector<1x128xf32>
    %125 = arith.addf %115, %124 : vector<1x128xf32>
    %c0_132 = arith.constant 0 : index
    %c2_133 = arith.constant 2 : index
    %c0_134 = arith.constant 0 : index
    %c0_135 = arith.constant 0 : index
    %126 = vector.load %arg5[%c0_132, %c2_133, %c0_134, %c0_135] : memref<1x4x64x128xf32, #tpu.memory_space<vmem>>, vector<1x1x64x128xf32>
    %127 = vector.shape_cast %126 : vector<1x1x64x128xf32> to vector<64x128xf32>
    %128 = vector.shape_cast %92 : vector<64x128xf32> to vector<1x1x64x128xf32>
    tpu.vector_store %arg5[%c0_132, %c2_133, %c0_134, %c0_135], %128 {strides = array<i32>} : memref<1x4x64x128xf32, #tpu.memory_space<vmem>>, vector<1x1x64x128xf32>,
    %cst_136 = arith.constant dense<0.000000e+00> : vector<128xf32>
    %129 = vector.multi_reduction <add>, %92, %cst_136 [0] : vector<64x128xf32> to vector<128xf32>
    %130 = vector.shape_cast %129 : vector<128xf32> to vector<1x128xf32>
    %131 = arith.addf %121, %130 : vector<1x128xf32>
    %132 = arith.mulf %92, %92 : vector<64x128xf32>
    %cst_137 = arith.constant dense<0.000000e+00> : vector<128xf32>
    %133 = vector.multi_reduction <add>, %132, %cst_137 [0] : vector<64x128xf32> to vector<128xf32>
    %134 = vector.shape_cast %133 : vector<128xf32> to vector<1x128xf32>
    %135 = arith.addf %125, %134 : vector<1x128xf32>
    %c0_138 = arith.constant 0 : index
    %c3_139 = arith.constant 3 : index
    %c0_140 = arith.constant 0 : index
    %c0_141 = arith.constant 0 : index
    %136 = vector.load %arg5[%c0_138, %c3_139, %c0_140, %c0_141] : memref<1x4x64x128xf32, #tpu.memory_space<vmem>>, vector<1x1x64x128xf32>
    %137 = vector.shape_cast %136 : vector<1x1x64x128xf32> to vector<64x128xf32>
    %138 = vector.shape_cast %103 : vector<64x128xf32> to vector<1x1x64x128xf32>
    tpu.vector_store %arg5[%c0_138, %c3_139, %c0_140, %c0_141], %138 {strides = array<i32>} : memref<1x4x64x128xf32, #tpu.memory_space<vmem>>, vector<1x1x64x128xf32>,
    %cst_142 = arith.constant dense<0.000000e+00> : vector<128xf32>
    %139 = vector.multi_reduction <add>, %103, %cst_142 [0] : vector<64x128xf32> to vector<128xf32>
    %140 = vector.shape_cast %139 : vector<128xf32> to vector<1x128xf32>
    %141 = arith.addf %131, %140 : vector<1x128xf32>
    %142 = arith.mulf %103, %103 : vector<64x128xf32>
    %cst_143 = arith.constant dense<0.000000e+00> : vector<128xf32>
    %143 = vector.multi_reduction <add>, %142, %cst_143 [0] : vector<64x128xf32> to vector<128xf32>
    %144 = vector.shape_cast %143 : vector<128xf32> to vector<1x128xf32>
    %145 = arith.addf %135, %144 : vector<1x128xf32>
    %c0_144 = arith.constant 0 : index
    %c0_145 = arith.constant 0 : index
    %146 = vector.load %arg6[%c0_144, %c0_145] : memref<1x128xf32, #tpu.memory_space<vmem>>, vector<1x128xf32>
    %147 = arith.addf %146, %141 : vector<1x128xf32>
    %c0_146 = arith.constant 0 : index
    %c0_147 = arith.constant 0 : index
    %148 = vector.load %arg6[%c0_146, %c0_147] : memref<1x128xf32, #tpu.memory_space<vmem>>, vector<1x128xf32>
    tpu.vector_store %arg6[%c0_146, %c0_147], %147 {strides = array<i32>} : memref<1x128xf32, #tpu.memory_space<vmem>>, vector<1x128xf32>,
    %c0_148 = arith.constant 0 : index
    %c0_149 = arith.constant 0 : index
    %149 = vector.load %arg7[%c0_148, %c0_149] : memref<1x128xf32, #tpu.memory_space<vmem>>, vector<1x128xf32>
    %150 = arith.addf %149, %145 : vector<1x128xf32>
    %c0_150 = arith.constant 0 : index
    %c0_151 = arith.constant 0 : index
    %151 = vector.load %arg7[%c0_150, %c0_151] : memref<1x128xf32, #tpu.memory_space<vmem>>, vector<1x128xf32>
    tpu.vector_store %arg7[%c0_150, %c0_151], %150 {strides = array<i32>} : memref<1x128xf32, #tpu.memory_space<vmem>>, vector<1x128xf32>,
    return
  }
  func.func @transform_0(%arg0: i32) -> (i32, i32, i32) {
    %c0_i32 = arith.constant 0 : i32
    %c0_i32_0 = arith.constant 0 : i32
    %c0_i32_1 = arith.constant 0 : i32
    return %arg0, %c0_i32, %c0_i32_0 : i32, i32, i32
  }
  func.func @transform_1(%arg0: i32) -> (i32, i32) {
    %c0_i32 = arith.constant 0 : i32
    %c0_i32_0 = arith.constant 0 : i32
    %c0_i32_1 = arith.constant 0 : i32
    return %c0_i32, %c0_i32_0 : i32, i32
  }
  func.func @transform_2(%arg0: i32) -> (i32, i32, i32) {
    %c0_i32 = arith.constant 0 : i32
    %c0_i32_0 = arith.constant 0 : i32
    %c0_i32_1 = arith.constant 0 : i32
    %c0_i32_2 = arith.constant 0 : i32
    return %c0_i32, %c0_i32_0, %c0_i32_1 : i32, i32, i32
  }
  func.func @transform_3(%arg0: i32) -> (i32, i32, i32, i32) {
    %c0_i32 = arith.constant 0 : i32
    %c0_i32_0 = arith.constant 0 : i32
    %c0_i32_1 = arith.constant 0 : i32
    %c0_i32_2 = arith.constant 0 : i32
    %c0_i32_3 = arith.constant 0 : i32
    return %c0_i32, %c0_i32_0, %c0_i32_1, %c0_i32_2 : i32, i32, i32, i32
  }
  func.func @transform_4(%arg0: i32) -> (i32, i32, i32, i32) {
    %c0_i32 = arith.constant 0 : i32
    %c0_i32_0 = arith.constant 0 : i32
    %c0_i32_1 = arith.constant 0 : i32
    %c0_i32_2 = arith.constant 0 : i32
    return %arg0, %c0_i32, %c0_i32_0, %c0_i32_1 : i32, i32, i32, i32
  }
  func.func @transform_5(%arg0: i32) -> (i32, i32) {
    %c0_i32 = arith.constant 0 : i32
    %c0_i32_0 = arith.constant 0 : i32
    %c0_i32_1 = arith.constant 0 : i32
    return %c0_i32, %c0_i32_0 : i32, i32
  }
  func.func @transform_6(%arg0: i32) -> (i32, i32) {
    %c0_i32 = arith.constant 0 : i32
    %c0_i32_0 = arith.constant 0 : i32
    %c0_i32_1 = arith.constant 0 : i32
    return %c0_i32, %c0_i32_0 : i32, i32
  }
}

module attributes {stable_mosaic.version = 11 : i64} {
  func.func @_bn_apply_kernel(%arg0: i32, %arg1: memref<1x4x64x128xf32, #tpu.memory_space<vmem>>, %arg2: memref<1x128xf32, #tpu.memory_space<vmem>>, %arg3: memref<1x128xf32, #tpu.memory_space<vmem>>, %arg4: memref<1x4x64x128xf32, #tpu.memory_space<vmem>>) attributes {dimension_semantics = [#tpu.dimension_semantics<parallel>], iteration_bounds = array<i64: 2>, scalar_prefetch = 0 : i64, scratch_operands = 0 : i64, tpu.core_type = #tpu.core_type<tc>, window_params = [{transform_indices = @transform_0, window_bounds = array<i64: 1, 4, 64, 128>}, {pipeline_mode = #tpu.pipeline_mode<synchronous>, transform_indices = @transform_1, window_bounds = array<i64: 1, 128>}, {pipeline_mode = #tpu.pipeline_mode<synchronous>, transform_indices = @transform_2, window_bounds = array<i64: 1, 128>}, {transform_indices = @transform_3, window_bounds = array<i64: 1, 4, 64, 128>}]} {
    %c0 = arith.constant 0 : index
    %c0_0 = arith.constant 0 : index
    %c0_1 = arith.constant 0 : index
    %c0_2 = arith.constant 0 : index
    %0 = vector.load %arg1[%c0, %c0_0, %c0_1, %c0_2] : memref<1x4x64x128xf32, #tpu.memory_space<vmem>>, vector<1x4x64x128xf32>
    %c0_3 = arith.constant 0 : index
    %c0_4 = arith.constant 0 : index
    %1 = vector.load %arg2[%c0_3, %c0_4] : memref<1x128xf32, #tpu.memory_space<vmem>>, vector<1x128xf32>
    %2 = vector.shape_cast %1 : vector<1x128xf32> to vector<1x1x1x128xf32>
    %3 = vector.broadcast %2 : vector<1x1x1x128xf32> to vector<1x4x64x128xf32>
    %4 = arith.mulf %0, %3 : vector<1x4x64x128xf32>
    %c0_5 = arith.constant 0 : index
    %c0_6 = arith.constant 0 : index
    %5 = vector.load %arg3[%c0_5, %c0_6] : memref<1x128xf32, #tpu.memory_space<vmem>>, vector<1x128xf32>
    %6 = vector.shape_cast %5 : vector<1x128xf32> to vector<1x1x1x128xf32>
    %7 = vector.broadcast %6 : vector<1x1x1x128xf32> to vector<1x4x64x128xf32>
    %8 = arith.addf %4, %7 : vector<1x4x64x128xf32>
    %c0_7 = arith.constant 0 : index
    %c0_8 = arith.constant 0 : index
    %c0_9 = arith.constant 0 : index
    %c0_10 = arith.constant 0 : index
    %9 = vector.load %arg4[%c0_7, %c0_8, %c0_9, %c0_10] : memref<1x4x64x128xf32, #tpu.memory_space<vmem>>, vector<1x4x64x128xf32>
    tpu.vector_store %arg4[%c0_7, %c0_8, %c0_9, %c0_10], %8 {strides = array<i32>} : memref<1x4x64x128xf32, #tpu.memory_space<vmem>>, vector<1x4x64x128xf32>,
    return
  }
  func.func @transform_0(%arg0: i32) -> (i32, i32, i32, i32) {
    %c0_i32 = arith.constant 0 : i32
    %c0_i32_0 = arith.constant 0 : i32
    %c0_i32_1 = arith.constant 0 : i32
    %c0_i32_2 = arith.constant 0 : i32
    return %arg0, %c0_i32, %c0_i32_0, %c0_i32_1 : i32, i32, i32, i32
  }
  func.func @transform_1(%arg0: i32) -> (i32, i32) {
    %c0_i32 = arith.constant 0 : i32
    %c0_i32_0 = arith.constant 0 : i32
    %c0_i32_1 = arith.constant 0 : i32
    return %c0_i32, %c0_i32_0 : i32, i32
  }
  func.func @transform_2(%arg0: i32) -> (i32, i32) {
    %c0_i32 = arith.constant 0 : i32
    %c0_i32_0 = arith.constant 0 : i32
    %c0_i32_1 = arith.constant 0 : i32
    return %c0_i32, %c0_i32_0 : i32, i32
  }
  func.func @transform_3(%arg0: i32) -> (i32, i32, i32, i32) {
    %c0_i32 = arith.constant 0 : i32
    %c0_i32_0 = arith.constant 0 : i32
    %c0_i32_1 = arith.constant 0 : i32
    %c0_i32_2 = arith.constant 0 : i32
    return %arg0, %c0_i32, %c0_i32_0, %c0_i32_1 : i32, i32, i32, i32
  }
}

</mosaic_0001>

<bundles_post_ra>
// kernel: unet_innermost_block.3
= control target key start
LH: loop header
LB: loop body
LE: loop exit
PB: predicated region body
PF: predicated region fallthrough
CT: control target
= control target key end

     0   :  { %s419_s12 = smov 0   ;;  %s578_s0 = inlined_call_operand.vmem [shape: f32[2,4,64,128], index: 0, kind: input, shape index: {}]   ;;  %s579_s1 = inlined_call_operand.vmem [shape: f32[1,128], index: 1, kind: input, shape index: {}]   ;;  %s580_s2 = inlined_call_operand.vmem [shape: f32[1,128], index: 2, kind: input, shape index: {}]   ;;  %s581_s3 = inlined_call_operand.vmem [shape: f32[2,4,64,128], index: 3, kind: output, shape index: {}]  }
   0x1 LB: > { %s368_s13 = sadd.s32 4294967295, %s397_s12   ;;  %p372_p0 = scmp.ge.s32.totalorder %s397_s12, 1  ;;  %s397_s12 = sphi %s419_s12, %s13_s12  }
   0x2   : > { %p137_p1 = scmp.lt.s32.totalorder %s397_s12, 3 }
   0x4   : > { %p138_p2 = pnand %p372_p0, %p137_p1 }
   0x5   : > { %p161_p3 = scmp.lt.s32.totalorder (!%p138_p2), %s368_s13, 1  ;;  %v430_v0 = vld [vmem:[%s579_s1] ss:$0 sm:$0xff] (!%p138_p2) }
   0x6   : > { %141 = sbr.rel (%p138_p2) target bundleno = 40 (0x28), region = 32  ;;  %v440_v1 = vld [vmem:[%s580_s2] ss:$0 sm:$0xff] (!%p138_p2) }
   0xd   : > { %s583_s13 = smov (!%p161_p3, %s368_s13), 1 }
   0xe   : > { %s381_s14 = sshll.u32 %s583_s13, 8 }
   0xf   : > { %s435_s19 = scalar_lea.vmem %s578_s0, %s381_s14  ;;  %s454_s24 = scalar_lea.vmem %s581_s3, %s381_s14 }
  0x10   : > { %v171_v2 = vld [vmem:[%s435_s19] sm:$0xff]  ;;  %v172_v3 = vld [vmem:[%s435_s19 + $0x8] sm:$0xff]  ;;  %v173_v4 = vld [vmem:[%s435_s19 + $0x10] sm:$0xff] }
  0x11   : > { %v210_v5 = vmul.f32 %v430_v0, %v171_v2  ;;  %v211_v6 = vmul.f32 %v430_v0, %v172_v3  ;;  %v212_v7 = vmul.f32 %v430_v0, %v173_v4  ;;  %v174_v8 = vld [vmem:[%s435_s19 + $0x18] sm:$0xff]  ;;  %v175_v9 = vld [vmem:[%s435_s19 + $0x20] sm:$0xff]  ;;  %v176_v10 = vld [vmem:[%s435_s19 + $0x28] sm:$0xff] }
  0x12   : > { %v213_v11 = vmul.f32 %v430_v0, %v174_v8  ;;  %v214_v12 = vmul.f32 %v430_v0, %v175_v9  ;;  %v215_v13 = vmul.f32 %v430_v0, %v176_v10  ;;  %v177_v14 = vld [vmem:[%s435_s19 + $0x30] sm:$0xff]  ;;  %v178_v15 = vld [vmem:[%s435_s19 + $0x38] sm:$0xff]  ;;  %v179_v16 = vld [vmem:[%s435_s19 + $0x40] sm:$0xff] }
  0x13   : > { %v249_v17 = vadd.f32 %v440_v1, %v210_v5  ;;  %v250_v18 = vadd.f32 %v440_v1, %v211_v6  ;;  %v251_v19 = vadd.f32 %v440_v1, %v212_v7  ;;  %v216_v20 = vmul.f32 %v430_v0, %v177_v14  ;;  %v180_v21 = vld [vmem:[%s435_s19 + $0x48] sm:$0xff]  ;;  %v181_v22 = vld [vmem:[%s435_s19 + $0x50] sm:$0xff]  ;;  %v182_v23 = vld [vmem:[%s435_s19 + $0x58] sm:$0xff] }
  0x14   : > { %v252_v24 = vadd.f32 %v440_v1, %v213_v11  ;;  %v253_v25 = vadd.f32 %v440_v1, %v214_v12  ;;  %v254_v26 = vadd.f32 %v440_v1, %v215_v13  ;;  %v217_v27 = vmul.f32 %v430_v0, %v178_v15  ;;  %v183_v28 = vld [vmem:[%s435_s19 + $0x60] sm:$0xff]  ;;  %v184_v29 = vld [vmem:[%s435_s19 + $0x68] sm:$0xff]  ;;  %v185_v30 = vld [vmem:[%s435_s19 + $0x70] sm:$0xff] }
  0x15   : > { %281 = vst [vmem:[%s454_s24] sm:$0xff] %v249_v17  ;;  %282 = vst [vmem:[%s454_s24 + $0x8] sm:$0xff] %v250_v18  ;;  %v255_v31 = vadd.f32 %v440_v1, %v216_v20  ;;  %v218_v32 = vmul.f32 %v430_v0, %v179_v16  ;;  %v219_v33 = vmul.f32 %v430_v0, %v180_v21  ;;  %v186_v35 = vld [vmem:[%s435_s19 + $0x78] sm:$0xff]  ;;  %v187_v40 = vld [vmem:[%s435_s19 + $0x80] sm:$0xff] }
  0x16   : > { %283 = vst [vmem:[%s454_s24 + $0x10] sm:$0xff] %v251_v19  ;;  %v220_v34 = vmul.f32 %v430_v0, %v181_v22  ;;  %284 = vst [vmem:[%s454_s24 + $0x18] sm:$0xff] %v252_v24  ;;  %v256_v36 = vadd.f32 %v440_v1, %v217_v27  ;;  %v221_v37 = vmul.f32 %v430_v0, %v182_v23  ;;  %v188_v41 = vld [vmem:[%s435_s19 + $0x88] sm:$0xff]  ;;  %v189_v42 = vld [vmem:[%s435_s19 + $0x90] sm:$0xff] }
  0x17   : > { %285 = vst [vmem:[%s454_s24 + $0x20] sm:$0xff] %v253_v25  ;;  %286 = vst [vmem:[%s454_s24 + $0x28] sm:$0xff] %v254_v26  ;;  %v222_v38 = vmul.f32 %v430_v0, %v183_v28  ;;  %v223_v39 = vmul.f32 %v430_v0, %v184_v29  ;;  %v257_v43 = vadd.f32 %v440_v1, %v218_v32  ;;  %v190_v47 = vld [vmem:[%s435_s19 + $0x98] sm:$0xff]  ;;  %v191_v48 = vld [vmem:[%s435_s19 + $0xa0] sm:$0xff] }
  0x18   : > { %287 = vst [vmem:[%s454_s24 + $0x30] sm:$0xff] %v255_v31  ;;  %v258_v44 = vadd.f32 %v440_v1, %v219_v33  ;;  %v259_v45 = vadd.f32 %v440_v1, %v220_v34  ;;  %v224_v46 = vmul.f32 %v430_v0, %v185_v30  ;;  %v192_v49 = vld [vmem:[%s435_s19 + $0xa8] sm:$0xff]  ;;  %288 = vst [vmem:[%s454_s24 + $0x38] sm:$0xff] %v256_v36  ;;  %v193_v54 = vld [vmem:[%s435_s19 + $0xb0] sm:$0xff] }
  0x19   : > { %v260_v50 = vadd.f32 %v440_v1, %v221_v37  ;;  %v261_v51 = vadd.f32 %v440_v1, %v222_v38  ;;  %v262_v52 = vadd.f32 %v440_v1, %v223_v39  ;;  %v225_v53 = vmul.f32 %v430_v0, %v186_v35  ;;  %289 = vst [vmem:[%s454_s24 + $0x40] sm:$0xff] %v257_v43  ;;  %v194_v59 = vld [vmem:[%s435_s19 + $0xb8] sm:$0xff]  ;;  %v195_v2 = vld [vmem:[%s435_s19 + $0xc0] sm:$0xff]  ;;  %v196_v3 = vld [vmem:[%s435_s19 + $0xc8] sm:$0xff] }
  0x1a   : > { %290 = vst [vmem:[%s454_s24 + $0x48] sm:$0xff] %v258_v44  ;;  %291 = vst [vmem:[%s454_s24 + $0x50] sm:$0xff] %v259_v45  ;;  %v263_v55 = vadd.f32 %v440_v1, %v224_v46  ;;  %v226_v56 = vmul.f32 %v430_v0, %v187_v40  ;;  %v227_v57 = vmul.f32 %v430_v0, %v188_v41  ;;  %v197_v4 = vld [vmem:[%s435_s19 + $0xd0] sm:$0xff]  ;;  %v198_v9 = vld [vmem:[%s435_s19 + $0xd8] sm:$0xff] }
  0x1b   : > { %v228_v58 = vmul.f32 %v430_v0, %v189_v42  ;;  %292 = vst [vmem:[%s454_s24 + $0x58] sm:$0xff] %v260_v50  ;;  %293 = vst [vmem:[%s454_s24 + $0x60] sm:$0xff] %v261_v51  ;;  %v264_v60 = vadd.f32 %v440_v1, %v225_v53  ;;  %v229_v61 = vmul.f32 %v430_v0, %v190_v47  ;;  %v199_v10 = vld [vmem:[%s435_s19 + $0xe0] sm:$0xff]  ;;  %v200_v11 = vld [vmem:[%s435_s19 + $0xe8] sm:$0xff] }
  0x1c   : > { %294 = vst [vmem:[%s454_s24 + $0x68] sm:$0xff] %v262_v52  ;;  %v230_v62 = vmul.f32 %v430_v0, %v191_v48  ;;  %v231_v63 = vmul.f32 %v430_v0, %v192_v49  ;;  %295 = vst [vmem:[%s454_s24 + $0x70] sm:$0xff] %v263_v55  ;;  %v265_v5 = vadd.f32 %v440_v1, %v226_v56  ;;  %v201_v16 = vld [vmem:[%s435_s19 + $0xf0] sm:$0xff]  ;;  %v202_v21 = vld [vmem:[%s435_s19 + $0xf8] sm:$0xff] }
  0x1d   : > { %v266_v6 = vadd.f32 %v440_v1, %v227_v57  ;;  %v267_v7 = vadd.f32 %v440_v1, %v228_v58  ;;  %v232_v8 = vmul.f32 %v430_v0, %v193_v54  ;;  %296 = vst [vmem:[%s454_s24 + $0x78] sm:$0xff] %v264_v60  ;;  %v268_v12 = vadd.f32 %v440_v1, %v229_v61 }
  0x1e   : > { %v269_v13 = vadd.f32 %v440_v1, %v230_v62  ;;  %v270_v14 = vadd.f32 %v440_v1, %v231_v63  ;;  %v233_v15 = vmul.f32 %v430_v0, %v194_v59  ;;  %297 = vst [vmem:[%s454_s24 + $0x80] sm:$0xff] %v265_v5  ;;  %v234_v18 = vmul.f32 %v430_v0, %v195_v2 }
  0x1f   : > { %298 = vst [vmem:[%s454_s24 + $0x88] sm:$0xff] %v266_v6  ;;  %299 = vst [vmem:[%s454_s24 + $0x90] sm:$0xff] %v267_v7  ;;  %v271_v17 = vadd.f32 %v440_v1, %v232_v8  ;;  %v235_v19 = vmul.f32 %v430_v0, %v196_v3  ;;  %v236_v20 = vmul.f32 %v430_v0, %v197_v4 }
  0x20   : > { %300 = vst [vmem:[%s454_s24 + $0x98] sm:$0xff] %v268_v12  ;;  %301 = vst [vmem:[%s454_s24 + $0xa0] sm:$0xff] %v269_v13  ;;  %v272_v22 = vadd.f32 %v440_v1, %v233_v15  ;;  %v237_v23 = vmul.f32 %v430_v0, %v198_v9  ;;  %v238_v24 = vmul.f32 %v430_v0, %v199_v10 }
  0x21   : > { %302 = vst [vmem:[%s454_s24 + $0xa8] sm:$0xff] %v270_v14  ;;  %v239_v25 = vmul.f32 %v430_v0, %v200_v11  ;;  %303 = vst [vmem:[%s454_s24 + $0xb0] sm:$0xff] %v271_v17  ;;  %v273_v26 = vadd.f32 %v440_v1, %v234_v18  ;;  %v274_v27 = vadd.f32 %v440_v1, %v235_v19 }
  0x22   : > { %v275_v28 = vadd.f32 %v440_v1, %v236_v20  ;;  %v240_v29 = vmul.f32 %v430_v0, %v201_v16  ;;  %304 = vst [vmem:[%s454_s24 + $0xb8] sm:$0xff] %v272_v22  ;;  %v276_v30 = vadd.f32 %v440_v1, %v237_v23  ;;  %v277_v31 = vadd.f32 %v440_v1, %v238_v24 }
  0x23   : > { %v278_v32 = vadd.f32 %v440_v1, %v239_v25  ;;  %v241_v33 = vmul.f32 %v430_v0, %v202_v21  ;;  %305 = vst [vmem:[%s454_s24 + $0xc0] sm:$0xff] %v273_v26  ;;  %306 = vst [vmem:[%s454_s24 + $0xc8] sm:$0xff] %v274_v27 }
  0x24   : > { %307 = vst [vmem:[%s454_s24 + $0xd0] sm:$0xff] %v275_v28  ;;  %v279_v34 = vadd.f32 %v440_v1, %v240_v29  ;;  %308 = vst [vmem:[%s454_s24 + $0xd8] sm:$0xff] %v276_v30 }
  0x25   : > { %309 = vst [vmem:[%s454_s24 + $0xe0] sm:$0xff] %v277_v31  ;;  %310 = vst [vmem:[%s454_s24 + $0xe8] sm:$0xff] %v278_v32  ;;  %v280_v35 = vadd.f32 %v440_v1, %v241_v33 }
  0x26   : > { %311 = vst [vmem:[%s454_s24 + $0xf0] sm:$0xff] %v279_v34 }
  0x27   : > { %312 = vst [vmem:[%s454_s24 + $0xf8] sm:$0xff] %v280_v35 }
  0x28 PF: > { %s13_s12 = sadd.s32 1, %s397_s12  }
  0x29   : > { %p10_p4 = scmp.ge.s32.totalorder %s13_s12, 4  }
  0x2b   :  { %12 = sbr.rel (!%p10_p4) target bundleno = 1 (0x1), region = 62 }

// kernel: unet_innermost_block.2
= control target key start
LH: loop header
LB: loop body
LE: loop exit
PB: predicated region body
PF: predicated region fallthrough
CT: control target
= control target key end

     0   :  { %s6702_s21 = smov 0   ;;  %s8116_s0 = inlined_call_operand.vmem [shape: f32[2,64,128], index: 0, kind: input, shape index: {}]   ;;  %s8117_s1 = inlined_call_operand.vmem [shape: f32[128,128], index: 1, kind: input, shape index: {}]   ;;  %s8118_s2 = inlined_call_operand.vmem [shape: f32[9,64,64], index: 2, kind: input, shape index: {}]   ;;  %s8119_s3 = inlined_call_operand.vmem [shape: f32[4,4,128,128], index: 3, kind: input, shape index: {}]   ;;  %s8120_s4 = inlined_call_operand.vmem [shape: f32[2,4,64,128], index: 4, kind: output, shape index: {0}]   ;;  %s8121_s5 = inlined_call_operand.vmem [shape: f32[1,128], index: 5, kind: output, shape index: {1}]   ;;  %s8122_s6 = inlined_call_operand.vmem [shape: f32[1,128], index: 6, kind: output, shape index: {2}]  }
   0x1 LB: > { %s3899_s22 = sadd.s32 4294967295, %s6664_s21   ;;  %p3903_p0 = scmp.ge.s32.totalorder %s6664_s21, 1  ;;  %s6664_s21 = sphi %s6702_s21, %s17_s21  }
   0x2   : > { %p207_p1 = scmp.lt.s32.totalorder %s6664_s21, 3 }
   0x4   : > { %p208_p2 = pnand %p3903_p0, %p207_p1 }
   0x5   : > { %p237_p3 = scmp.lt.s32.totalorder (!%p208_p2), %s3899_s22, 1  ;;  %p3908_p4 = scmp.ne.s32.totalorder (!%p208_p2), %s3899_s22, 0 }
   0x6   : > { %211 = sbr.rel (%p208_p2) target bundleno = 1800 (0x708), region = 36 }
   0xd   : > { %s238_s23 = scalar_select %p237_p3, %s3899_s22, 1 }
   0xe   : > { %250 = sbr.rel (%p3908_p4) target bundleno = 21 (0x15), region = 40  ;;  %v6666_v0 = vmov (!%p3908_p4), 0.0  }
   0xf   : > { %s4311_s24 = sshll.u32 %s238_s23, 6  ;;  %s4312_s25 = sshll.u32 %s238_s23, 8  ;;  %251 = vst [vmem:[%s8121_s5] sm:$0x1] (!%p3908_p4), %v6666_v0  ;;  %252 = vst [vmem:[%s8122_s6] sm:$0x1] (!%p3908_p4), %v6666_v0 }
  0x10   : > { %s6713_s28 = scalar_lea.vmem %s8116_s0, %s4311_s24  ;;  %s6718_s7 = scalar_lea.vmem %s8120_s4, %s4312_s25 }
  0x15 PF: > { %v261_v1 = vld [vmem:[%s8117_s1] sm:$0xff]  ;;  %v262_v2 = vld [vmem:[%s8117_s1 + $0x8] sm:$0xff]  ;;  %v263_v3 = vld [vmem:[%s8117_s1 + $0x10] sm:$0xff]  ;;  %vm398_vm0 = vcmask 523264  }
  0x16   : > { %v5865_v4 = vpack.c.bf16 %v262_v2, %v261_v1  ;;  %v264_v5 = vld [vmem:[%s8117_s1 + $0x18] sm:$0xff]  ;;  %v265_v7 = vld [vmem:[%s8117_s1 + $0x20] sm:$0xff]  ;;  %v266_v8 = vld [vmem:[%s8117_s1 + $0x28] sm:$0xff] }
  0x17   : > { %v5869_v6 = vpack.c.bf16 %v264_v5, %v263_v3  ;;  %v5873_v9 = vpack.c.bf16 %v266_v8, %v265_v7  ;;  %v253_v10 = vld [vmem:[%s6713_s28] sm:$0xff]  ;;  %v267_v11 = vld [vmem:[%s8117_s1 + $0x30] sm:$0xff]  ;;  %v268_v12 = vld [vmem:[%s8117_s1 + $0x38] sm:$0xff] }
  0x18   : > { %5866 = vmatprep.subr.bf16.mxu1 %v5865_v4  ;;  %4897 = vmatprep.mubr.f32.mxu1 %v253_v10  ;;  %v5877_v13 = vpack.c.bf16 %v268_v12, %v267_v11  ;;  %v269_v14 = vld [vmem:[%s8117_s1 + $0x40] sm:$0xff]  ;;  %v270_v15 = vld [vmem:[%s8117_s1 + $0x48] sm:$0xff]  ;;  %v271_v17 = vld [vmem:[%s8117_s1 + $0x50] sm:$0xff] }
  0x19   : > { %5868 = vmatpush3.bf16.msra.mxu1 %v5865_v4  ;;  %v5881_v16 = vpack.c.bf16 %v270_v15, %v269_v14  ;;  %v272_v18 = vld [vmem:[%s8117_s1 + $0x58] sm:$0xff]  ;;  %v273_v20 = vld [vmem:[%s8117_s1 + $0x60] sm:$0xff]  ;;  %v274_v21 = vld [vmem:[%s8117_s1 + $0x68] sm:$0xff] }
  0x1a   : > { %5870 = vmatprep.subr.bf16.mxu1 %v5869_v6  ;;  %v5885_v19 = vpack.c.bf16 %v272_v18, %v271_v17  ;;  %v5889_v22 = vpack.c.bf16 %v274_v21, %v273_v20  ;;  %v275_v23 = vld [vmem:[%s8117_s1 + $0x70] sm:$0xff]  ;;  %v276_v24 = vld [vmem:[%s8117_s1 + $0x78] sm:$0xff]  ;;  %v254_v26 = vld [vmem:[%s6713_s28 + $0x8] sm:$0xff] }
  0x1b   : > { %v5893_v25 = vpack.c.bf16 %v276_v24, %v275_v23  ;;  %v255_v27 = vld [vmem:[%s6713_s28 + $0x10] sm:$0xff]  ;;  %v256_v28 = vld [vmem:[%s6713_s28 + $0x18] sm:$0xff]  ;;  %v257_v29 = vld [vmem:[%s6713_s28 + $0x20] sm:$0xff] }
  0x1c   : > { %v258_v30 = vld [vmem:[%s6713_s28 + $0x28] sm:$0xff]  ;;  %v259_v31 = vld [vmem:[%s6713_s28 + $0x30] sm:$0xff]  ;;  %v260_v32 = vld [vmem:[%s6713_s28 + $0x38] sm:$0xff] }
  0x1d   : > { %5872 = vmatpush3.bf16.msra.mxu1 %v5869_v6  ;;  %v390_v33 = vld [vmem:[%s8118_s2] sm:$0xff]  ;;  %v3934_v35 = vld [vmem:[%s8119_s3 + $0x88] sm:$0xff]  ;;  %v3935_v36 = vld [vmem:[%s8119_s3 + $0x90] sm:$0xff] }
  0x1e   : > { %5874 = vmatprep.subr.bf16.mxu1 %v5873_v9  ;;  %v3933_v34 = vld [vmem:[%s8119_s3 + $0x80] sm:$0xff]  ;;  %v3936_v38 = vld [vmem:[%s8119_s3 + $0x98] sm:$0xff]  ;;  %v3938_v41 = vld [vmem:[%s8119_s3 + $0xa8] sm:$0xff] }
  0x1f   : > { %v5929_v37 = vpack.c.bf16 %v3934_v35, %v3933_v34  ;;  %v5933_v39 = vpack.c.bf16 %v3936_v38, %v3935_v36  ;;  %v3937_v40 = vld [vmem:[%s8119_s3 + $0xa0] sm:$0xff]  ;;  %v3939_v43 = vld [vmem:[%s8119_s3 + $0xb0] sm:$0xff]  ;;  %v3940_v44 = vld [vmem:[%s8119_s3 + $0xb8] sm:$0xff] }
  0x20   : > { %v5937_v42 = vpack.c.bf16 %v3938_v41, %v3937_v40  ;;  %v5941_v45 = vpack.c.bf16 %v3940_v44, %v3939_v43  ;;  %v391_v2 = vld [vmem:[%s8118_s2 + $0x8] sm:$0xff]  ;;  %v392_v3 = vld [vmem:[%s8118_s2 + $0x10] sm:$0xff]  ;;  %v393_v4 = vld [vmem:[%s8118_s2 + $0x18] sm:$0xff] }
  0x21   : > { %5876 = vmatpush3.bf16.msra.mxu1 %v5873_v9  ;;  %5930 = vmatprep.subr.bf16.mxu0 %v5929_v37  ;;  %v394_v5 = vld [vmem:[%s8118_s2 + $0x20] sm:$0xff]  ;;  %v395_v6 = vld [vmem:[%s8118_s2 + $0x28] sm:$0xff]  ;;  %v396_v7 = vld [vmem:[%s8118_s2 + $0x30] sm:$0xff] }
  0x22   : > { %5878 = vmatprep.subr.bf16.mxu1 %v5877_v13  ;;  %5932 = vmatpush3.bf16.msra.mxu0 %v5929_v37  ;;  %v397_v8 = vld [vmem:[%s8118_s2 + $0x38] sm:$0xff]  ;;  %v3917_v9 = vld [vmem:[%s8118_s2 + $0x40] sm:$0xff]  ;;  %v3918_v10 = vld [vmem:[%s8118_s2 + $0x48] sm:$0xff] }
  0x23   : > { %5934 = vmatprep.subr.bf16.mxu0 %v5933_v39  ;;  %v3919_v11 = vld [vmem:[%s8118_s2 + $0x50] sm:$0xff]  ;;  %v3920_v12 = vld [vmem:[%s8118_s2 + $0x58] sm:$0xff]  ;;  %v3922_v14 = vld [vmem:[%s8118_s2 + $0x68] sm:$0xff] }
  0x24   : > { %v3923_v15 = vld [vmem:[%s8118_s2 + $0x70] sm:$0xff]  ;;  %v3965_v17 = vld [vmem:[%s8118_s2 + $0x80] sm:$0xff]  ;;  %v3966_v18 = vld [vmem:[%s8118_s2 + $0x88] sm:$0xff] }
  0x25   : > { %5880 = vmatpush3.bf16.msra.mxu1 %v5877_v13  ;;  %v3921_v13 = vld [vmem:[%s8118_s2 + $0x60] sm:$0xff]  ;;  %v3968_v20 = vld [vmem:[%s8118_s2 + $0x98] sm:$0xff]  ;;  %v3971_v23 = vld [vmem:[%s8118_s2 + $0xb0] sm:$0xff] }
  0x26   : > { %5882 = vmatprep.subr.bf16.mxu1 %v5881_v16  ;;  %5936 = vmatpush3.bf16.msra.mxu0 %v5933_v39  ;;  %v3969_v21 = vld [vmem:[%s8118_s2 + $0xa0] sm:$0xff]  ;;  %v3972_v24 = vld [vmem:[%s8118_s2 + $0xb8] sm:$0xff]  ;;  %v3946_v38 = vld [vmem:[%s8119_s3 + $0xe8] sm:$0xff] }
  0x27   : > { %5938 = vmatprep.subr.bf16.mxu0 %v5937_v42  ;;  %v3984_v35 = vld [vmem:[%s8119_s3 + $0x298] sm:$0xff]  ;;  %v3945_v37 = vld [vmem:[%s8119_s3 + $0xe0] sm:$0xff]  ;;  %v3986_v41 = vld [vmem:[%s8119_s3 + $0x2a8] sm:$0xff] }
  0x28   : > { %v3985_v39 = vld [vmem:[%s8119_s3 + $0x2a0] sm:$0xff]  ;;  %v5953_v40 = vpack.c.bf16 %v3946_v38, %v3945_v37  ;;  %v3947_v43 = vld [vmem:[%s8119_s3 + $0xf0] sm:$0xff]  ;;  %v3948_v44 = vld [vmem:[%s8119_s3 + $0xf8] sm:$0xff] }
  0x29   : > { %5884 = vmatpush3.bf16.msra.mxu1 %v5881_v16  ;;  %v3924_v16 = vld [vmem:[%s8118_s2 + $0x78] sm:$0xff]  ;;  %v3951_v37 = vld [vmem:[%s8119_s3 + $0x210] sm:$0xff] }
  0x2a   : > { %5886 = vmatprep.subr.bf16.mxu1 %v5885_v19  ;;  %5940 = vmatpush3.bf16.msra.mxu0 %v5937_v42  ;;  %v6017_v42 = vpack.c.bf16 %v3986_v41, %v3985_v39  ;;  %v3952_v38 = vld [vmem:[%s8119_s3 + $0x218] sm:$0xff] }
  0x2b   : > { %5942 = vmatprep.subr.bf16.mxu0 %v5941_v45 }
  0x2d   : > { %5888 = vmatpush3.bf16.msra.mxu1 %v5885_v19  ;;  %v3967_v19 = vld [vmem:[%s8118_s2 + $0x90] sm:$0xff] }
  0x2e   : > { %5890 = vmatprep.subr.bf16.mxu1 %v5889_v22  ;;  %5944 = vmatpush3.bf16.msra.mxu0 %v5941_v45  ;;  %v3987_v45 = vld [vmem:[%s8119_s3 + $0x2b0] sm:$0xff] }
  0x31   : > { %5892 = vmatpush3.bf16.msra.mxu1 %v5889_v22  ;;  %v3970_v22 = vld [vmem:[%s8118_s2 + $0xa8] sm:$0xff] }
  0x32   : > { %5894 = vmatprep.subr.bf16.mxu1 %v5893_v25 }
  0x35   : > { %5896 = vmatpush3.bf16.msra.mxu1 %v5893_v25  ;;  %v3941_v25 = vld [vmem:[%s8119_s3 + $0xc0] sm:$0xff] }
  0x38   : > { %4898 = vmatmul.mubr.f32.vlgmr.msra.gmra.mrb[0].mxu1 %v254_v26  ;;  %v3942_v26 = vld [vmem:[%s8119_s3 + $0xc8] sm:$0xff] }
  0x39   : > { %4900 = vmatprep.mubr.f32.mxu1 %v255_v27  ;;  %v3981_v27 = vld [vmem:[%s8119_s3 + $0x280] sm:$0xff] }
  0x3c   : > { %4901 = vmatmul.mubr.f32.gmra.mrb[2].mxu1 %v256_v28  ;;  %v5945_v28 = vpack.c.bf16 %v3942_v26, %v3941_v25  ;;  %v534_v25 = vld [vmem:[%s8119_s3 + $0x30] sm:$0xff]  ;;  %v535_v26 = vld [vmem:[%s8119_s3 + $0x38] sm:$0xff] }
  0x3d   : > { %4903 = vmatprep.mubr.f32.mxu1 %v257_v29  ;;  %v3982_v29 = vld [vmem:[%s8119_s3 + $0x288] sm:$0xff] }
  0x3e   : > { %5946 = vmatprep.subr.bf16.mxu0 %v5945_v28 }
  0x3f   : > { %5948 = vmatpush3.bf16.msra.mxu0 %v5945_v28 }
  0x40   : > { %4904 = vmatmul.mubr.f32.gmra.mrb[4].mxu1 %v258_v30  ;;  %v6009_v30 = vpack.c.bf16 %v3982_v29, %v3981_v27  ;;  %v5973_v29 = vpack.c.bf16 %v535_v26, %v534_v25  ;;  %v4017_v25 = vld [vmem:[%s8119_s3 + $0x120] sm:$0xff]  ;;  %v4018_v26 = vld [vmem:[%s8119_s3 + $0x128] sm:$0xff] }
  0x41   : > { %4906 = vmatprep.mubr.f32.mxu1 %v259_v31  ;;  %v3943_v31 = vld [vmem:[%s8119_s3 + $0xd0] sm:$0xff] }
  0x44   : > { %4907 = vmatmul.mubr.f32.gmra.mrb[6].mxu1 %v260_v32  ;;  %v3944_v32 = vld [vmem:[%s8119_s3 + $0xd8] sm:$0xff] }
  0x45   : > { %4925 = vmatprep.mubr.msk.f32.mxu1 %vm398_vm0, %v390_v33  ;;  %v3983_v33 = vld [vmem:[%s8119_s3 + $0x290] sm:$0xff]  ;;  %v5949_v34 = vpack.c.bf16 %v3944_v32, %v3943_v31  ;;  %v537_v31 = vld [vmem:[%s8119_s3 + $0x48] sm:$0xff] }
  0x46   : > { %v6013_v36 = vpack.c.bf16 %v3984_v35, %v3983_v33  ;;  %v538_v35 = vld [vmem:[%s8119_s3 + $0x50] sm:$0xff] }
  0x47   : > { %5950 = vmatprep.subr.bf16.mxu0 %v5949_v34 }
  0x48   : > { %5952 = vmatpush3.bf16.msra.mxu0 %v5949_v34 }
  0x49   : > { %5954 = vmatprep.subr.bf16.mxu0 %v5953_v40 }
  0x4c   : > { %5956 = vmatpush3.bf16.msra.mxu0 %v5953_v40 }
 0x10b   : > { %v4899_v46 = vpop.f32.mrb[0].mxu1 }
 0x10c   : > { %v383_v47 = vmax.f32 %v4899_v46, 0.0  ;;  %v343_v48 = vpop.f32.mrb[1].mxu1  ;;  %v5957_v46 = vpack.c.bf16 %v3948_v44, %v3947_v43  ;;  %v540_v43 = vld [vmem:[%s8119_s3 + $0x60] sm:$0xff]  ;;  %v541_v44 = vld [vmem:[%s8119_s3 + $0x68] sm:$0xff] }
 0x10d   : > { %v382_v49 = vmax.f32 %v343_v48, 0.0 }
 0x10e   : > { %5958 = vmatprep.subr.bf16.mxu0 %v5957_v46 }
 0x10f   : > { %v6810_v50 = vpack.c.bf16 %v383_v47, %v382_v49  ;;  %v4902_v51 = vpop.f32.mrb[2].mxu1  ;;  %v3988_v47 = vld [vmem:[%s8119_s3 + $0x2b8] sm:$0xff]  ;;  %5960 = vmatpush3.bf16.msra.mxu0 %v5957_v46  ;;  %v528_v49 = vld [vmem:[%s8119_s3] sm:$0xff]  ;;  %v3954_v46 = vld [vmem:[%s8119_s3 + $0x228] sm:$0xff] }
 0x110   : > { %v385_v52 = vmax.f32 %v4902_v51, 0.0  ;;  %v353_v53 = vpop.f32.mrb[3].mxu1  ;;  %v6021_v48 = vpack.c.bf16 %v3988_v47, %v3987_v45  ;;  %v529_v51 = vld [vmem:[%s8119_s3 + $0x8] sm:$0xff]  ;;  %v3953_v45 = vld [vmem:[%s8119_s3 + $0x220] sm:$0xff] }
 0x111   : > { %v384_v54 = vmax.f32 %v353_v53, 0.0  ;;  %5898 = vmatprep.subr.bf16.mxu1 %v6810_v50  ;;  %v5961_v53 = vpack.c.bf16 %v529_v51, %v528_v49  ;;  %v5985_v49 = vpack.c.bf16 %v541_v44, %v540_v43  ;;  %v6049_v51 = vpack.c.bf16 %v3954_v46, %v3953_v45  ;;  %v4023_v43 = vld [vmem:[%s8119_s3 + $0x150] sm:$0xff]  ;;  %v4046_v44 = vld [vmem:[%s8118_s2 + $0x108] sm:$0xff] }
 0x112   : > { %5900 = vmatpush3.bf16.msra.mxu1 %v6810_v50  ;;  %v4047_v45 = vld [vmem:[%s8118_s2 + $0x110] sm:$0xff] }
 0x113   : > { %v6814_v55 = vpack.c.bf16 %v385_v52, %v384_v54  ;;  %v4905_v56 = vpop.f32.mrb[4].mxu1  ;;  %v3989_v52 = vld [vmem:[%s8119_s3 + $0x2c0] sm:$0xff]  ;;  %v3990_v54 = vld [vmem:[%s8119_s3 + $0x2c8] sm:$0xff]  ;;  %5962 = vmatprep.subr.bf16.mxu0 %v5961_v53 }
 0x114   : > { %v387_v57 = vmax.f32 %v4905_v56, 0.0  ;;  %v363_v58 = vpop.f32.mrb[5].mxu1  ;;  %v6025_v56 = vpack.c.bf16 %v3990_v54, %v3989_v52  ;;  %v542_v52 = vld [vmem:[%s8119_s3 + $0x70] sm:$0xff] }
 0x115   : > { %v386_v59 = vmax.f32 %v363_v58, 0.0  ;;  %5902 = vmatprep.subr.bf16.mxu1 %v6814_v55  ;;  %v3992_v58 = vld [vmem:[%s8119_s3 + $0x2d8] sm:$0xff]  ;;  %v3955_v54 = vld [vmem:[%s8119_s3 + $0x230] sm:$0xff] }
 0x116   : > { %5904 = vmatpush3.bf16.msra.mxu1 %v6814_v55 }
 0x117   : > { %v6818_v60 = vpack.c.bf16 %v387_v57, %v386_v59  ;;  %v4908_v61 = vpop.f32.mrb[6].mxu1  ;;  %v3991_v57 = vld [vmem:[%s8119_s3 + $0x2d0] sm:$0xff] }
 0x118   : > { %v389_v62 = vmax.f32 %v4908_v61, 0.0  ;;  %v373_v63 = vpop.f32.mrb[7].mxu1  ;;  %v6029_v59 = vpack.c.bf16 %v3992_v58, %v3991_v57  ;;  %v3993_v61 = vld [vmem:[%s8119_s3 + $0x2e0] sm:$0xff] }
 0x119   : > { %v388_v0 = vmax.f32 %v373_v63, 0.0  ;;  %5906 = vmatprep.subr.bf16.mxu1 %v6818_v60 }
 0x11a   : > { %5908 = vmatpush3.bf16.msra.mxu1 %v6818_v60 }
 0x11b   : > { %v6822_v1 = vpack.c.bf16 %v389_v62, %v388_v0  ;;  %v3994_v62 = vld [vmem:[%s8119_s3 + $0x2e8] sm:$0xff]  ;;  %v3995_v0 = vld [vmem:[%s8119_s3 + $0x2f0] sm:$0xff] }
 0x11c   : > { %v6033_v63 = vpack.c.bf16 %v3994_v62, %v3993_v61  ;;  %v3957_v62 = vld [vmem:[%s8119_s3 + $0x240] sm:$0xff] }
 0x11d   : > { %5910 = vmatprep.subr.bf16.mxu1 %v6822_v1 }
 0x11e   : > { %5912 = vmatpush3.bf16.msra.mxu1 %v6822_v1 }
 0x11f   : > { %5914 = vmatprep.subr.bf16.mxu1 %v6810_v50 }
 0x121   : > { %4926 = vmatmul.mubr.msk.f32.vlgmr.msra.gmra.mrb[8].mxu1 %vm398_vm0, %v391_v2  ;;  %v3996_v2 = vld [vmem:[%s8119_s3 + $0x2f8] sm:$0xff] }
 0x122   : > { %5916 = vmatpush3.bf16.msra.mxu1 %v6810_v50  ;;  %4928 = vmatprep.mubr.msk.f32.mxu1 %vm398_vm0, %v392_v3  ;;  %v6037_v3 = vpack.c.bf16 %v3996_v2, %v3995_v0 }
 0x123   : > { %5918 = vmatprep.subr.bf16.mxu1 %v6814_v55 }
 0x125   : > { %4929 = vmatmul.mubr.msk.f32.gmra.mrb[10].mxu1 %vm398_vm0, %v393_v4  ;;  %v3949_v4 = vld [vmem:[%s8119_s3 + $0x200] sm:$0xff] }
 0x126   : > { %5920 = vmatpush3.bf16.msra.mxu1 %v6814_v55  ;;  %4931 = vmatprep.mubr.msk.f32.mxu1 %vm398_vm0, %v394_v5  ;;  %v3950_v5 = vld [vmem:[%s8119_s3 + $0x208] sm:$0xff] }
 0x127   : > { %5922 = vmatprep.subr.bf16.mxu1 %v6818_v60 }
 0x129   : > { %4932 = vmatmul.mubr.msk.f32.gmra.mrb[12].mxu1 %vm398_vm0, %v395_v6  ;;  %v6041_v6 = vpack.c.bf16 %v3950_v5, %v3949_v4  ;;  %v3959_v4 = vld [vmem:[%s8119_s3 + $0x250] sm:$0xff]  ;;  %v3960_v5 = vld [vmem:[%s8119_s3 + $0x258] sm:$0xff] }
 0x12a   : > { %5924 = vmatpush3.bf16.msra.mxu1 %v6818_v60  ;;  %4934 = vmatprep.mubr.msk.f32.mxu1 %vm398_vm0, %v396_v7 }
 0x12b   : > { %5926 = vmatprep.subr.bf16.mxu1 %v6822_v1 }
 0x12d   : > { %4935 = vmatmul.mubr.msk.f32.gmra.mrb[14].mxu1 %vm398_vm0, %v397_v8 }
 0x12e   : > { %5928 = vmatpush3.bf16.msra.mxu1 %v6822_v1  ;;  %4953 = vmatprep.mubr.msk.f32.mxu1 %vm398_vm0, %v3917_v9 }
 0x12f   : > { %5994 = vmatprep.subr.bf16.mxu1 %v6810_v50 }
 0x131   : > { %4954 = vmatmul.mubr.msk.f32.vlgmr.msra.gmra.mrb[16].mxu1 %vm398_vm0, %v3918_v10 }
 0x132   : > { %5996 = vmatpush3.bf16.msra.mxu1 %v6810_v50  ;;  %4956 = vmatprep.mubr.msk.f32.mxu1 %vm398_vm0, %v3919_v11 }
 0x133   : > { %5998 = vmatprep.subr.bf16.mxu1 %v6814_v55 }
 0x135   : > { %4957 = vmatmul.mubr.msk.f32.gmra.mrb[18].mxu1 %vm398_vm0, %v3920_v12 }
 0x136   : > { %6000 = vmatpush3.bf16.msra.mxu1 %v6814_v55  ;;  %4959 = vmatprep.mubr.msk.f32.mxu1 %vm398_vm0, %v3921_v13 }
 0x137   : > { %6002 = vmatprep.subr.bf16.mxu1 %v6818_v60 }
 0x139   : > { %4960 = vmatmul.mubr.msk.f32.gmra.mrb[20].mxu1 %vm398_vm0, %v3922_v14 }
 0x13a   : > { %6004 = vmatpush3.bf16.msra.mxu1 %v6818_v60  ;;  %4962 = vmatprep.mubr.msk.f32.mxu1 %vm398_vm0, %v3923_v15  ;;  %v530_v15 = vld [vmem:[%s8119_s3 + $0x10] sm:$0xff] }
 0x13b   : > { %6006 = vmatprep.subr.bf16.mxu1 %v6822_v1 }
 0x13d   : > { %4963 = vmatmul.mubr.msk.f32.gmra.mrb[22].mxu1 %vm398_vm0, %v3924_v16  ;;  %v531_v16 = vld [vmem:[%s8119_s3 + $0x18] sm:$0xff] }
 0x13e   : > { %6008 = vmatpush3.bf16.msra.mxu1 %v6822_v1  ;;  %5069 = vmatprep.mubr.msk.f32.mxu1 %vm398_vm0, %v3965_v17 }
 0x13f   : > { %6010 = vmatprep.subr.bf16.mxu1 %v6009_v30 }
 0x141   : > { %5070 = vmatmul.mubr.msk.f32.vlgmr.msra.gmra.mrb[24].mxu1 %vm398_vm0, %v3966_v18 }
 0x142   : > { %5072 = vmatprep.mubr.msk.f32.mxu1 %vm398_vm0, %v3967_v19  ;;  %6012 = vmatpush3.bf16.msra.mxu1 %v6009_v30  ;;  %v5965_v19 = vpack.c.bf16 %v531_v16, %v530_v15  ;;  %v536_v30 = vld [vmem:[%s8119_s3 + $0x40] sm:$0xff]  ;;  %v3962_v15 = vld [vmem:[%s8119_s3 + $0x268] sm:$0xff] }
 0x143   : > { %6014 = vmatprep.subr.bf16.mxu1 %v6013_v36  ;;  %v5977_v34 = vpack.c.bf16 %v537_v31, %v536_v30  ;;  %v4019_v30 = vld [vmem:[%s8119_s3 + $0x130] sm:$0xff]  ;;  %v4020_v31 = vld [vmem:[%s8119_s3 + $0x138] sm:$0xff] }
 0x145   : > { %5073 = vmatmul.mubr.msk.f32.gmra.mrb[26].mxu1 %vm398_vm0, %v3968_v20  ;;  %v532_v20 = vld [vmem:[%s8119_s3 + $0x20] sm:$0xff] }
 0x146   : > { %5075 = vmatprep.mubr.msk.f32.mxu1 %vm398_vm0, %v3969_v21  ;;  %6016 = vmatpush3.bf16.msra.mxu1 %v6013_v36  ;;  %v533_v21 = vld [vmem:[%s8119_s3 + $0x28] sm:$0xff]  ;;  %v539_v36 = vld [vmem:[%s8119_s3 + $0x58] sm:$0xff] }
 0x147   : > { %6018 = vmatprep.subr.bf16.mxu1 %v6017_v42  ;;  %v5981_v41 = vpack.c.bf16 %v539_v36, %v538_v35  ;;  %v4077_v35 = vld [vmem:[%s8119_s3 + $0x300] sm:$0xff]  ;;  %v4078_v36 = vld [vmem:[%s8119_s3 + $0x308] sm:$0xff] }
 0x149   : > { %5076 = vmatmul.mubr.msk.f32.gmra.mrb[28].mxu1 %vm398_vm0, %v3970_v22 }
 0x14a   : > { %5078 = vmatprep.mubr.msk.f32.mxu1 %vm398_vm0, %v3971_v23  ;;  %6020 = vmatpush3.bf16.msra.mxu1 %v6017_v42  ;;  %v6045_v42 = vpack.c.bf16 %v3952_v38, %v3951_v37  ;;  %v4021_v37 = vld [vmem:[%s8119_s3 + $0x140] sm:$0xff] }
 0x14b   : > { %6022 = vmatprep.subr.bf16.mxu1 %v6021_v48  ;;  %v4045_v38 = vld [vmem:[%s8118_s2 + $0x100] sm:$0xff] }
 0x14d   : > { %5079 = vmatmul.mubr.msk.f32.gmra.mrb[30].mxu1 %vm398_vm0, %v3972_v24  ;;  %v5969_v24 = vpack.c.bf16 %v533_v21, %v532_v20  ;;  %v4014_v20 = vld [vmem:[%s8119_s3 + $0x108] sm:$0xff] }
 0x14e   : > { %6024 = vmatpush3.bf16.msra.mxu1 %v6021_v48  ;;  %v3998_v21 = vld [vmem:[%s8118_s2 + $0xc8] sm:$0xff] }
 0x14f   : > { %6026 = vmatprep.subr.bf16.mxu1 %v6025_v56 }
 0x152   : > { %6028 = vmatpush3.bf16.msra.mxu1 %v6025_v56  ;;  %v3956_v56 = vld [vmem:[%s8119_s3 + $0x238] sm:$0xff] }
 0x153   : > { %6030 = vmatprep.subr.bf16.mxu1 %v6029_v59  ;;  %v6053_v61 = vpack.c.bf16 %v3956_v56, %v3955_v54  ;;  %v4049_v54 = vld [vmem:[%s8118_s2 + $0x120] sm:$0xff] }
 0x156   : > { %6032 = vmatpush3.bf16.msra.mxu1 %v6029_v59 }
 0x157   : > { %6034 = vmatprep.subr.bf16.mxu1 %v6033_v63 }
 0x15a   : > { %6036 = vmatpush3.bf16.msra.mxu1 %v6033_v63  ;;  %v3958_v63 = vld [vmem:[%s8119_s3 + $0x248] sm:$0xff] }
 0x15b   : > { %6038 = vmatprep.subr.bf16.mxu1 %v6037_v3 }
 0x15e   : > { %6040 = vmatpush3.bf16.msra.mxu1 %v6037_v3  ;;  %v6057_v3 = vpack.c.bf16 %v3958_v63, %v3957_v62  ;;  %v4028_v62 = vld [vmem:[%s8119_s3 + $0x178] sm:$0xff]  ;;  %v4050_v63 = vld [vmem:[%s8118_s2 + $0x128] sm:$0xff] }
 0x15f   : > { %6042 = vmatprep.subr.bf16.mxu1 %v6041_v6 }
 0x1f4   : > { %v7018_v7 = vpop.f32.mrb[8].mxu1 }
 0x1f5   : > { %v489_v8 = vpop.f32.mrb[9].mxu1 }
 0x1f8   : > { %v7020_v9 = vpop.f32.mrb[10].mxu1 }
 0x1f9   : > { %v7022_v10 = vpop.f32.mrb[11].mxu1 }
 0x1fc   : > { %v7024_v11 = vpop.f32.mrb[12].mxu1 }
 0x1fd   : > { %v7026_v12 = vpop.f32.mrb[13].mxu1 }
 0x200   : > { %v7028_v13 = vpop.f32.mrb[14].mxu1 }
 0x201   : > { %v7030_v14 = vpop.f32.mrb[15].mxu1 }
 0x204   : > { %v7038_v17 = vpop.f32.mrb[16].mxu1 }
 0x205   : > { %v7040_v18 = vpop.f32.mrb[17].mxu1 }
 0x206   : > { %4997 = vmatprep.mubr.f32.mxu0 %v7040_v18 }
 0x207   : > { %4998 = vmatmul.mubr.f32.vlgmr.msra.gmra.mrb[0].mxu0 %v7038_v17 }
 0x208   : > { %5964 = vmatpush3.bf16.msra.mxu0 %v5961_v53  ;;  %v7050_v22 = vpop.f32.mrb[18].mxu1  ;;  %v543_v53 = vld [vmem:[%s8119_s3 + $0x78] sm:$0xff] }
 0x209   : > { %v7052_v23 = vpop.f32.mrb[19].mxu1  ;;  %5966 = vmatprep.subr.bf16.mxu0 %v5965_v19  ;;  %v5989_v59 = vpack.c.bf16 %v543_v53, %v542_v52  ;;  %v4026_v52 = vld [vmem:[%s8119_s3 + $0x168] sm:$0xff]  ;;  %v4048_v53 = vld [vmem:[%s8118_s2 + $0x118] sm:$0xff] }
 0x20a   : > { %5000 = vmatprep.mubr.f32.mxu0 %v7052_v23 }
 0x20b   : > { %5001 = vmatmul.mubr.f32.gmra.mrb[2].mxu0 %v7050_v22 }
 0x20c   : > { %5968 = vmatpush3.bf16.msra.mxu0 %v5965_v19  ;;  %v7062_v27 = vpop.f32.mrb[20].mxu1  ;;  %v3964_v19 = vld [vmem:[%s8119_s3 + $0x278] sm:$0xff] }
 0x20d   : > { %v7064_v28 = vpop.f32.mrb[21].mxu1  ;;  %5970 = vmatprep.subr.bf16.mxu0 %v5969_v24 }
 0x20e   : > { %5003 = vmatprep.mubr.f32.mxu0 %v7064_v28 }
 0x20f   : > { %5004 = vmatmul.mubr.f32.gmra.mrb[4].mxu0 %v7062_v27 }
 0x210   : > { %5972 = vmatpush3.bf16.msra.mxu0 %v5969_v24  ;;  %v7074_v32 = vpop.f32.mrb[22].mxu1 }
 0x211   : > { %v7076_v33 = vpop.f32.mrb[23].mxu1  ;;  %5974 = vmatprep.subr.bf16.mxu0 %v5973_v29 }
 0x212   : > { %5006 = vmatprep.mubr.f32.mxu0 %v7076_v33 }
 0x213   : > { %5007 = vmatmul.mubr.f32.gmra.mrb[6].mxu0 %v7074_v32 }
 0x214   : > { %5976 = vmatpush3.bf16.msra.mxu0 %v5973_v29  ;;  %5041 = vmatprep.mubr.f32.mxu0 %v489_v8  ;;  %v5071_v39 = vpop.f32.mrb[24].mxu1  ;;  %v3961_v8 = vld [vmem:[%s8119_s3 + $0x260] sm:$0xff]  ;;  %v6097_v29 = vpack.c.bf16 %v4018_v26, %v4017_v25  ;;  %v4063_v26 = vld [vmem:[%s8119_s3 + $0x190] sm:$0xff] }
 0x215   : > { %v1025_v40 = vpop.f32.mrb[25].mxu1  ;;  %5978 = vmatprep.subr.bf16.mxu0 %v5977_v34  ;;  %v6065_v16 = vpack.c.bf16 %v3962_v15, %v3961_v8  ;;  %v4085_v8 = vld [vmem:[%s8119_s3 + $0x340] sm:$0xff] }
 0x216   : > { %5113 = vmatprep.mubr.f32.mxu1 %v1025_v40 }
 0x217   : > { %5114 = vmatmul.mubr.f32.vlgmr.msra.gmra.mrb[32].mxu1 %v5071_v39  ;;  %v6169_v39 = vpack.c.bf16 %v4078_v36, %v4077_v35  ;;  %v4067_v36 = vld [vmem:[%s8119_s3 + $0x1b0] sm:$0xff] }
 0x218   : > { %5980 = vmatpush3.bf16.msra.mxu0 %v5977_v34  ;;  %6044 = vmatpush3.bf16.msra.mxu1 %v6041_v6  ;;  %v5074_v47 = vpop.f32.mrb[26].mxu1  ;;  %v6061_v6 = vpack.c.bf16 %v3960_v5, %v3959_v4  ;;  %v6101_v34 = vpack.c.bf16 %v4020_v31, %v4019_v30  ;;  %v4052_v4 = vld [vmem:[%s8118_s2 + $0x138] sm:$0xff]  ;;  %v4061_v5 = vld [vmem:[%s8119_s3 + $0x180] sm:$0xff] }
 0x219   : > { %v1035_v48 = vpop.f32.mrb[27].mxu1  ;;  %5982 = vmatprep.subr.bf16.mxu0 %v5981_v41  ;;  %6046 = vmatprep.subr.bf16.mxu1 %v6045_v42  ;;  %v4065_v31 = vld [vmem:[%s8119_s3 + $0x1a0] sm:$0xff] }
 0x21a   : > { %5116 = vmatprep.mubr.f32.mxu1 %v1035_v48  ;;  %v4081_v48 = vld [vmem:[%s8119_s3 + $0x320] sm:$0xff] }
 0x21b   : > { %5117 = vmatmul.mubr.f32.gmra.mrb[34].mxu1 %v5074_v47 }
 0x21c   : > { %5984 = vmatpush3.bf16.msra.mxu0 %v5981_v41  ;;  %6048 = vmatpush3.bf16.msra.mxu1 %v6045_v42  ;;  %v5077_v57 = vpop.f32.mrb[28].mxu1  ;;  %v4079_v41 = vld [vmem:[%s8119_s3 + $0x310] sm:$0xff]  ;;  %v4080_v42 = vld [vmem:[%s8119_s3 + $0x318] sm:$0xff] }
 0x21d   : > { %v1045_v58 = vpop.f32.mrb[29].mxu1  ;;  %5986 = vmatprep.subr.bf16.mxu0 %v5985_v49  ;;  %6050 = vmatprep.subr.bf16.mxu1 %v6049_v51  ;;  %v6173_v46 = vpack.c.bf16 %v4080_v42, %v4079_v41 }
 0x21e   : > { %5119 = vmatprep.mubr.f32.mxu1 %v1045_v58  ;;  %v4083_v58 = vld [vmem:[%s8119_s3 + $0x330] sm:$0xff] }
 0x21f   : > { %5120 = vmatmul.mubr.f32.gmra.mrb[36].mxu1 %v5077_v57 }
 0x220   : > { %5988 = vmatpush3.bf16.msra.mxu0 %v5985_v49  ;;  %6052 = vmatpush3.bf16.msra.mxu1 %v6049_v51  ;;  %v5080_v0 = vpop.f32.mrb[30].mxu1  ;;  %v4082_v49 = vld [vmem:[%s8119_s3 + $0x328] sm:$0xff]  ;;  %v4025_v51 = vld [vmem:[%s8119_s3 + $0x160] sm:$0xff] }
 0x221   : > { %v1055_v2 = vpop.f32.mrb[31].mxu1  ;;  %5990 = vmatprep.subr.bf16.mxu0 %v5989_v59  ;;  %6054 = vmatprep.subr.bf16.mxu1 %v6053_v61  ;;  %v6177_v56 = vpack.c.bf16 %v4082_v49, %v4081_v48  ;;  %v6113_v57 = vpack.c.bf16 %v4026_v52, %v4025_v51  ;;  %v4073_v52 = vld [vmem:[%s8119_s3 + $0x1e0] sm:$0xff] }
 0x222   : > { %5122 = vmatprep.mubr.f32.mxu1 %v1055_v2 }
 0x223   : > { %5123 = vmatmul.mubr.f32.gmra.mrb[38].mxu1 %v5080_v0  ;;  %v4051_v0 = vld [vmem:[%s8118_s2 + $0x130] sm:$0xff] }
 0x224   : > { %5992 = vmatpush3.bf16.msra.mxu0 %v5989_v59  ;;  %6056 = vmatpush3.bf16.msra.mxu1 %v6053_v61  ;;  %v4084_v59 = vld [vmem:[%s8119_s3 + $0x338] sm:$0xff]  ;;  %v4027_v61 = vld [vmem:[%s8119_s3 + $0x170] sm:$0xff] }
 0x225   : > { %5157 = vmatprep.mubr.f32.mxu1 %v7040_v18  ;;  %6074 = vmatprep.subr.bf16.mxu0 %v6810_v50  ;;  %v3963_v18 = vld [vmem:[%s8119_s3 + $0x270] sm:$0xff]  ;;  %v6181_v2 = vpack.c.bf16 %v4084_v59, %v4083_v58 }
 0x226   : > { %6058 = vmatprep.subr.bf16.mxu1 %v6057_v3 }
 0x227   : > { %5042 = vmatmul.mubr.f32.vlgmr.msra.gmra.mrb[0].mxu0 %v7018_v7  ;;  %v6069_v7 = vpack.c.bf16 %v3964_v19, %v3963_v18  ;;  %v4087_v19 = vld [vmem:[%s8119_s3 + $0x350] sm:$0xff] }
 0x228   : > { %5044 = vmatprep.mubr.f32.mxu0 %v7022_v10  ;;  %6060 = vmatpush3.bf16.msra.mxu1 %v6057_v3  ;;  %v4013_v10 = vld [vmem:[%s8119_s3 + $0x100] sm:$0xff]  ;;  %v6117_v3 = vpack.c.bf16 %v4028_v62, %v4027_v61  ;;  %v4075_v62 = vld [vmem:[%s8119_s3 + $0x1f0] sm:$0xff] }
 0x229   : > { %6076 = vmatpush3.bf16.msra.mxu0 %v6810_v50  ;;  %6062 = vmatprep.subr.bf16.mxu1 %v6061_v6 }
 0x22a   : > { %6078 = vmatprep.subr.bf16.mxu0 %v6814_v55 }
 0x22b   : > { %5045 = vmatmul.mubr.f32.gmra.mrb[2].mxu0 %v7020_v9  ;;  %v3997_v9 = vld [vmem:[%s8118_s2 + $0xc0] sm:$0xff] }
 0x22c   : > { %5047 = vmatprep.mubr.f32.mxu0 %v7026_v12  ;;  %6064 = vmatpush3.bf16.msra.mxu1 %v6061_v6  ;;  %v4015_v12 = vld [vmem:[%s8119_s3 + $0x110] sm:$0xff]  ;;  %v4062_v6 = vld [vmem:[%s8119_s3 + $0x188] sm:$0xff] }
 0x22d   : > { %6080 = vmatpush3.bf16.msra.mxu0 %v6814_v55  ;;  %6066 = vmatprep.subr.bf16.mxu1 %v6065_v16  ;;  %v6137_v15 = vpack.c.bf16 %v4062_v6, %v4061_v5 }
 0x22e   : > { %6082 = vmatprep.subr.bf16.mxu0 %v6818_v60 }
 0x22f   : > { %5048 = vmatmul.mubr.f32.gmra.mrb[4].mxu0 %v7024_v11  ;;  %v6089_v11 = vpack.c.bf16 %v4014_v20, %v4013_v10  ;;  %v4089_v20 = vld [vmem:[%s8119_s3 + $0x360] sm:$0xff] }
 0x230   : > { %5050 = vmatprep.mubr.f32.mxu0 %v7030_v14  ;;  %6068 = vmatpush3.bf16.msra.mxu1 %v6065_v16  ;;  %v4016_v14 = vld [vmem:[%s8119_s3 + $0x118] sm:$0xff]  ;;  %v4086_v16 = vld [vmem:[%s8119_s3 + $0x348] sm:$0xff] }
 0x231   : > { %6084 = vmatpush3.bf16.msra.mxu0 %v6818_v60  ;;  %6070 = vmatprep.subr.bf16.mxu1 %v6069_v7  ;;  %v6093_v24 = vpack.c.bf16 %v4016_v14, %v4015_v12  ;;  %v6185_v18 = vpack.c.bf16 %v4086_v16, %v4085_v8  ;;  %v4091_v12 = vld [vmem:[%s8119_s3 + $0x370] sm:$0xff]  ;;  %v4092_v14 = vld [vmem:[%s8119_s3 + $0x378] sm:$0xff]  ;;  %v4101_v8 = vld [vmem:[%s8119_s3 + $0x4c0] sm:$0xff] }
 0x232   : > { %6086 = vmatprep.subr.bf16.mxu0 %v6822_v1 }
 0x233   : > { %5051 = vmatmul.mubr.f32.gmra.mrb[6].mxu0 %v7028_v13  ;;  %v3999_v13 = vld [vmem:[%s8118_s2 + $0xd0] sm:$0xff] }
 0x234   : > { %6072 = vmatpush3.bf16.msra.mxu1 %v6069_v7  ;;  %5185 = vmatprep.mubr.msk.f32.mxu0 %vm398_vm0, %v3997_v9  ;;  %v4088_v7 = vld [vmem:[%s8119_s3 + $0x358] sm:$0xff]  ;;  %v4090_v9 = vld [vmem:[%s8119_s3 + $0x368] sm:$0xff] }
 0x235   : > { %6088 = vmatpush3.bf16.msra.mxu0 %v6822_v1  ;;  %6122 = vmatprep.subr.bf16.mxu1 %v6810_v50  ;;  %v6189_v10 = vpack.c.bf16 %v4088_v7, %v4087_v19  ;;  %v4103_v7 = vld [vmem:[%s8119_s3 + $0x4d0] sm:$0xff] }
 0x236   : > { %6090 = vmatprep.subr.bf16.mxu0 %v6089_v11 }
 0x237   : > { %5158 = vmatmul.mubr.f32.vlgmr.msra.gmra.mrb[32].mxu1 %v7038_v17  ;;  %v4000_v17 = vld [vmem:[%s8118_s2 + $0xd8] sm:$0xff] }
 0x238   : > { %5186 = vmatmul.mubr.msk.f32.vlgmr.msra.gmra.mrb[8].mxu0 %vm398_vm0, %v3998_v21  ;;  %5160 = vmatprep.mubr.f32.mxu1 %v7052_v23  ;;  %v4001_v23 = vld [vmem:[%s8118_s2 + $0xe0] sm:$0xff]  ;;  %v6197_v21 = vpack.c.bf16 %v4092_v14, %v4091_v12  ;;  %v4107_v14 = vld [vmem:[%s8119_s3 + $0x4f0] sm:$0xff] }
 0x239   : > { %6124 = vmatpush3.bf16.msra.mxu1 %v6810_v50  ;;  %5188 = vmatprep.mubr.msk.f32.mxu0 %vm398_vm0, %v3999_v13  ;;  %v4093_v13 = vld [vmem:[%s8119_s3 + $0x480] sm:$0xff] }
 0x23a   : > { %6126 = vmatprep.subr.bf16.mxu1 %v6814_v55  ;;  %6092 = vmatpush3.bf16.msra.mxu0 %v6089_v11  ;;  %v6193_v11 = vpack.c.bf16 %v4090_v9, %v4089_v20  ;;  %v4105_v9 = vld [vmem:[%s8119_s3 + $0x4e0] sm:$0xff] }
 0x23b   : > { %5161 = vmatmul.mubr.f32.gmra.mrb[34].mxu1 %v7050_v22  ;;  %6094 = vmatprep.subr.bf16.mxu0 %v6093_v24  ;;  %v4002_v22 = vld [vmem:[%s8118_s2 + $0xe8] sm:$0xff] }
 0x23c   : > { %5163 = vmatprep.mubr.f32.mxu1 %v7064_v28  ;;  %5189 = vmatmul.mubr.msk.f32.gmra.mrb[10].mxu0 %vm398_vm0, %v4000_v17  ;;  %v4003_v28 = vld [vmem:[%s8118_s2 + $0xf0] sm:$0xff]  ;;  %v4064_v17 = vld [vmem:[%s8119_s3 + $0x198] sm:$0xff] }
 0x23d   : > { %6128 = vmatpush3.bf16.msra.mxu1 %v6814_v55  ;;  %5191 = vmatprep.mubr.msk.f32.mxu0 %vm398_vm0, %v4001_v23  ;;  %v6141_v30 = vpack.c.bf16 %v4064_v17, %v4063_v26  ;;  %v4157_v26 = vld [vmem:[%s8119_s3 + $0x680] sm:$0xff]  ;;  %v4158_v17 = vld [vmem:[%s8119_s3 + $0x688] sm:$0xff] }
 0x23e   : > { %6130 = vmatprep.subr.bf16.mxu1 %v6818_v60  ;;  %6096 = vmatpush3.bf16.msra.mxu0 %v6093_v24  ;;  %v4094_v24 = vld [vmem:[%s8119_s3 + $0x488] sm:$0xff] }
 0x23f   : > { %5164 = vmatmul.mubr.f32.gmra.mrb[36].mxu1 %v7062_v27  ;;  %6098 = vmatprep.subr.bf16.mxu0 %v6097_v29  ;;  %v4022_v27 = vld [vmem:[%s8119_s3 + $0x148] sm:$0xff]  ;;  %v6201_v25 = vpack.c.bf16 %v4094_v24, %v4093_v13  ;;  %v4029_v24 = vld [vmem:[%s8119_s3 + $0x400] sm:$0xff] }
 0x240   : > { %5166 = vmatprep.mubr.f32.mxu1 %v7076_v33  ;;  %5192 = vmatmul.mubr.msk.f32.gmra.mrb[12].mxu0 %vm398_vm0, %v4002_v22  ;;  %v4004_v33 = vld [vmem:[%s8118_s2 + $0xf8] sm:$0xff]  ;;  %v6105_v40 = vpack.c.bf16 %v4022_v27, %v4021_v37  ;;  %v4066_v22 = vld [vmem:[%s8119_s3 + $0x1a8] sm:$0xff] }
 0x241   : > { %6132 = vmatpush3.bf16.msra.mxu1 %v6818_v60  ;;  %5194 = vmatprep.mubr.msk.f32.mxu0 %vm398_vm0, %v4003_v28  ;;  %v4068_v37 = vld [vmem:[%s8119_s3 + $0x1b8] sm:$0xff] }
 0x242   : > { %6134 = vmatprep.subr.bf16.mxu1 %v6822_v1  ;;  %6100 = vmatpush3.bf16.msra.mxu0 %v6097_v29 }
 0x243   : > { %5167 = vmatmul.mubr.f32.gmra.mrb[38].mxu1 %v7074_v32  ;;  %6102 = vmatprep.subr.bf16.mxu0 %v6101_v34  ;;  %v4024_v32 = vld [vmem:[%s8119_s3 + $0x158] sm:$0xff] }
 0x244   : > { %5257 = vmatprep.mubr.msk.f32.mxu1 %vm398_vm0, %v4045_v38  ;;  %5195 = vmatmul.mubr.msk.f32.gmra.mrb[14].mxu0 %vm398_vm0, %v4004_v33  ;;  %v6109_v47 = vpack.c.bf16 %v4024_v32, %v4023_v43  ;;  %v6149_v38 = vpack.c.bf16 %v4068_v37, %v4067_v36  ;;  %v4071_v43 = vld [vmem:[%s8119_s3 + $0x1d0] sm:$0xff]  ;;  %v6313_v36 = vpack.c.bf16 %v4158_v17, %v4157_v26  ;;  %v4126_v37 = vld [vmem:[%s8118_s2 + $0x148] sm:$0xff]  ;;  %v4144_v17 = vld [vmem:[%s8119_s3 + $0x398] sm:$0xff] }
 0x245   : > { %6136 = vmatpush3.bf16.msra.mxu1 %v6822_v1  ;;  %v4143_v26 = vld [vmem:[%s8119_s3 + $0x390] sm:$0xff] }
 0x246   : > { %6104 = vmatpush3.bf16.msra.mxu0 %v6101_v34  ;;  %6170 = vmatprep.subr.bf16.mxu1 %v6169_v39  ;;  %v6145_v34 = vpack.c.bf16 %v4066_v22, %v4065_v31  ;;  %v4125_v31 = vld [vmem:[%s8118_s2 + $0x140] sm:$0xff]  ;;  %v4031_v22 = vld [vmem:[%s8119_s3 + $0x410] sm:$0xff] }
 0x247   : > { %6106 = vmatprep.subr.bf16.mxu0 %v6105_v40 }
 0x248   : > { %5258 = vmatmul.mubr.msk.f32.vlgmr.msra.gmra.mrb[40].mxu1 %vm398_vm0, %v4046_v44  ;;  %v4072_v44 = vld [vmem:[%s8119_s3 + $0x1d8] sm:$0xff] }
 0x249   : > { %5260 = vmatprep.mubr.msk.f32.mxu1 %vm398_vm0, %v4047_v45  ;;  %6172 = vmatpush3.bf16.msra.mxu1 %v6169_v39  ;;  %v4069_v39 = vld [vmem:[%s8119_s3 + $0x1c0] sm:$0xff]  ;;  %v4095_v45 = vld [vmem:[%s8119_s3 + $0x490] sm:$0xff]  ;;  %v6157_v49 = vpack.c.bf16 %v4072_v44, %v4071_v43  ;;  %v4160_v44 = vld [vmem:[%s8119_s3 + $0x698] sm:$0xff] }
 0x24a   : > { %6108 = vmatpush3.bf16.msra.mxu0 %v6105_v40  ;;  %6174 = vmatprep.subr.bf16.mxu1 %v6173_v46  ;;  %v4070_v40 = vld [vmem:[%s8119_s3 + $0x1c8] sm:$0xff]  ;;  %v4159_v43 = vld [vmem:[%s8119_s3 + $0x690] sm:$0xff] }
 0x24b   : > { %6110 = vmatprep.subr.bf16.mxu0 %v6109_v47  ;;  %v6153_v42 = vpack.c.bf16 %v4070_v40, %v4069_v39  ;;  %v4127_v39 = vld [vmem:[%s8118_s2 + $0x150] sm:$0xff]  ;;  %v4033_v40 = vld [vmem:[%s8119_s3 + $0x420] sm:$0xff] }
 0x24c   : > { %5261 = vmatmul.mubr.msk.f32.gmra.mrb[42].mxu1 %vm398_vm0, %v4048_v53  ;;  %v4074_v53 = vld [vmem:[%s8119_s3 + $0x1e8] sm:$0xff] }
 0x24d   : > { %5263 = vmatprep.mubr.msk.f32.mxu1 %vm398_vm0, %v4049_v54  ;;  %6176 = vmatpush3.bf16.msra.mxu1 %v6173_v46  ;;  %v4096_v46 = vld [vmem:[%s8119_s3 + $0x498] sm:$0xff]  ;;  %v4097_v54 = vld [vmem:[%s8119_s3 + $0x4a0] sm:$0xff]  ;;  %v6161_v59 = vpack.c.bf16 %v4074_v53, %v4073_v52  ;;  %v6317_v53 = vpack.c.bf16 %v4160_v44, %v4159_v43 }
 0x24e   : > { %6112 = vmatpush3.bf16.msra.mxu0 %v6109_v47  ;;  %6178 = vmatprep.subr.bf16.mxu1 %v6177_v56  ;;  %v6205_v51 = vpack.c.bf16 %v4096_v46, %v4095_v45  ;;  %v4128_v45 = vld [vmem:[%s8118_s2 + $0x158] sm:$0xff] }
 0x24f   : > { %6114 = vmatprep.subr.bf16.mxu0 %v6113_v57  ;;  %v4036_v52 = vld [vmem:[%s8119_s3 + $0x438] sm:$0xff] }
 0x250   : > { %5264 = vmatmul.mubr.msk.f32.gmra.mrb[44].mxu1 %vm398_vm0, %v4050_v63  ;;  %v4076_v63 = vld [vmem:[%s8119_s3 + $0x1f8] sm:$0xff] }
 0x251   : > { %5266 = vmatprep.mubr.msk.f32.mxu1 %vm398_vm0, %v4051_v0  ;;  %6180 = vmatpush3.bf16.msra.mxu1 %v6177_v56  ;;  %v4098_v56 = vld [vmem:[%s8119_s3 + $0x4a8] sm:$0xff]  ;;  %v4099_v0 = vld [vmem:[%s8119_s3 + $0x4b0] sm:$0xff]  ;;  %v6165_v5 = vpack.c.bf16 %v4076_v63, %v4075_v62  ;;  %v4161_v63 = vld [vmem:[%s8119_s3 + $0x6a0] sm:$0xff] }
 0x252   : > { %6116 = vmatpush3.bf16.msra.mxu0 %v6113_v57  ;;  %6182 = vmatprep.subr.bf16.mxu1 %v6181_v2  ;;  %v6209_v61 = vpack.c.bf16 %v4098_v56, %v4097_v54  ;;  %v4130_v54 = vld [vmem:[%s8118_s2 + $0x168] sm:$0xff]  ;;  %v4131_v56 = vld [vmem:[%s8118_s2 + $0x170] sm:$0xff]  ;;  %v4152_v43 = vld [vmem:[%s8119_s3 + $0x3d8] sm:$0xff] }
 0x253   : > { %6118 = vmatprep.subr.bf16.mxu0 %v6117_v3  ;;  %v4038_v62 = vld [vmem:[%s8119_s3 + $0x448] sm:$0xff] }
 0x254   : > { %5267 = vmatmul.mubr.msk.f32.gmra.mrb[46].mxu1 %vm398_vm0, %v4052_v4 }
 0x255   : > { %6184 = vmatpush3.bf16.msra.mxu1 %v6181_v2  ;;  %v4100_v2 = vld [vmem:[%s8119_s3 + $0x4b8] sm:$0xff] }
 0x256   : > { %6120 = vmatpush3.bf16.msra.mxu0 %v6117_v3  ;;  %6186 = vmatprep.subr.bf16.mxu1 %v6185_v18  ;;  %v6213_v6 = vpack.c.bf16 %v4100_v2, %v4099_v0  ;;  %v4162_v0 = vld [vmem:[%s8119_s3 + $0x6a8] sm:$0xff]  ;;  %v4132_v2 = vld [vmem:[%s8118_s2 + $0x178] sm:$0xff] }
 0x257   : > { %6138 = vmatprep.subr.bf16.mxu0 %v6137_v15 }
 0x259   : > { %6188 = vmatpush3.bf16.msra.mxu1 %v6185_v18 }
 0x25a   : > { %6190 = vmatprep.subr.bf16.mxu1 %v6189_v10 }
 0x25d   : > { %6192 = vmatpush3.bf16.msra.mxu1 %v6189_v10  ;;  %v4104_v10 = vld [vmem:[%s8119_s3 + $0x4d8] sm:$0xff] }
 0x25e   : > { %6194 = vmatprep.subr.bf16.mxu1 %v6193_v11  ;;  %v6221_v20 = vpack.c.bf16 %v4104_v10, %v4103_v7  ;;  %v4040_v7 = vld [vmem:[%s8119_s3 + $0x458] sm:$0xff] }
 0x261   : > { %6196 = vmatpush3.bf16.msra.mxu1 %v6193_v11  ;;  %v4106_v11 = vld [vmem:[%s8119_s3 + $0x4e8] sm:$0xff] }
 0x262   : > { %6198 = vmatprep.subr.bf16.mxu1 %v6197_v21  ;;  %v6225_v12 = vpack.c.bf16 %v4106_v11, %v4105_v9  ;;  %v4041_v9 = vld [vmem:[%s8119_s3 + $0x460] sm:$0xff]  ;;  %v4042_v11 = vld [vmem:[%s8119_s3 + $0x468] sm:$0xff] }
 0x265   : > { %6200 = vmatpush3.bf16.msra.mxu1 %v6197_v21  ;;  %v4108_v21 = vld [vmem:[%s8119_s3 + $0x4f8] sm:$0xff] }
 0x266   : > { %6202 = vmatprep.subr.bf16.mxu1 %v6201_v25  ;;  %v6229_v13 = vpack.c.bf16 %v4108_v21, %v4107_v14  ;;  %v4044_v14 = vld [vmem:[%s8119_s3 + $0x478] sm:$0xff] }
 0x30b   : > { %v7349_v23 = vpop.f32.mrb[8].mxu0 }
 0x30c   : > { %v7351_v29 = vpop.f32.mrb[9].mxu0 }
 0x30d   : > { %5229 = vmatprep.mubr.f32.mxu0 %v7351_v29 }
 0x30e   : > { %5230 = vmatmul.mubr.f32.vlgmr.msra.gmra.mrb[0].mxu0 %v7349_v23 }
 0x30f   : > { %6140 = vmatpush3.bf16.msra.mxu0 %v6137_v15  ;;  %v7361_v28 = vpop.f32.mrb[10].mxu0  ;;  %v4102_v15 = vld [vmem:[%s8119_s3 + $0x4c8] sm:$0xff] }
 0x310   : > { %6142 = vmatprep.subr.bf16.mxu0 %v6141_v30  ;;  %v7363_v35 = vpop.f32.mrb[11].mxu0  ;;  %v6217_v19 = vpack.c.bf16 %v4102_v15, %v4101_v8  ;;  %v6321_v15 = vpack.c.bf16 %v4162_v0, %v4161_v63  ;;  %v4109_v0 = vld [vmem:[%s8119_s3 + $0x600] sm:$0xff] }
 0x311   : > { %5232 = vmatprep.mubr.f32.mxu0 %v7363_v35 }
 0x312   : > { %5233 = vmatmul.mubr.f32.gmra.mrb[2].mxu0 %v7361_v28 }
 0x313   : > { %6144 = vmatpush3.bf16.msra.mxu0 %v6141_v30  ;;  %v7373_v27 = vpop.f32.mrb[12].mxu0 }
 0x314   : > { %6146 = vmatprep.subr.bf16.mxu0 %v6145_v34  ;;  %v7375_v33 = vpop.f32.mrb[13].mxu0 }
 0x315   : > { %5235 = vmatprep.mubr.f32.mxu0 %v7375_v33 }
 0x316   : > { %5236 = vmatmul.mubr.f32.gmra.mrb[4].mxu0 %v7373_v27 }
 0x317   : > { %6148 = vmatpush3.bf16.msra.mxu0 %v6145_v34  ;;  %v7385_v41 = vpop.f32.mrb[14].mxu0  ;;  %v4032_v34 = vld [vmem:[%s8119_s3 + $0x418] sm:$0xff] }
 0x318   : > { %6150 = vmatprep.subr.bf16.mxu0 %v6149_v38  ;;  %v7390_v32 = vpop.f32.mrb[15].mxu0 }
 0x319   : > { %5238 = vmatprep.mubr.f32.mxu0 %v7390_v32 }
 0x31a   : > { %5239 = vmatmul.mubr.f32.gmra.mrb[6].mxu0 %v7385_v41 }
 0x31b   : > { %6152 = vmatpush3.bf16.msra.mxu0 %v6149_v38  ;;  %v7403_v47 = vpop.f32.mrb[40].mxu1  ;;  %v6237_v38 = vpack.c.bf16 %v4032_v34, %v4031_v22  ;;  %v4146_v22 = vld [vmem:[%s8119_s3 + $0x3a8] sm:$0xff] }
 0x31c   : > { %v7405_v48 = vpop.f32.mrb[41].mxu1  ;;  %6154 = vmatprep.subr.bf16.mxu0 %v6153_v42 }
 0x31d   : > { %5345 = vmatprep.mubr.f32.mxu1 %v7405_v48  ;;  %5301 = vmatprep.mubr.f32.mxu0 %v7405_v48 }
 0x31e   : > { %5346 = vmatmul.mubr.f32.vlgmr.msra.gmra.mrb[32].mxu1 %v7403_v47 }
 0x31f   : > { %6156 = vmatpush3.bf16.msra.mxu0 %v6153_v42  ;;  %6204 = vmatpush3.bf16.msra.mxu1 %v6201_v25  ;;  %v7422_v57 = vpop.f32.mrb[42].mxu1  ;;  %v4030_v25 = vld [vmem:[%s8119_s3 + $0x408] sm:$0xff] }
 0x320   : > { %v7424_v58 = vpop.f32.mrb[43].mxu1  ;;  %6158 = vmatprep.subr.bf16.mxu0 %v6157_v49  ;;  %6206 = vmatprep.subr.bf16.mxu1 %v6205_v51  ;;  %v6233_v30 = vpack.c.bf16 %v4030_v25, %v4029_v24  ;;  %v4034_v42 = vld [vmem:[%s8119_s3 + $0x428] sm:$0xff] }
 0x321   : > { %5348 = vmatprep.mubr.f32.mxu1 %v7424_v58  ;;  %v6241_v46 = vpack.c.bf16 %v4034_v42, %v4033_v40  ;;  %v4142_v24 = vld [vmem:[%s8119_s3 + $0x388] sm:$0xff]  ;;  %v4151_v42 = vld [vmem:[%s8119_s3 + $0x3d0] sm:$0xff] }
 0x322   : > { %5349 = vmatmul.mubr.f32.gmra.mrb[34].mxu1 %v7422_v57  ;;  %v6301_v44 = vpack.c.bf16 %v4152_v43, %v4151_v42  ;;  %v4113_v43 = vld [vmem:[%s8119_s3 + $0x620] sm:$0xff] }
 0x323   : > { %6160 = vmatpush3.bf16.msra.mxu0 %v6157_v49  ;;  %6208 = vmatpush3.bf16.msra.mxu1 %v6205_v51  ;;  %v7440_v3 = vpop.f32.mrb[44].mxu1  ;;  %v4129_v49 = vld [vmem:[%s8118_s2 + $0x160] sm:$0xff]  ;;  %v4035_v51 = vld [vmem:[%s8119_s3 + $0x430] sm:$0xff] }
 0x324   : > { %v7442_v4 = vpop.f32.mrb[45].mxu1  ;;  %6162 = vmatprep.subr.bf16.mxu0 %v6161_v59  ;;  %6210 = vmatprep.subr.bf16.mxu1 %v6209_v61 }
 0x325   : > { %5351 = vmatprep.mubr.f32.mxu1 %v7442_v4 }
 0x326   : > { %5352 = vmatmul.mubr.f32.gmra.mrb[36].mxu1 %v7440_v3 }
 0x327   : > { %6164 = vmatpush3.bf16.msra.mxu0 %v6161_v59  ;;  %6212 = vmatpush3.bf16.msra.mxu1 %v6209_v61  ;;  %v7452_v16 = vpop.f32.mrb[46].mxu1  ;;  %v6245_v59 = vpack.c.bf16 %v4036_v52, %v4035_v51  ;;  %v4037_v61 = vld [vmem:[%s8119_s3 + $0x440] sm:$0xff]  ;;  %v4154_v52 = vld [vmem:[%s8119_s3 + $0x3e8] sm:$0xff] }
 0x328   : > { %v7454_v18 = vpop.f32.mrb[47].mxu1  ;;  %6166 = vmatprep.subr.bf16.mxu0 %v6165_v5  ;;  %6214 = vmatprep.subr.bf16.mxu1 %v6213_v6  ;;  %v6249_v8 = vpack.c.bf16 %v4038_v62, %v4037_v61  ;;  %v4153_v51 = vld [vmem:[%s8119_s3 + $0x3e0] sm:$0xff]  ;;  %v4155_v61 = vld [vmem:[%s8119_s3 + $0x3f0] sm:$0xff]  ;;  %v4156_v62 = vld [vmem:[%s8119_s3 + $0x3f8] sm:$0xff] }
 0x329   : > { %5354 = vmatprep.mubr.f32.mxu1 %v7454_v18  ;;  %v6309_v63 = vpack.c.bf16 %v4156_v62, %v4155_v61  ;;  %v4118_v61 = vld [vmem:[%s8119_s3 + $0x648] sm:$0xff] }
 0x32a   : > { %5355 = vmatmul.mubr.f32.gmra.mrb[38].mxu1 %v7452_v16 }
 0x32b   : > { %6168 = vmatpush3.bf16.msra.mxu0 %v6165_v5  ;;  %6216 = vmatpush3.bf16.msra.mxu1 %v6213_v6  ;;  %v4163_v5 = vld [vmem:[%s8119_s3 + $0x6b0] sm:$0xff]  ;;  %v4164_v6 = vld [vmem:[%s8119_s3 + $0x6b8] sm:$0xff] }
 0x32c   : > { %5389 = vmatprep.mubr.f32.mxu1 %v7405_v48  ;;  %6266 = vmatprep.subr.bf16.mxu0 %v6810_v50  ;;  %v6325_v10 = vpack.c.bf16 %v4164_v6, %v4163_v5 }
 0x32d   : > { %6218 = vmatprep.subr.bf16.mxu1 %v6217_v19 }
 0x32e   : > { %5302 = vmatmul.mubr.f32.vlgmr.msra.gmra.mrb[0].mxu0 %v7403_v47 }
 0x32f   : > { %6220 = vmatpush3.bf16.msra.mxu1 %v6217_v19  ;;  %6268 = vmatpush3.bf16.msra.mxu0 %v6810_v50  ;;  %v4039_v19 = vld [vmem:[%s8119_s3 + $0x450] sm:$0xff] }
 0x330   : > { %5304 = vmatprep.mubr.f32.mxu0 %v7424_v58  ;;  %6270 = vmatprep.subr.bf16.mxu0 %v6814_v55 }
 0x331   : > { %6222 = vmatprep.subr.bf16.mxu1 %v6221_v20 }
 0x332   : > { %5305 = vmatmul.mubr.f32.gmra.mrb[2].mxu0 %v7422_v57 }
 0x333   : > { %6224 = vmatpush3.bf16.msra.mxu1 %v6221_v20  ;;  %6272 = vmatpush3.bf16.msra.mxu0 %v6814_v55  ;;  %v6253_v20 = vpack.c.bf16 %v4040_v7, %v4039_v19 }
 0x334   : > { %5307 = vmatprep.mubr.f32.mxu0 %v7442_v4  ;;  %6274 = vmatprep.subr.bf16.mxu0 %v6818_v60 }
 0x335   : > { %6226 = vmatprep.subr.bf16.mxu1 %v6225_v12 }
 0x336   : > { %5308 = vmatmul.mubr.f32.gmra.mrb[4].mxu0 %v7440_v3 }
 0x337   : > { %6228 = vmatpush3.bf16.msra.mxu1 %v6225_v12  ;;  %6276 = vmatpush3.bf16.msra.mxu0 %v6818_v60  ;;  %v6257_v12 = vpack.c.bf16 %v4042_v11, %v4041_v9 }
 0x338   : > { %5310 = vmatprep.mubr.f32.mxu0 %v7454_v18  ;;  %6278 = vmatprep.subr.bf16.mxu0 %v6822_v1 }
 0x339   : > { %6230 = vmatprep.subr.bf16.mxu1 %v6229_v13 }
 0x33a   : > { %5311 = vmatmul.mubr.f32.gmra.mrb[6].mxu0 %v7452_v16 }
 0x33b   : > { %6232 = vmatpush3.bf16.msra.mxu1 %v6229_v13  ;;  %6280 = vmatpush3.bf16.msra.mxu0 %v6822_v1  ;;  %v4141_v13 = vld [vmem:[%s8119_s3 + $0x380] sm:$0xff] }
 0x33c   : > { %5461 = vmatprep.mubr.msk.f32.mxu0 %vm398_vm0, %v4125_v31  ;;  %6234 = vmatprep.subr.bf16.mxu1 %v6233_v30  ;;  %v6281_v25 = vpack.c.bf16 %v4142_v24, %v4141_v13  ;;  %v4145_v31 = vld [vmem:[%s8119_s3 + $0x3a0] sm:$0xff] }
 0x33d   : > { %6314 = vmatprep.subr.bf16.mxu0 %v6313_v36  ;;  %v6289_v34 = vpack.c.bf16 %v4146_v22, %v4145_v31 }
 0x33e   : > { %5390 = vmatmul.mubr.f32.vlgmr.msra.gmra.mrb[48].mxu1 %v7403_v47  ;;  %5462 = vmatmul.mubr.msk.f32.vlgmr.msra.gmra.mrb[16].mxu0 %vm398_vm0, %v4126_v37  ;;  %v4148_v37 = vld [vmem:[%s8119_s3 + $0x3b8] sm:$0xff] }
 0x33f   : > { %5392 = vmatprep.mubr.f32.mxu1 %v7424_v58  ;;  %6236 = vmatpush3.bf16.msra.mxu1 %v6233_v30  ;;  %v6285_v30 = vpack.c.bf16 %v4144_v17, %v4143_v26 }
 0x340   : > { %5464 = vmatprep.mubr.msk.f32.mxu0 %vm398_vm0, %v4127_v39  ;;  %6238 = vmatprep.subr.bf16.mxu1 %v6237_v38  ;;  %v4168_v39 = vld [vmem:[%s8119_s3 + $0x6d8] sm:$0xff] }
 0x341   : > { %6316 = vmatpush3.bf16.msra.mxu0 %v6313_v36  ;;  %v4147_v36 = vld [vmem:[%s8119_s3 + $0x3b0] sm:$0xff] }
 0x342   : > { %5393 = vmatmul.mubr.f32.gmra.mrb[50].mxu1 %v7422_v57  ;;  %5465 = vmatmul.mubr.msk.f32.gmra.mrb[18].mxu0 %vm398_vm0, %v4128_v45  ;;  %v4169_v45 = vld [vmem:[%s8119_s3 + $0x6e0] sm:$0xff] }
 0x343   : > { %5395 = vmatprep.mubr.f32.mxu1 %v7442_v4  ;;  %6240 = vmatpush3.bf16.msra.mxu1 %v6237_v38 }
 0x344   : > { %5467 = vmatprep.mubr.msk.f32.mxu0 %vm398_vm0, %v4129_v49  ;;  %6242 = vmatprep.subr.bf16.mxu1 %v6241_v46 }
 0x345   : > { %6318 = vmatprep.subr.bf16.mxu0 %v6317_v53 }
 0x346   : > { %5396 = vmatmul.mubr.f32.gmra.mrb[52].mxu1 %v7440_v3  ;;  %5468 = vmatmul.mubr.msk.f32.gmra.mrb[20].mxu0 %vm398_vm0, %v4130_v54  ;;  %v4171_v54 = vld [vmem:[%s8119_s3 + $0x6f0] sm:$0xff] }
 0x347   : > { %5398 = vmatprep.mubr.f32.mxu1 %v7454_v18  ;;  %6244 = vmatpush3.bf16.msra.mxu1 %v6241_v46  ;;  %v4170_v46 = vld [vmem:[%s8119_s3 + $0x6e8] sm:$0xff] }
 0x348   : > { %5470 = vmatprep.mubr.msk.f32.mxu0 %vm398_vm0, %v4131_v56  ;;  %6246 = vmatprep.subr.bf16.mxu1 %v6245_v59  ;;  %v6337_v49 = vpack.c.bf16 %v4170_v46, %v4169_v45  ;;  %v4172_v56 = vld [vmem:[%s8119_s3 + $0x6f8] sm:$0xff] }
 0x349   : > { %6320 = vmatpush3.bf16.msra.mxu0 %v6317_v53  ;;  %v6305_v53 = vpack.c.bf16 %v4154_v52, %v4153_v51  ;;  %v4115_v51 = vld [vmem:[%s8119_s3 + $0x630] sm:$0xff]  ;;  %v4116_v52 = vld [vmem:[%s8119_s3 + $0x638] sm:$0xff] }
 0x34a   : > { %5399 = vmatmul.mubr.f32.gmra.mrb[54].mxu1 %v7452_v16  ;;  %5471 = vmatmul.mubr.msk.f32.gmra.mrb[22].mxu0 %vm398_vm0, %v4132_v2  ;;  %v4110_v2 = vld [vmem:[%s8119_s3 + $0x608] sm:$0xff] }
 0x34b   : > { %6248 = vmatpush3.bf16.msra.mxu1 %v6245_v59  ;;  %5433 = vmatprep.mubr.f32.mxu1 %v7351_v29  ;;  %v4043_v29 = vld [vmem:[%s8119_s3 + $0x470] sm:$0xff]  ;;  %v6341_v59 = vpack.c.bf16 %v4172_v56, %v4171_v54  ;;  %v6345_v5 = vpack.c.bf16 %v4110_v2, %v4109_v0  ;;  %v6357_v56 = vpack.c.bf16 %v4116_v52, %v4115_v51  ;;  %v4189_v52 = vld [vmem:[%s8119_s3 + $0x500] sm:$0xff] }
 0x34c   : > { %6250 = vmatprep.subr.bf16.mxu1 %v6249_v8  ;;  %6322 = vmatprep.subr.bf16.mxu0 %v6321_v15  ;;  %v6261_v21 = vpack.c.bf16 %v4044_v14, %v4043_v29  ;;  %v4119_v2 = vld [vmem:[%s8119_s3 + $0x650] sm:$0xff] }
 0x34d   : > { %6324 = vmatpush3.bf16.msra.mxu0 %v6321_v15 }
 0x34e   : > { %6326 = vmatprep.subr.bf16.mxu0 %v6325_v10 }
 0x34f   : > { %6252 = vmatpush3.bf16.msra.mxu1 %v6249_v8 }
 0x350   : > { %6254 = vmatprep.subr.bf16.mxu1 %v6253_v20 }
 0x351   : > { %6328 = vmatpush3.bf16.msra.mxu0 %v6325_v10 }
 0x353   : > { %6256 = vmatpush3.bf16.msra.mxu1 %v6253_v20 }
 0x354   : > { %6258 = vmatprep.subr.bf16.mxu1 %v6257_v12 }
 0x357   : > { %6260 = vmatpush3.bf16.msra.mxu1 %v6257_v12 }
 0x358   : > { %6262 = vmatprep.subr.bf16.mxu1 %v6261_v21 }
 0x35b   : > { %6264 = vmatpush3.bf16.msra.mxu1 %v6261_v21 }
 0x35c   : > { %6282 = vmatprep.subr.bf16.mxu1 %v6281_v25 }
 0x35e   : > { %5434 = vmatmul.mubr.f32.vlgmr.msra.gmra.mrb[48].mxu1 %v7349_v23  ;;  %v6293_v23 = vpack.c.bf16 %v4148_v37, %v4147_v36 }
 0x35f   : > { %5436 = vmatprep.mubr.f32.mxu1 %v7363_v35  ;;  %6284 = vmatpush3.bf16.msra.mxu1 %v6281_v25  ;;  %v4165_v35 = vld [vmem:[%s8119_s3 + $0x6c0] sm:$0xff] }
 0x360   : > { %6286 = vmatprep.subr.bf16.mxu1 %v6285_v30 }
 0x362   : > { %5437 = vmatmul.mubr.f32.gmra.mrb[50].mxu1 %v7361_v28  ;;  %v4166_v28 = vld [vmem:[%s8119_s3 + $0x6c8] sm:$0xff] }
 0x363   : > { %5439 = vmatprep.mubr.f32.mxu1 %v7375_v33  ;;  %6288 = vmatpush3.bf16.msra.mxu1 %v6285_v30  ;;  %v6329_v33 = vpack.c.bf16 %v4166_v28, %v4165_v35  ;;  %v4111_v28 = vld [vmem:[%s8119_s3 + $0x610] sm:$0xff] }
 0x364   : > { %6290 = vmatprep.subr.bf16.mxu1 %v6289_v34 }
 0x365   : > { %6330 = vmatprep.subr.bf16.mxu0 %v6329_v33 }
 0x366   : > { %5440 = vmatmul.mubr.f32.gmra.mrb[52].mxu1 %v7373_v27  ;;  %v4149_v27 = vld [vmem:[%s8119_s3 + $0x3c0] sm:$0xff]  ;;  %6332 = vmatpush3.bf16.msra.mxu0 %v6329_v33  ;;  %v4112_v33 = vld [vmem:[%s8119_s3 + $0x618] sm:$0xff] }
 0x367   : > { %5442 = vmatprep.mubr.f32.mxu1 %v7390_v32  ;;  %6292 = vmatpush3.bf16.msra.mxu1 %v6289_v34  ;;  %v4150_v32 = vld [vmem:[%s8119_s3 + $0x3c8] sm:$0xff] }
 0x368   : > { %6294 = vmatprep.subr.bf16.mxu1 %v6293_v23  ;;  %v6297_v38 = vpack.c.bf16 %v4150_v32, %v4149_v27 }
 0x36a   : > { %5443 = vmatmul.mubr.f32.gmra.mrb[54].mxu1 %v7385_v41  ;;  %v4167_v41 = vld [vmem:[%s8119_s3 + $0x6d0] sm:$0xff] }
 0x36b   : > { %6296 = vmatpush3.bf16.msra.mxu1 %v6293_v23  ;;  %v6333_v40 = vpack.c.bf16 %v4168_v39, %v4167_v41 }
 0x36c   : > { %6298 = vmatprep.subr.bf16.mxu1 %v6297_v38 }
 0x36d   : > { %6334 = vmatprep.subr.bf16.mxu0 %v6333_v40 }
 0x36e   : > { %6336 = vmatpush3.bf16.msra.mxu0 %v6333_v40  ;;  %v6349_v40 = vpack.c.bf16 %v4112_v33, %v4111_v28  ;;  %v4245_v28 = vld [vmem:[%s8119_s3 + $0x740] sm:$0xff]  ;;  %v4246_v33 = vld [vmem:[%s8119_s3 + $0x748] sm:$0xff] }
 0x36f   : > { %6300 = vmatpush3.bf16.msra.mxu1 %v6297_v38  ;;  %6338 = vmatprep.subr.bf16.mxu0 %v6337_v49 }
 0x370   : > { %6302 = vmatprep.subr.bf16.mxu1 %v6301_v44 }
 0x372   : > { %6340 = vmatpush3.bf16.msra.mxu0 %v6337_v49 }
 0x373   : > { %6304 = vmatpush3.bf16.msra.mxu1 %v6301_v44  ;;  %6342 = vmatprep.subr.bf16.mxu0 %v6341_v59  ;;  %v4114_v44 = vld [vmem:[%s8119_s3 + $0x628] sm:$0xff] }
 0x374   : > { %6306 = vmatprep.subr.bf16.mxu1 %v6305_v53  ;;  %v6353_v49 = vpack.c.bf16 %v4114_v44, %v4113_v43  ;;  %v4249_v43 = vld [vmem:[%s8119_s3 + $0x760] sm:$0xff]  ;;  %v4250_v44 = vld [vmem:[%s8119_s3 + $0x768] sm:$0xff] }
 0x376   : > { %6344 = vmatpush3.bf16.msra.mxu0 %v6341_v59  ;;  %v4117_v59 = vld [vmem:[%s8119_s3 + $0x640] sm:$0xff] }
 0x377   : > { %6308 = vmatpush3.bf16.msra.mxu1 %v6305_v53  ;;  %6346 = vmatprep.subr.bf16.mxu0 %v6345_v5  ;;  %v6361_v0 = vpack.c.bf16 %v4118_v61, %v4117_v59  ;;  %v4192_v59 = vld [vmem:[%s8119_s3 + $0x518] sm:$0xff] }
 0x378   : > { %6310 = vmatprep.subr.bf16.mxu1 %v6309_v63 }
 0x37b   : > { %6312 = vmatpush3.bf16.msra.mxu1 %v6309_v63 }
 0x401   : > { %v5303_v6 = vpop.f32.mrb[0].mxu0 }
 0x402   : > { %3648 = vst [vmem:[%s6718_s7 + $0x8] sm:$0xff] %v5303_v6  ;;  %v3670_v8 = vmul.f32 %v5303_v6, %v5303_v6  ;;  %v1797_v15 = vpop.f32.mrb[1].mxu0 }
 0x403   : > { %3647 = vst [vmem:[%s6718_s7] sm:$0xff] %v1797_v15  ;;  %v3655_v19 = vadd.f32 %v5303_v6, %v1797_v15  ;;  %v3669_v7 = vmul.f32 %v1797_v15, %v1797_v15  ;;  %v4122_v15 = vld [vmem:[%s8119_s3 + $0x668] sm:$0xff] }
 0x405   : > { %v3677_v10 = vadd.f32 %v3670_v8, %v3669_v7  ;;  %v5306_v20 = vpop.f32.mrb[2].mxu0  ;;  %v4121_v8 = vld [vmem:[%s8119_s3 + $0x660] sm:$0xff]  ;;  %v4123_v7 = vld [vmem:[%s8119_s3 + $0x670] sm:$0xff] }
 0x406   : > { %3650 = vst [vmem:[%s6718_s7 + $0x18] sm:$0xff] %v5306_v20  ;;  %v1807_v9 = vpop.f32.mrb[3].mxu0  ;;  %v3672_v29 = vmul.f32 %v5306_v20, %v5306_v20 }
 0x407   : > { %3649 = vst [vmem:[%s6718_s7 + $0x10] sm:$0xff] %v1807_v9  ;;  %v3656_v11 = vadd.f32 %v3655_v19, %v1807_v9  ;;  %v3671_v12 = vmul.f32 %v1807_v9, %v1807_v9  ;;  %v6369_v19 = vpack.c.bf16 %v4122_v15, %v4121_v8  ;;  %v4238_v9 = vld [vmem:[%s8119_s3 + $0x708] sm:$0xff]  ;;  %v4197_v8 = vld [vmem:[%s8119_s3 + $0x540] sm:$0xff] }
 0x408   : > { %v4198_v15 = vld [vmem:[%s8119_s3 + $0x548] sm:$0xff] }
 0x409   : > { %v3678_v14 = vadd.f32 %v3677_v10, %v3671_v12  ;;  %v5309_v21 = vpop.f32.mrb[4].mxu0  ;;  %v3657_v13 = vadd.f32 %v5306_v20, %v3656_v11  ;;  %v4237_v20 = vld [vmem:[%s8119_s3 + $0x700] sm:$0xff]  ;;  %v4180_v11 = vld [vmem:[%s8118_s2 + $0x1b8] sm:$0xff] }
 0x40a   : > { %3652 = vst [vmem:[%s6718_s7 + $0x28] sm:$0xff] %v5309_v21  ;;  %v1817_v24 = vpop.f32.mrb[5].mxu0  ;;  %v3674_v30 = vmul.f32 %v5309_v21, %v5309_v21  ;;  %v4205_v12 = vld [vmem:[%s8118_s2 + $0x1c0] sm:$0xff] }
 0x40b   : > { %3651 = vst [vmem:[%s6718_s7 + $0x20] sm:$0xff] %v1817_v24  ;;  %v3658_v25 = vadd.f32 %v3657_v13, %v1817_v24  ;;  %v3673_v26 = vmul.f32 %v1817_v24, %v1817_v24  ;;  %v3679_v17 = vadd.f32 %v3678_v14, %v3672_v29  ;;  %v6473_v29 = vpack.c.bf16 %v4238_v9, %v4237_v20  ;;  %v4239_v14 = vld [vmem:[%s8119_s3 + $0x710] sm:$0xff]  ;;  %v4206_v13 = vld [vmem:[%s8118_s2 + $0x1c8] sm:$0xff] }
 0x40c   : > { %v4207_v24 = vld [vmem:[%s8118_s2 + $0x1d0] sm:$0xff]  ;;  %v4222_v20 = vld [vmem:[%s8119_s3 + $0x588] sm:$0xff] }
 0x40d   : > { %v3680_v31 = vadd.f32 %v3679_v17, %v3673_v26  ;;  %v5312_v22 = vpop.f32.mrb[6].mxu0  ;;  %v3659_v34 = vadd.f32 %v5309_v21, %v3658_v25  ;;  %v4240_v21 = vld [vmem:[%s8119_s3 + $0x718] sm:$0xff]  ;;  %v4241_v26 = vld [vmem:[%s8119_s3 + $0x720] sm:$0xff]  ;;  %v4242_v17 = vld [vmem:[%s8119_s3 + $0x728] sm:$0xff] }
 0x40e   : > { %3654 = vst [vmem:[%s6718_s7 + $0x38] sm:$0xff] %v5312_v22  ;;  %v1827_v36 = vpop.f32.mrb[7].mxu0  ;;  %v3676_v27 = vmul.f32 %v5312_v22, %v5312_v22  ;;  %v6477_v25 = vpack.c.bf16 %v4240_v21, %v4239_v14 }
 0x40f   : > { %3653 = vst [vmem:[%s6718_s7 + $0x30] sm:$0xff] %v1827_v36  ;;  %v3660_v37 = vadd.f32 %v3659_v34, %v1827_v36  ;;  %v3675_v23 = vmul.f32 %v1827_v36, %v1827_v36  ;;  %v3681_v35 = vadd.f32 %v3680_v31, %v3674_v30  ;;  %v4208_v30 = vld [vmem:[%s8118_s2 + $0x1d8] sm:$0xff]  ;;  %v4209_v31 = vld [vmem:[%s8118_s2 + $0x1e0] sm:$0xff]  ;;  %v4243_v34 = vld [vmem:[%s8119_s3 + $0x730] sm:$0xff] }
 0x410   : > { %v4244_v36 = vld [vmem:[%s8119_s3 + $0x738] sm:$0xff] }
 0x411   : > { %v7703_v32 = vadd.f32 %v5312_v22, %v3660_v37  ;;  %v3682_v38 = vadd.f32 %v3681_v35, %v3675_v23  ;;  %v5463_v41 = vpop.f32.mrb[16].mxu0  ;;  %v6481_v22 = vpack.c.bf16 %v4242_v17, %v4241_v26  ;;  %v4210_v37 = vld [vmem:[%s8118_s2 + $0x1e8] sm:$0xff]  ;;  %v4211_v23 = vld [vmem:[%s8118_s2 + $0x1f0] sm:$0xff]  ;;  %v6485_v35 = vpack.c.bf16 %v4244_v36, %v4243_v34 }
 0x412   : > { %v2317_v39 = vpop.f32.mrb[17].mxu0 }
 0x413   : > { %v7705_v42 = vadd.f32 %v3682_v38, %v3676_v27  ;;  %5505 = vmatprep.mubr.f32.mxu1 %v2317_v39  ;;  %5549 = vmatprep.mubr.f32.mxu0 %v2317_v39  ;;  %v4212_v27 = vld [vmem:[%s8118_s2 + $0x1f8] sm:$0xff]  ;;  %v6489_v38 = vpack.c.bf16 %v4246_v33, %v4245_v28 }
 0x414   : > { %5506 = vmatmul.mubr.f32.vlgmr.msra.gmra.mrb[32].mxu1 %v5463_v41  ;;  %5550 = vmatmul.mubr.f32.vlgmr.msra.gmra.mrb[24].mxu0 %v5463_v41  ;;  %v4247_v41 = vld [vmem:[%s8119_s3 + $0x750] sm:$0xff]  ;;  %v4248_v39 = vld [vmem:[%s8119_s3 + $0x758] sm:$0xff] }
 0x415   : > { %6348 = vmatpush3.bf16.msra.mxu0 %v6345_v5  ;;  %v5466_v45 = vpop.f32.mrb[18].mxu0  ;;  %v4120_v5 = vld [vmem:[%s8119_s3 + $0x658] sm:$0xff] }
 0x416   : > { %v2327_v46 = vpop.f32.mrb[19].mxu0  ;;  %6350 = vmatprep.subr.bf16.mxu0 %v6349_v40  ;;  %v6365_v6 = vpack.c.bf16 %v4120_v5, %v4119_v2  ;;  %v4195_v2 = vld [vmem:[%s8119_s3 + $0x530] sm:$0xff]  ;;  %v4196_v5 = vld [vmem:[%s8119_s3 + $0x538] sm:$0xff] }
 0x417   : > { %5508 = vmatprep.mubr.f32.mxu1 %v2327_v46  ;;  %5552 = vmatprep.mubr.f32.mxu0 %v2327_v46  ;;  %v4251_v46 = vld [vmem:[%s8119_s3 + $0x770] sm:$0xff] }
 0x418   : > { %5509 = vmatmul.mubr.f32.gmra.mrb[34].mxu1 %v5466_v45  ;;  %5553 = vmatmul.mubr.f32.gmra.mrb[26].mxu0 %v5466_v45  ;;  %v6497_v45 = vpack.c.bf16 %v4250_v44, %v4249_v43 }
 0x419   : > { %6352 = vmatpush3.bf16.msra.mxu0 %v6349_v40  ;;  %v5469_v53 = vpop.f32.mrb[20].mxu0  ;;  %v6493_v40 = vpack.c.bf16 %v4248_v39, %v4247_v41 }
 0x41a   : > { %v2337_v54 = vpop.f32.mrb[21].mxu0  ;;  %6354 = vmatprep.subr.bf16.mxu0 %v6353_v49 }
 0x41b   : > { %5511 = vmatprep.mubr.f32.mxu1 %v2337_v54  ;;  %5555 = vmatprep.mubr.f32.mxu0 %v2337_v54 }
 0x41c   : > { %5512 = vmatmul.mubr.f32.gmra.mrb[36].mxu1 %v5469_v53  ;;  %5556 = vmatmul.mubr.f32.gmra.mrb[28].mxu0 %v5469_v53  ;;  %v4190_v53 = vld [vmem:[%s8119_s3 + $0x508] sm:$0xff] }
 0x41d   : > { %6356 = vmatpush3.bf16.msra.mxu0 %v6353_v49  ;;  %v5472_v62 = vpop.f32.mrb[22].mxu0  ;;  %v4252_v49 = vld [vmem:[%s8119_s3 + $0x778] sm:$0xff]  ;;  %v6393_v54 = vpack.c.bf16 %v4190_v53, %v4189_v52 }
 0x41e   : > { %v2347_v63 = vpop.f32.mrb[23].mxu0  ;;  %6358 = vmatprep.subr.bf16.mxu0 %v6357_v56  ;;  %v6501_v51 = vpack.c.bf16 %v4252_v49, %v4251_v46 }
 0x41f   : > { %5514 = vmatprep.mubr.f32.mxu1 %v2347_v63  ;;  %5558 = vmatprep.mubr.f32.mxu0 %v2347_v63  ;;  %v4194_v63 = vld [vmem:[%s8119_s3 + $0x528] sm:$0xff] }
 0x420   : > { %5515 = vmatmul.mubr.f32.gmra.mrb[38].mxu1 %v5472_v62  ;;  %5559 = vmatmul.mubr.f32.gmra.mrb[30].mxu0 %v5472_v62  ;;  %v4193_v62 = vld [vmem:[%s8119_s3 + $0x520] sm:$0xff] }
 0x421   : > { %6360 = vmatpush3.bf16.msra.mxu0 %v6357_v56  ;;  %5593 = vmatprep.mubr.f32.mxu0 %v7405_v48  ;;  %v4124_v48 = vld [vmem:[%s8119_s3 + $0x678] sm:$0xff]  ;;  %v4191_v56 = vld [vmem:[%s8119_s3 + $0x510] sm:$0xff] }
 0x422   : > { %6362 = vmatprep.subr.bf16.mxu0 %v6361_v0  ;;  %v6373_v10 = vpack.c.bf16 %v4124_v48, %v4123_v7  ;;  %6394 = vmatprep.subr.bf16.mxu1 %v6393_v54  ;;  %v6397_v61 = vpack.c.bf16 %v4192_v59, %v4191_v56  ;;  %v4199_v7 = vld [vmem:[%s8119_s3 + $0x550] sm:$0xff]  ;;  %v4200_v48 = vld [vmem:[%s8119_s3 + $0x558] sm:$0xff] }
 0x423   : > { %6396 = vmatpush3.bf16.msra.mxu1 %v6393_v54 }
 0x424   : > { %6398 = vmatprep.subr.bf16.mxu1 %v6397_v61 }
 0x425   : > { %6364 = vmatpush3.bf16.msra.mxu0 %v6361_v0  ;;  %v6401_v0 = vpack.c.bf16 %v4194_v63, %v4193_v62 }
 0x426   : > { %6366 = vmatprep.subr.bf16.mxu0 %v6365_v6 }
 0x427   : > { %6400 = vmatpush3.bf16.msra.mxu1 %v6397_v61 }
 0x428   : > { %6402 = vmatprep.subr.bf16.mxu1 %v6401_v0 }
 0x429   : > { %6368 = vmatpush3.bf16.msra.mxu0 %v6365_v6  ;;  %v6405_v6 = vpack.c.bf16 %v4196_v5, %v4195_v2 }
 0x42a   : > { %6370 = vmatprep.subr.bf16.mxu0 %v6369_v19 }
 0x42b   : > { %6404 = vmatpush3.bf16.msra.mxu1 %v6401_v0 }
 0x42c   : > { %6406 = vmatprep.subr.bf16.mxu1 %v6405_v6 }
 0x42d   : > { %6372 = vmatpush3.bf16.msra.mxu0 %v6369_v19  ;;  %v6409_v19 = vpack.c.bf16 %v4198_v15, %v4197_v8 }
 0x42e   : > { %6374 = vmatprep.subr.bf16.mxu0 %v6373_v10 }
 0x42f   : > { %6408 = vmatpush3.bf16.msra.mxu1 %v6405_v6 }
 0x430   : > { %6410 = vmatprep.subr.bf16.mxu1 %v6409_v19 }
 0x431   : > { %6376 = vmatpush3.bf16.msra.mxu0 %v6373_v10  ;;  %v6413_v10 = vpack.c.bf16 %v4200_v48, %v4199_v7 }
 0x432   : > { %6378 = vmatprep.subr.bf16.mxu0 %v6810_v50 }
 0x433   : > { %6412 = vmatpush3.bf16.msra.mxu1 %v6409_v19 }
 0x434   : > { %5594 = vmatmul.mubr.f32.vlgmr.msra.gmra.mrb[24].mxu0 %v7403_v47  ;;  %v4173_v47 = vld [vmem:[%s8118_s2 + $0x180] sm:$0xff]  ;;  %6414 = vmatprep.subr.bf16.mxu1 %v6413_v10 }
 0x435   : > { %5596 = vmatprep.mubr.f32.mxu0 %v7424_v58  ;;  %6380 = vmatpush3.bf16.msra.mxu0 %v6810_v50  ;;  %v4175_v58 = vld [vmem:[%s8118_s2 + $0x190] sm:$0xff] }
 0x436   : > { %6382 = vmatprep.subr.bf16.mxu0 %v6814_v55 }
 0x437   : > { %6416 = vmatpush3.bf16.msra.mxu1 %v6413_v10 }
 0x438   : > { %5597 = vmatmul.mubr.f32.gmra.mrb[26].mxu0 %v7422_v57  ;;  %v4174_v57 = vld [vmem:[%s8118_s2 + $0x188] sm:$0xff] }
 0x439   : > { %5599 = vmatprep.mubr.f32.mxu0 %v7442_v4  ;;  %6384 = vmatpush3.bf16.msra.mxu0 %v6814_v55  ;;  %v4177_v4 = vld [vmem:[%s8118_s2 + $0x1a0] sm:$0xff] }
 0x43a   : > { %6386 = vmatprep.subr.bf16.mxu0 %v6818_v60 }
 0x43c   : > { %5600 = vmatmul.mubr.f32.gmra.mrb[28].mxu0 %v7440_v3  ;;  %v4176_v3 = vld [vmem:[%s8118_s2 + $0x198] sm:$0xff] }
 0x43d   : > { %5602 = vmatprep.mubr.f32.mxu0 %v7454_v18  ;;  %6388 = vmatpush3.bf16.msra.mxu0 %v6818_v60  ;;  %v4179_v18 = vld [vmem:[%s8118_s2 + $0x1b0] sm:$0xff] }
 0x43e   : > { %6390 = vmatprep.subr.bf16.mxu0 %v6822_v1 }
 0x440   : > { %5603 = vmatmul.mubr.f32.gmra.mrb[30].mxu0 %v7452_v16  ;;  %v4178_v16 = vld [vmem:[%s8118_s2 + $0x1a8] sm:$0xff] }
 0x441   : > { %6392 = vmatpush3.bf16.msra.mxu0 %v6822_v1  ;;  %5621 = vmatprep.mubr.msk.f32.mxu0 %vm398_vm0, %v4173_v47  ;;  %v4201_v47 = vld [vmem:[%s8119_s3 + $0x560] sm:$0xff] }
 0x442   : > { %6426 = vmatprep.subr.bf16.mxu0 %v6810_v50 }
 0x444   : > { %5622 = vmatmul.mubr.msk.f32.vlgmr.msra.gmra.mrb[32].mxu0 %vm398_vm0, %v4174_v57  ;;  %v4202_v57 = vld [vmem:[%s8119_s3 + $0x568] sm:$0xff] }
 0x445   : > { %6428 = vmatpush3.bf16.msra.mxu0 %v6810_v50  ;;  %5624 = vmatprep.mubr.msk.f32.mxu0 %vm398_vm0, %v4175_v58  ;;  %v6417_v58 = vpack.c.bf16 %v4202_v57, %v4201_v47 }
 0x446   : > { %6430 = vmatprep.subr.bf16.mxu0 %v6814_v55 }
 0x447   : > { %6418 = vmatprep.subr.bf16.mxu1 %v6417_v58 }
 0x448   : > { %5625 = vmatmul.mubr.msk.f32.gmra.mrb[34].mxu0 %vm398_vm0, %v4176_v3  ;;  %v4203_v3 = vld [vmem:[%s8119_s3 + $0x570] sm:$0xff]  ;;  %6420 = vmatpush3.bf16.msra.mxu1 %v6417_v58 }
 0x449   : > { %6432 = vmatpush3.bf16.msra.mxu0 %v6814_v55  ;;  %5627 = vmatprep.mubr.msk.f32.mxu0 %vm398_vm0, %v4177_v4  ;;  %v4204_v4 = vld [vmem:[%s8119_s3 + $0x578] sm:$0xff] }
 0x44a   : > { %6434 = vmatprep.subr.bf16.mxu0 %v6818_v60 }
 0x44c   : > { %5628 = vmatmul.mubr.msk.f32.gmra.mrb[36].mxu0 %vm398_vm0, %v4178_v16  ;;  %v6421_v16 = vpack.c.bf16 %v4204_v4, %v4203_v3 }
 0x44d   : > { %6436 = vmatpush3.bf16.msra.mxu0 %v6818_v60  ;;  %5630 = vmatprep.mubr.msk.f32.mxu0 %vm398_vm0, %v4179_v18  ;;  %v4221_v18 = vld [vmem:[%s8119_s3 + $0x580] sm:$0xff] }
 0x44e   : > { %6438 = vmatprep.subr.bf16.mxu0 %v6822_v1  ;;  %6422 = vmatprep.subr.bf16.mxu1 %v6421_v16  ;;  %v7934_v9 = vpack.c.bf16 %v4222_v20, %v4221_v18  ;;  %v4224_v18 = vld [vmem:[%s8119_s3 + $0x598] sm:$0xff] }
 0x44f   : > { %6424 = vmatpush3.bf16.msra.mxu1 %v6421_v16  ;;  %v4223_v16 = vld [vmem:[%s8119_s3 + $0x590] sm:$0xff] }
 0x450   : > { %5631 = vmatmul.mubr.msk.f32.gmra.mrb[38].mxu0 %vm398_vm0, %v4180_v11  ;;  %6442 = vmatprep.subr.bf16.mxu1 %v7934_v9 }
 0x451   : > { %6440 = vmatpush3.bf16.msra.mxu0 %v6822_v1  ;;  %5693 = vmatprep.mubr.msk.f32.mxu0 %vm398_vm0, %v4205_v12 }
 0x452   : > { %6474 = vmatprep.subr.bf16.mxu0 %v6473_v29 }
 0x454   : > { %5694 = vmatmul.mubr.msk.f32.vlgmr.msra.gmra.mrb[40].mxu0 %vm398_vm0, %v4206_v13 }
 0x455   : > { %6476 = vmatpush3.bf16.msra.mxu0 %v6473_v29  ;;  %5696 = vmatprep.mubr.msk.f32.mxu0 %vm398_vm0, %v4207_v24 }
 0x456   : > { %6478 = vmatprep.subr.bf16.mxu0 %v6477_v25 }
 0x458   : > { %5697 = vmatmul.mubr.msk.f32.gmra.mrb[42].mxu0 %vm398_vm0, %v4208_v30  ;;  %v3662_v30 = vrot.slane %v7703_v32, 4 }
 0x459   : > { %6480 = vmatpush3.bf16.msra.mxu0 %v6477_v25  ;;  %5699 = vmatprep.mubr.msk.f32.mxu0 %vm398_vm0, %v4209_v31 }
 0x45a   : > { %6482 = vmatprep.subr.bf16.mxu0 %v6481_v22 }
 0x45c   : > { %5700 = vmatmul.mubr.msk.f32.gmra.mrb[44].mxu0 %vm398_vm0, %v4210_v37 }
 0x45d   : > { %6484 = vmatpush3.bf16.msra.mxu0 %v6481_v22  ;;  %5702 = vmatprep.mubr.msk.f32.mxu0 %vm398_vm0, %v4211_v23  ;;  %v3684_v23 = vrot.slane %v7705_v42, 4 }
 0x45e   : > { %6486 = vmatprep.subr.bf16.mxu0 %v6485_v35 }
 0x45f   : > { %v3685_v44 = vadd.f32 %v3684_v23, %v7705_v42  ;;  %v4231_v23 = vld [vmem:[%s8119_s3 + $0x5d0] sm:$0xff] }
 0x460   : > { %5703 = vmatmul.mubr.msk.f32.gmra.mrb[46].mxu0 %vm398_vm0, %v4212_v27  ;;  %v3663_v27 = vadd.f32 %v3662_v30, %v7703_v32 }
 0x461   : > { %6488 = vmatpush3.bf16.msra.mxu0 %v6485_v35  ;;  %v3686_v56 = vrot.slane %v3685_v44, 2 }
 0x462   : > { %6490 = vmatprep.subr.bf16.mxu0 %v6489_v38 }
 0x463   : > { %v3687_v0 = vadd.f32 %v3686_v56, %v3685_v44  ;;  %v4235_v44 = vld [vmem:[%s8119_s3 + $0x5f0] sm:$0xff]  ;;  %v4253_v56 = vld [vmem:[%s8118_s2 + $0x200] sm:$0xff] }
 0x465   : > { %6492 = vmatpush3.bf16.msra.mxu0 %v6489_v38  ;;  %v3688_v15 = vrot.slane %v3687_v0, 1 }
 0x466   : > { %6494 = vmatprep.subr.bf16.mxu0 %v6493_v40 }
 0x467   : > { %v3689_v57 = vadd.f32 %v3688_v15, %v3687_v0  ;;  %v4256_v0 = vld [vmem:[%s8118_s2 + $0x218] sm:$0xff]  ;;  %v4259_v15 = vld [vmem:[%s8118_s2 + $0x230] sm:$0xff] }
 0x469   : > { %6496 = vmatpush3.bf16.msra.mxu0 %v6493_v40 }
 0x46a   : > { %6498 = vmatprep.subr.bf16.mxu0 %v6497_v45 }
 0x46d   : > { %6500 = vmatpush3.bf16.msra.mxu0 %v6497_v45 }
 0x46e   : > { %6502 = vmatprep.subr.bf16.mxu0 %v6501_v51 }
 0x471   : > { %6504 = vmatpush3.bf16.msra.mxu0 %v6501_v51  ;;  %v3664_v51 = vrot.slane %v3663_v27, 2 }
 0x472   : > { %6506 = vmatprep.subr.bf16.mxu0 %v6810_v50 }
 0x473   : > { %v3665_v32 = vadd.f32 %v3664_v51, %v3663_v27  ;;  %v4269_v51 = vld [vmem:[%s8119_s3 + $0x780] sm:$0xff] }
 0x475   : > { %v3666_v6 = vrot.slane %v3665_v32, 1 }
 0x477   : > { %v3667_v48 = vadd.f32 %v3666_v6, %v3665_v32  ;;  %v4255_v32 = vld [vmem:[%s8118_s2 + $0x210] sm:$0xff] }
 0x478   : > { %v4275_v6 = vld [vmem:[%s8119_s3 + $0x7b0] sm:$0xff] }
 0x4e7   : > { %v5507_v11 = vpop.f32.mrb[32].mxu1 }
 0x4e8   : > { %4286 = vst [vmem:[%s6718_s7 + $0x48] sm:$0xff] %v5507_v11  ;;  %v3715_v12 = vmul.f32 %v5507_v11, %v5507_v11  ;;  %v2439_v29 = vpop.f32.mrb[33].mxu1 }
 0x4e9   : > { %4285 = vst [vmem:[%s6718_s7 + $0x40] sm:$0xff] %v2439_v29  ;;  %v3700_v14 = vadd.f32 %v5507_v11, %v2439_v29  ;;  %v3714_v21 = vmul.f32 %v2439_v29, %v2439_v29  ;;  %v4225_v29 = vld [vmem:[%s8119_s3 + $0x5a0] sm:$0xff] }
 0x4eb   : > { %v3722_v13 = vadd.f32 %v3715_v12, %v3714_v21  ;;  %v5510_v24 = vpop.f32.mrb[34].mxu1  ;;  %v6445_v12 = vpack.c.bf16 %v4224_v18, %v4223_v16  ;;  %v4281_v18 = vld [vmem:[%s8119_s3 + $0x7e0] sm:$0xff] }
 0x4ec   : > { %4288 = vst [vmem:[%s6718_s7 + $0x58] sm:$0xff] %v5510_v24  ;;  %v2449_v25 = vpop.f32.mrb[35].mxu1  ;;  %v3717_v31 = vmul.f32 %v5510_v24, %v5510_v24 }
 0x4ed   : > { %4287 = vst [vmem:[%s6718_s7 + $0x50] sm:$0xff] %v2449_v25  ;;  %v3701_v26 = vadd.f32 %v3700_v14, %v2449_v25  ;;  %v3716_v17 = vmul.f32 %v2449_v25, %v2449_v25  ;;  %v4226_v14 = vld [vmem:[%s8119_s3 + $0x5a8] sm:$0xff]  ;;  %v4227_v25 = vld [vmem:[%s8119_s3 + $0x5b0] sm:$0xff] }
 0x4ef   : > { %v3723_v22 = vadd.f32 %v3722_v13, %v3716_v17  ;;  %v5513_v34 = vpop.f32.mrb[36].mxu1  ;;  %v3702_v36 = vadd.f32 %v5510_v24, %v3701_v26  ;;  %v6449_v24 = vpack.c.bf16 %v4226_v14, %v4225_v29  ;;  %v4228_v26 = vld [vmem:[%s8119_s3 + $0x5b8] sm:$0xff] }
 0x4f0   : > { %4290 = vst [vmem:[%s6718_s7 + $0x68] sm:$0xff] %v5513_v34  ;;  %v2459_v37 = vpop.f32.mrb[37].mxu1  ;;  %v3719_v38 = vmul.f32 %v5513_v34, %v5513_v34  ;;  %v4284_v29 = vld [vmem:[%s8119_s3 + $0x7f8] sm:$0xff] }
 0x4f1   : > { %4289 = vst [vmem:[%s6718_s7 + $0x60] sm:$0xff] %v2459_v37  ;;  %v3703_v35 = vadd.f32 %v3702_v36, %v2459_v37  ;;  %v3718_v28 = vmul.f32 %v2459_v37, %v2459_v37  ;;  %v3724_v33 = vadd.f32 %v3723_v22, %v3717_v31  ;;  %v6453_v31 = vpack.c.bf16 %v4228_v26, %v4227_v25  ;;  %v4230_v22 = vld [vmem:[%s8119_s3 + $0x5c8] sm:$0xff] }
 0x4f3   : > { %v3725_v41 = vadd.f32 %v3724_v33, %v3718_v28  ;;  %v5516_v39 = vpop.f32.mrb[38].mxu1  ;;  %v3704_v40 = vadd.f32 %v5513_v34, %v3703_v35  ;;  %v4232_v35 = vld [vmem:[%s8119_s3 + $0x5d8] sm:$0xff] }
 0x4f4   : > { %4292 = vst [vmem:[%s6718_s7 + $0x78] sm:$0xff] %v5516_v39  ;;  %v2469_v43 = vpop.f32.mrb[39].mxu1  ;;  %v3721_v52 = vmul.f32 %v5516_v39, %v5516_v39  ;;  %v6461_v27 = vpack.c.bf16 %v4232_v35, %v4231_v23 }
 0x4f5   : > { %4291 = vst [vmem:[%s6718_s7 + $0x70] sm:$0xff] %v2469_v43  ;;  %v3705_v45 = vadd.f32 %v3704_v40, %v2469_v43  ;;  %v3720_v46 = vmul.f32 %v2469_v43, %v2469_v43  ;;  %v3726_v49 = vadd.f32 %v3725_v41, %v3719_v38  ;;  %v4233_v38 = vld [vmem:[%s8119_s3 + $0x5e0] sm:$0xff]  ;;  %v4234_v41 = vld [vmem:[%s8119_s3 + $0x5e8] sm:$0xff] }
 0x4f6   : > { %v6465_v43 = vpack.c.bf16 %v4234_v41, %v4233_v38 }
 0x4f7   : > { %v3706_v53 = vadd.f32 %v5516_v39, %v3705_v45  ;;  %v3727_v54 = vadd.f32 %v3726_v49, %v3720_v46  ;;  %v4236_v45 = vld [vmem:[%s8119_s3 + $0x5f8] sm:$0xff] }
 0x4f8   : > { %v6469_v49 = vpack.c.bf16 %v4236_v45, %v4235_v44 }
 0x4f9   : > { %v3707_v59 = vrot.slane %v3706_v53, 4  ;;  %v3728_v61 = vadd.f32 %v3727_v54, %v3721_v52  ;;  %v4270_v52 = vld [vmem:[%s8119_s3 + $0x788] sm:$0xff] }
 0x4fa   : > { %v6521_v54 = vpack.c.bf16 %v4270_v52, %v4269_v51 }
 0x4fb   : > { %v3708_v62 = vadd.f32 %v3707_v59, %v3706_v53  ;;  %v3729_v63 = vrot.slane %v3728_v61, 4  ;;  %v4271_v59 = vld [vmem:[%s8119_s3 + $0x790] sm:$0xff] }
 0x4fd   : > { %v3709_v2 = vrot.slane %v3708_v62, 2  ;;  %v3730_v5 = vadd.f32 %v3729_v63, %v3728_v61  ;;  %v4254_v61 = vld [vmem:[%s8118_s2 + $0x208] sm:$0xff]  ;;  %v4273_v63 = vld [vmem:[%s8119_s3 + $0x7a0] sm:$0xff] }
 0x4ff   : > { %v3710_v8 = vadd.f32 %v3709_v2, %v3708_v62  ;;  %v3731_v42 = vrot.slane %v3730_v5, 2  ;;  %v4257_v2 = vld [vmem:[%s8118_s2 + $0x220] sm:$0xff] }
 0x501   : > { %v3711_v19 = vrot.slane %v3710_v8, 1  ;;  %v3732_v7 = vadd.f32 %v3731_v42, %v3730_v5  ;;  %v4258_v42 = vld [vmem:[%s8118_s2 + $0x228] sm:$0xff] }
 0x503   : > { %v3712_v10 = vadd.f32 %v3711_v19, %v3710_v8  ;;  %v3733_v47 = vrot.slane %v3732_v7, 1  ;;  %v4276_v8 = vld [vmem:[%s8119_s3 + $0x7b8] sm:$0xff] }
 0x504   : > { %v6533_v19 = vpack.c.bf16 %v4276_v8, %v4275_v6 }
 0x505   : > { %v7949_v58 = vadd.f32 %v3712_v10, %v3667_v48  ;;  %v3734_v3 = vadd.f32 %v3733_v47, %v3732_v7  ;;  %v4277_v7 = vld [vmem:[%s8119_s3 + $0x7c0] sm:$0xff]  ;;  %v4278_v48 = vld [vmem:[%s8119_s3 + $0x7c8] sm:$0xff]  ;;  %v4260_v10 = vld [vmem:[%s8118_s2 + $0x238] sm:$0xff] }
 0x506   : > { %v6537_v47 = vpack.c.bf16 %v4278_v48, %v4277_v7 }
 0x507   : > { %v7951_v4 = vadd.f32 %v3734_v3, %v3689_v57  ;;  %v4279_v57 = vld [vmem:[%s8119_s3 + $0x7d0] sm:$0xff]  ;;  %v4280_v3 = vld [vmem:[%s8119_s3 + $0x7d8] sm:$0xff] }
 0x508   : > { %v6541_v16 = vpack.c.bf16 %v4280_v3, %v4279_v57 }
 0x517   : > { %v5623_v20 = vpop.f32.mrb[32].mxu0 }
 0x518   : > { %v2812_v11 = vpop.f32.mrb[33].mxu0 }
 0x519   : > { %5665 = vmatprep.mubr.f32.mxu1 %v2812_v11 }
 0x51a   : > { %5666 = vmatmul.mubr.f32.vlgmr.msra.gmra.mrb[48].mxu1 %v5623_v20  ;;  %v4282_v20 = vld [vmem:[%s8119_s3 + $0x7e8] sm:$0xff] }
 0x51b   : > { %6444 = vmatpush3.bf16.msra.mxu1 %v7934_v9  ;;  %v5626_v21 = vpop.f32.mrb[34].mxu0  ;;  %v4229_v9 = vld [vmem:[%s8119_s3 + $0x5c0] sm:$0xff]  ;;  %v6545_v11 = vpack.c.bf16 %v4282_v20, %v4281_v18 }
 0x51c   : > { %v2822_v13 = vpop.f32.mrb[35].mxu0  ;;  %6446 = vmatprep.subr.bf16.mxu1 %v6445_v12  ;;  %v6457_v37 = vpack.c.bf16 %v4230_v22, %v4229_v9 }
 0x51d   : > { %5668 = vmatprep.mubr.f32.mxu1 %v2822_v13 }
 0x51e   : > { %5669 = vmatmul.mubr.f32.gmra.mrb[50].mxu1 %v5626_v21 }
 0x51f   : > { %6448 = vmatpush3.bf16.msra.mxu1 %v6445_v12  ;;  %v5629_v17 = vpop.f32.mrb[36].mxu0  ;;  %v4283_v12 = vld [vmem:[%s8119_s3 + $0x7f0] sm:$0xff] }
 0x520   : > { %v2832_v30 = vpop.f32.mrb[37].mxu0  ;;  %6450 = vmatprep.subr.bf16.mxu1 %v6449_v24  ;;  %v6549_v14 = vpack.c.bf16 %v4284_v29, %v4283_v12 }
 0x521   : > { %5671 = vmatprep.mubr.f32.mxu1 %v2832_v30 }
 0x522   : > { %5672 = vmatmul.mubr.f32.gmra.mrb[52].mxu1 %v5629_v17 }
 0x523   : > { %6452 = vmatpush3.bf16.msra.mxu1 %v6449_v24  ;;  %v5632_v34 = vpop.f32.mrb[38].mxu0 }
 0x524   : > { %v2842_v36 = vpop.f32.mrb[39].mxu0  ;;  %6454 = vmatprep.subr.bf16.mxu1 %v6453_v31 }
 0x525   : > { %5674 = vmatprep.mubr.f32.mxu1 %v2842_v36 }
 0x526   : > { %5675 = vmatmul.mubr.f32.gmra.mrb[54].mxu1 %v5632_v34 }
 0x527   : > { %6456 = vmatpush3.bf16.msra.mxu1 %v6453_v31  ;;  %v5695_v28 = vpop.f32.mrb[40].mxu0 }
 0x528   : > { %v3080_v33 = vpop.f32.mrb[41].mxu0  ;;  %6458 = vmatprep.subr.bf16.mxu1 %v6457_v37 }
 0x529   : > { %5737 = vmatprep.mubr.f32.mxu1 %v3080_v33  ;;  %5781 = vmatprep.mubr.f32.mxu0 %v3080_v33 }
 0x52a   : > { %5782 = vmatmul.mubr.f32.vlgmr.msra.gmra.mrb[24].mxu0 %v5695_v28 }
 0x52b   : > { %6460 = vmatpush3.bf16.msra.mxu1 %v6457_v37  ;;  %6508 = vmatpush3.bf16.msra.mxu0 %v6810_v50  ;;  %v5698_v39 = vpop.f32.mrb[42].mxu0 }
 0x52c   : > { %6510 = vmatprep.subr.bf16.mxu0 %v6814_v55  ;;  %v3090_v40 = vpop.f32.mrb[43].mxu0  ;;  %6462 = vmatprep.subr.bf16.mxu1 %v6461_v27 }
 0x52d   : > { %5784 = vmatprep.mubr.f32.mxu0 %v3090_v40 }
 0x52e   : > { %5785 = vmatmul.mubr.f32.gmra.mrb[26].mxu0 %v5698_v39 }
 0x52f   : > { %6464 = vmatpush3.bf16.msra.mxu1 %v6461_v27  ;;  %6512 = vmatpush3.bf16.msra.mxu0 %v6814_v55  ;;  %v5701_v50 = vpop.f32.mrb[44].mxu0 }
 0x530   : > { %6514 = vmatprep.subr.bf16.mxu0 %v6818_v60  ;;  %v3100_v46 = vpop.f32.mrb[45].mxu0  ;;  %6466 = vmatprep.subr.bf16.mxu1 %v6465_v43 }
 0x531   : > { %5787 = vmatprep.mubr.f32.mxu0 %v3100_v46 }
 0x532   : > { %5788 = vmatmul.mubr.f32.gmra.mrb[28].mxu0 %v5701_v50 }
 0x533   : > { %6468 = vmatpush3.bf16.msra.mxu1 %v6465_v43  ;;  %6516 = vmatpush3.bf16.msra.mxu0 %v6818_v60  ;;  %v5704_v55 = vpop.f32.mrb[46].mxu0  ;;  %v4272_v60 = vld [vmem:[%s8119_s3 + $0x798] sm:$0xff] }
 0x534   : > { %6518 = vmatprep.subr.bf16.mxu0 %v6822_v1  ;;  %v3110_v53 = vpop.f32.mrb[47].mxu0  ;;  %6470 = vmatprep.subr.bf16.mxu1 %v6469_v49  ;;  %v6525_v62 = vpack.c.bf16 %v4272_v60, %v4271_v59 }
 0x535   : > { %5790 = vmatprep.mubr.f32.mxu0 %v3110_v53 }
 0x536   : > { %5791 = vmatmul.mubr.f32.gmra.mrb[30].mxu0 %v5704_v55 }
 0x537   : > { %6472 = vmatpush3.bf16.msra.mxu1 %v6469_v49  ;;  %6520 = vmatpush3.bf16.msra.mxu0 %v6822_v1  ;;  %v4274_v1 = vld [vmem:[%s8119_s3 + $0x7a8] sm:$0xff] }
 0x538   : > { %5809 = vmatprep.mubr.msk.f32.mxu0 %vm398_vm0, %v4253_v56  ;;  %6522 = vmatprep.subr.bf16.mxu0 %v6521_v54  ;;  %v6529_v5 = vpack.c.bf16 %v4274_v1, %v4273_v63 }
 0x53a   : > { %5738 = vmatmul.mubr.f32.vlgmr.msra.gmra.mrb[48].mxu1 %v5695_v28  ;;  %5810 = vmatmul.mubr.msk.f32.vlgmr.msra.gmra.mrb[48].mxu0 %vm398_vm0, %v4254_v61 }
 0x53b   : > { %5740 = vmatprep.mubr.f32.mxu1 %v3090_v40  ;;  %5812 = vmatprep.mubr.msk.f32.mxu0 %vm398_vm0, %v4255_v32 }
 0x53c   : > { %6524 = vmatpush3.bf16.msra.mxu0 %v6521_v54 }
 0x53d   : > { %6526 = vmatprep.subr.bf16.mxu0 %v6525_v62 }
 0x53e   : > { %5741 = vmatmul.mubr.f32.gmra.mrb[50].mxu1 %v5698_v39  ;;  %5813 = vmatmul.mubr.msk.f32.gmra.mrb[50].mxu0 %vm398_vm0, %v4256_v0 }
 0x53f   : > { %5743 = vmatprep.mubr.f32.mxu1 %v3100_v46  ;;  %5815 = vmatprep.mubr.msk.f32.mxu0 %vm398_vm0, %v4257_v2 }
 0x540   : > { %6528 = vmatpush3.bf16.msra.mxu0 %v6525_v62 }
 0x541   : > { %6530 = vmatprep.subr.bf16.mxu0 %v6529_v5 }
 0x542   : > { %5744 = vmatmul.mubr.f32.gmra.mrb[52].mxu1 %v5701_v50  ;;  %5816 = vmatmul.mubr.msk.f32.gmra.mrb[52].mxu0 %vm398_vm0, %v4258_v42 }
 0x543   : > { %5746 = vmatprep.mubr.f32.mxu1 %v3110_v53  ;;  %5818 = vmatprep.mubr.msk.f32.mxu0 %vm398_vm0, %v4259_v15 }
 0x544   : > { %6532 = vmatpush3.bf16.msra.mxu0 %v6529_v5 }
 0x545   : > { %6534 = vmatprep.subr.bf16.mxu0 %v6533_v19 }
 0x546   : > { %5747 = vmatmul.mubr.f32.gmra.mrb[54].mxu1 %v5704_v55  ;;  %5819 = vmatmul.mubr.msk.f32.gmra.mrb[54].mxu0 %vm398_vm0, %v4260_v10 }
 0x548   : > { %6536 = vmatpush3.bf16.msra.mxu0 %v6533_v19 }
 0x549   : > { %6538 = vmatprep.subr.bf16.mxu0 %v6537_v47 }
 0x54c   : > { %6540 = vmatpush3.bf16.msra.mxu0 %v6537_v47 }
 0x54d   : > { %6542 = vmatprep.subr.bf16.mxu0 %v6541_v16 }
 0x550   : > { %6544 = vmatpush3.bf16.msra.mxu0 %v6541_v16 }
 0x551   : > { %6546 = vmatprep.subr.bf16.mxu0 %v6545_v11 }
 0x554   : > { %6548 = vmatpush3.bf16.msra.mxu0 %v6545_v11 }
 0x555   : > { %6550 = vmatprep.subr.bf16.mxu0 %v6549_v14 }
 0x558   : > { %6552 = vmatpush3.bf16.msra.mxu0 %v6549_v14 }
 0x60d   : > { %v5739_v21 = vpop.f32.mrb[48].mxu1  ;;  %v5811_v13 = vpop.f32.mrb[48].mxu0 }
 0x60e   : > { %4294 = vst [vmem:[%s6718_s7 + $0x88] sm:$0xff] %v5739_v21  ;;  %v3760_v24 = vmul.f32 %v5739_v21, %v5739_v21  ;;  %v3202_v25 = vpop.f32.mrb[49].mxu1  ;;  %v3478_v26 = vpop.f32.mrb[49].mxu0 }
 0x60f   : > { %4293 = vst [vmem:[%s6718_s7 + $0x80] sm:$0xff] %v3202_v25  ;;  %v3745_v17 = vadd.f32 %v5739_v21, %v3202_v25  ;;  %v3759_v30 = vmul.f32 %v3202_v25, %v3202_v25  ;;  %5853 = vmatprep.mubr.f32.mxu0 %v3478_v26 }
 0x610   : > { %5854 = vmatmul.mubr.f32.vlgmr.msra.gmra.mrb[24].mxu0 %v5811_v13 }
 0x611   : > { %v3767_v31 = vadd.f32 %v3760_v24, %v3759_v30  ;;  %v5742_v9 = vpop.f32.mrb[50].mxu1  ;;  %v5814_v22 = vpop.f32.mrb[50].mxu0 }
 0x612   : > { %4296 = vst [vmem:[%s6718_s7 + $0x98] sm:$0xff] %v5742_v9  ;;  %v3212_v34 = vpop.f32.mrb[51].mxu1  ;;  %v3488_v36 = vpop.f32.mrb[51].mxu0  ;;  %v3762_v35 = vmul.f32 %v5742_v9, %v5742_v9 }
 0x613   : > { %4295 = vst [vmem:[%s6718_s7 + $0x90] sm:$0xff] %v3212_v34  ;;  %v3746_v37 = vadd.f32 %v3745_v17, %v3212_v34  ;;  %v3761_v23 = vmul.f32 %v3212_v34, %v3212_v34  ;;  %5856 = vmatprep.mubr.f32.mxu0 %v3488_v36 }
 0x614   : > { %5857 = vmatmul.mubr.f32.gmra.mrb[26].mxu0 %v5814_v22 }
 0x615   : > { %v3768_v28 = vadd.f32 %v3767_v31, %v3761_v23  ;;  %v5745_v33 = vpop.f32.mrb[52].mxu1  ;;  %v3747_v27 = vadd.f32 %v5742_v9, %v3746_v37  ;;  %v5817_v38 = vpop.f32.mrb[52].mxu0 }
 0x616   : > { %4298 = vst [vmem:[%s6718_s7 + $0xa8] sm:$0xff] %v5745_v33  ;;  %v3222_v41 = vpop.f32.mrb[53].mxu1  ;;  %v3498_v39 = vpop.f32.mrb[53].mxu0  ;;  %v3764_v45 = vmul.f32 %v5745_v33, %v5745_v33 }
 0x617   : > { %4297 = vst [vmem:[%s6718_s7 + $0xa0] sm:$0xff] %v3222_v41  ;;  %v3748_v40 = vadd.f32 %v3747_v27, %v3222_v41  ;;  %v3763_v43 = vmul.f32 %v3222_v41, %v3222_v41  ;;  %v3769_v44 = vadd.f32 %v3768_v28, %v3762_v35  ;;  %5859 = vmatprep.mubr.f32.mxu0 %v3498_v39 }
 0x618   : > { %5860 = vmatmul.mubr.f32.gmra.mrb[28].mxu0 %v5817_v38 }
 0x619   : > { %v3770_v50 = vadd.f32 %v3769_v44, %v3763_v43  ;;  %v5748_v46 = vpop.f32.mrb[54].mxu1  ;;  %v3749_v49 = vadd.f32 %v5745_v33, %v3748_v40  ;;  %v5820_v51 = vpop.f32.mrb[54].mxu0 }
 0x61a   : > { %4300 = vst [vmem:[%s6718_s7 + $0xb8] sm:$0xff] %v5748_v46  ;;  %v3232_v52 = vpop.f32.mrb[55].mxu1  ;;  %v3508_v55 = vpop.f32.mrb[55].mxu0  ;;  %v3766_v59 = vmul.f32 %v5748_v46, %v5748_v46 }
 0x61b   : > { %4299 = vst [vmem:[%s6718_s7 + $0xb0] sm:$0xff] %v3232_v52  ;;  %v3750_v53 = vadd.f32 %v3749_v49, %v3232_v52  ;;  %v3765_v54 = vmul.f32 %v3232_v52, %v3232_v52  ;;  %v3771_v56 = vadd.f32 %v3770_v50, %v3764_v45  ;;  %5862 = vmatprep.mubr.f32.mxu0 %v3508_v55  ;;  %v3826_v52 = vld [vmem:[%s8121_s5] sm:$0x1] }
 0x61c   : > { %5863 = vmatmul.mubr.f32.gmra.mrb[30].mxu0 %v5820_v51 }
 0x61d   : > { %v3751_v60 = vadd.f32 %v5748_v46, %v3750_v53  ;;  %v3772_v61 = vadd.f32 %v3771_v56, %v3765_v54  ;;  %v3829_v54 = vld [vmem:[%s8122_s6] sm:$0x1] }
 0x61f   : > { %v3752_v32 = vrot.slane %v3751_v60, 4  ;;  %v3773_v62 = vadd.f32 %v3772_v61, %v3766_v59 }
 0x621   : > { %v3753_v63 = vadd.f32 %v3752_v32, %v3751_v60  ;;  %v3774_v1 = vrot.slane %v3773_v62, 4 }
 0x623   : > { %v3754_v0 = vrot.slane %v3753_v63, 2  ;;  %v3775_v2 = vadd.f32 %v3774_v1, %v3773_v62 }
 0x625   : > { %v3755_v5 = vadd.f32 %v3754_v0, %v3753_v63  ;;  %v3776_v6 = vrot.slane %v3775_v2, 2 }
 0x627   : > { %v3756_v8 = vrot.slane %v3755_v5, 1  ;;  %v3777_v42 = vadd.f32 %v3776_v6, %v3775_v2 }
 0x629   : > { %v3757_v15 = vadd.f32 %v3756_v8, %v3755_v5  ;;  %v3778_v19 = vrot.slane %v3777_v42, 1 }
 0x62b   : > { %v3758_v7 = vadd.f32 %v3757_v15, %v7949_v58  ;;  %v3779_v48 = vadd.f32 %v3778_v19, %v3777_v42 }
 0x62d   : > { %v3780_v10 = vadd.f32 %v3779_v48, %v7951_v4 }
 0x6e3   : > { %v5855_v47 = vpop.f32.mrb[24].mxu0 }
 0x6e4   : > { %4302 = vst [vmem:[%s6718_s7 + $0xc8] sm:$0xff] %v5855_v47  ;;  %v3805_v57 = vmul.f32 %v5855_v47, %v5855_v47  ;;  %v3600_v3 = vpop.f32.mrb[25].mxu0 }
 0x6e5   : > { %4301 = vst [vmem:[%s6718_s7 + $0xc0] sm:$0xff] %v3600_v3  ;;  %v3790_v16 = vadd.f32 %v5855_v47, %v3600_v3  ;;  %v3804_v18 = vmul.f32 %v3600_v3, %v3600_v3 }
 0x6e7   : > { %v3812_v20 = vadd.f32 %v3805_v57, %v3804_v18  ;;  %v5858_v11 = vpop.f32.mrb[26].mxu0 }
 0x6e8   : > { %4304 = vst [vmem:[%s6718_s7 + $0xd8] sm:$0xff] %v5858_v11  ;;  %v3610_v12 = vpop.f32.mrb[27].mxu0  ;;  %v3807_v14 = vmul.f32 %v5858_v11, %v5858_v11 }
 0x6e9   : > { %4303 = vst [vmem:[%s6718_s7 + $0xd0] sm:$0xff] %v3610_v12  ;;  %v3791_v29 = vadd.f32 %v3790_v16, %v3610_v12  ;;  %v3806_v58 = vmul.f32 %v3610_v12, %v3610_v12 }
 0x6eb   : > { %v3813_v4 = vadd.f32 %v3812_v20, %v3806_v58  ;;  %v5861_v21 = vpop.f32.mrb[28].mxu0  ;;  %v3792_v13 = vadd.f32 %v5858_v11, %v3791_v29 }
 0x6ec   : > { %4306 = vst [vmem:[%s6718_s7 + $0xe8] sm:$0xff] %v5861_v21  ;;  %v3620_v24 = vpop.f32.mrb[29].mxu0  ;;  %v3809_v30 = vmul.f32 %v5861_v21, %v5861_v21 }
 0x6ed   : > { %4305 = vst [vmem:[%s6718_s7 + $0xe0] sm:$0xff] %v3620_v24  ;;  %v3793_v25 = vadd.f32 %v3792_v13, %v3620_v24  ;;  %v3808_v26 = vmul.f32 %v3620_v24, %v3620_v24  ;;  %v3814_v17 = vadd.f32 %v3813_v4, %v3807_v14 }
 0x6ef   : > { %v3815_v31 = vadd.f32 %v3814_v17, %v3808_v26  ;;  %v5864_v9 = vpop.f32.mrb[30].mxu0  ;;  %v3794_v22 = vadd.f32 %v5861_v21, %v3793_v25 }
 0x6f0   : > { %4308 = vst [vmem:[%s6718_s7 + $0xf8] sm:$0xff] %v5864_v9  ;;  %v3630_v34 = vpop.f32.mrb[31].mxu0  ;;  %v3811_v35 = vmul.f32 %v5864_v9, %v5864_v9 }
 0x6f1   : > { %4307 = vst [vmem:[%s6718_s7 + $0xf0] sm:$0xff] %v3630_v34  ;;  %v3795_v36 = vadd.f32 %v3794_v22, %v3630_v34  ;;  %v3810_v37 = vmul.f32 %v3630_v34, %v3630_v34  ;;  %v3816_v23 = vadd.f32 %v3815_v31, %v3809_v30 }
 0x6f3   : > { %v3796_v28 = vadd.f32 %v5864_v9, %v3795_v36  ;;  %v3817_v33 = vadd.f32 %v3816_v23, %v3810_v37 }
 0x6f5   : > { %v3797_v27 = vrot.slane %v3796_v28, 4  ;;  %v3818_v38 = vadd.f32 %v3817_v33, %v3811_v35 }
 0x6f7   : > { %v3798_v41 = vadd.f32 %v3797_v27, %v3796_v28  ;;  %v3819_v39 = vrot.slane %v3818_v38, 4 }
 0x6f9   : > { %v3799_v40 = vrot.slane %v3798_v41, 2  ;;  %v3820_v43 = vadd.f32 %v3819_v39, %v3818_v38 }
 0x6fb   : > { %v3800_v44 = vadd.f32 %v3799_v40, %v3798_v41  ;;  %v3821_v45 = vrot.slane %v3820_v43, 2 }
 0x6fd   : > { %v3801_v50 = vrot.slane %v3800_v44, 1  ;;  %v3822_v46 = vadd.f32 %v3821_v45, %v3820_v43 }
 0x6ff   : > { %v3802_v49 = vadd.f32 %v3801_v50, %v3800_v44  ;;  %v3823_v51 = vrot.slane %v3822_v46, 1 }
 0x701   : > { %v3803_v55 = vadd.f32 %v3802_v49, %v3758_v7  ;;  %v3824_v53 = vadd.f32 %v3823_v51, %v3822_v46 }
 0x703   : > { %v3825_v56 = vadd.f32 %v3824_v53, %v3780_v10  ;;  %v3827_v59 = vadd.f32 %v3826_v52, %v3803_v55 }
 0x705   : > { %3828 = vst [vmem:[%s8121_s5] sm:$0x1] %v3827_v59  ;;  %v3830_v60 = vadd.f32 %v3829_v54, %v3825_v56 }
 0x707   : > { %3831 = vst [vmem:[%s8122_s6] sm:$0x1] %v3830_v60 }
 0x708 PF: > { %s17_s21 = sadd.s32 1, %s6664_s21  }
 0x709   : > { %p14_p5 = scmp.ge.s32.totalorder %s17_s21, 4  }
 0x70b   :  { %16 = sbr.rel (!%p14_p5) target bundleno = 1 (0x1), region = 112 }

</bundles_post_ra>
